<compile_context>
chip_gen: v6e
topology: v6e:2x2x1
jax: 0.10.0
libtpu: 0.0.40
codegen_flags: <defaults>
</compile_context>

<pallas_src>
import math

import jax
import jax.numpy as jnp
import numpy as np
from jax.experimental import pallas as pl
from jax.experimental.pallas import tpu as pltpu


STATE_DIM = 120     # hard-coded in the PyTorch module's __init__
STATE_PAD = 128     # lane-dense padded state width
OUT7_DIM = 32       # gcn_7 output width (before the folded 32->2 classifier)
NUM_CLASSES = 2     # final nn.Linear(32, 2)
N_RES = 6           # number of GraphResConvolution blocks


def _round_up(v, m):
    return ((v + m - 1) // m) * m


# ------------------------------ fused kernel --------------------------------

def _gcn_fused_kernel(x_ref, adj_ref,
                      wc0_ref, b0_ref,
                      wra_ref, bra_ref,
                      wrb_ref, brb_ref,
                      wc7_ref, b7_ref,
                      o_ref):
    """Whole GCN (gcn_0 + 6x GraphRes + gcn_7 + folded fc) for one block of
    bb graphs flattened to M = bb*N rows.

    * adj_ref is the exact block-diagonal adjacency of the bb graphs, so
      adj @ h is one well-shaped (M,M)x(M,width) matmul instead of bb tiny ones.
    * Each GraphConvolution is ONE weight matmul:
        concat([h, adj@h], -1) @ [[W1],[W2]]  ==  h@W1 + (adj@h)@W2
      with the two biases pre-fused, so K = 256 matches the v6e/v7x MXU depth.
    * MXU inputs are bf16, accumulation is f32; the residual path stays f32.
    * Output is a lane-dense (M, 128) f32 slab: real logits in lanes [0:2],
      lanes [2:128] are exactly zero.
    """
    f32 = jnp.float32
    bf16 = jnp.bfloat16

    adj = adj_ref[...]           # (M, M) bf16, block-diagonal over the bb graphs
    x = x_ref[...]               # (M, F_pad) bf16

    def gconv(h_b, wcat, bias):
        # fc1(h) + fc2(adj @ h) + (b1 + b2), as a single K = 2*width MXU matmul.
        ah = jnp.dot(adj, h_b, preferred_element_type=f32).astype(bf16)
        hcat = jnp.concatenate([h_b, ah], axis=-1)           # (M, 2*width) bf16
        return jnp.dot(hcat, wcat, preferred_element_type=f32) + bias

    # ---- gcn_0: feature_dim -> 120 (zero-padded to 128 lanes) --------------
    h = gconv(x, wc0_ref[...], b0_ref[...])                  # (M, 128) f32

    # ---- 6 GraphResConvolution blocks (static unroll; stacked weights are
    #      resident in VMEM: constant index_map -> DMA'd once) ---------------
    for i in range(N_RES):
        t = jnp.maximum(gconv(h.astype(bf16), wra_ref[i], bra_ref[i]), 0.0)
        h = jnp.maximum(gconv(t.astype(bf16), wrb_ref[i], brb_ref[i]) + h, 0.0)

    # ---- gcn_7 (120 -> 32) with the 32 -> 2 classifier folded in -----------
    o_ref[...] = gconv(h.astype(bf16), wc7_ref[...], b7_ref[...]).astype(o_ref.dtype)


# ------------------------------ pallas_call glue -----------------------------

def _shared(shape):
    """Weight/bias block shared by every grid step.  Constant index_map: the
    pipeliner skips the re-DMA once the block index stops changing (revisit
    behavior accepted explicitly); bf16 storage halves the VMEM footprint."""
    nd = len(shape)
    return pl.BlockSpec(shape, lambda g: (0,) * nd)


def choose_block_batch(batch, nodes, target_rows=256, min_grid=2):
    """Largest divisor bb of `batch` with bb*nodes <= target_rows (fills the
    256-row v6e/v7x MXU; two clean passes of the 128-row v5e MXU), while
    keeping >= min_grid grid steps when possible so both v7x TensorCores stay
    busy under dimension_semantics=('parallel',)."""
    best = 1
    for bb in range(1, batch + 1):
        if batch % bb:
            continue
        if bb * nodes > target_rows:
            break
        if batch // bb >= min_grid or batch < min_grid:
            best = bb
    return best


def _block_diag_adj(adj, bb):
    """Exact block-diagonal batched adjacency: off-diagonal blocks are exact
    zeros (built with zeros + set, not by tiling)."""
    B, N, _ = adj.shape
    G = B // bb
    a = adj.reshape(G, bb, N, N)
    out = jnp.zeros((G, bb, N, bb, N), adj.dtype)
    for j in range(bb):
        out = out.at[:, j, :, j, :].set(a[:, j])
    return out.reshape(G, bb * N, bb * N)


def gcn_fused_call(kp, x, adj):
    B, N, F = x.shape
    P = STATE_PAD
    F_pad = _round_up(F, 128)
    bb = choose_block_batch(B, N)
    G = B // bb
    M = bb * N

    # bf16 MXU inputs (f32 accumulation happens inside the kernel); F is
    # zero-padded to a lane multiple so the in-kernel concat is lane-aligned.
    x_b = jnp.pad(x, ((0, 0), (0, 0), (0, F_pad - F)))
    x_b = x_b.reshape(G, M, F_pad).astype(jnp.bfloat16)
    adj_bd = _block_diag_adj(adj, bb).astype(jnp.bfloat16)        # (G, M, M)

    return pl.pallas_call(
        _gcn_fused_kernel,
        out_shape=jax.ShapeDtypeStruct((G, M, P), jnp.float32),
        grid_spec=pltpu.PrefetchScalarGridSpec(
            num_scalar_prefetch=0,
            grid=(G,),
            in_specs=[
                pl.BlockSpec((None, M, F_pad), lambda g: (g, 0, 0)),   # x (batch-block squeezed)
                pl.BlockSpec((None, M, M), lambda g: (g, 0, 0)),       # block-diag adjacency
                _shared(kp["wc0"].shape), _shared(kp["b0"].shape),     # gcn_0
                _shared(kp["wra"].shape), _shared(kp["bra"].shape),    # res blocks, gcn_1
                _shared(kp["wrb"].shape), _shared(kp["brb"].shape),    # res blocks, gcn_2
                _shared(kp["wc7"].shape), _shared(kp["b7"].shape),     # gcn_7 (+ folded fc)
            ],
            out_specs=pl.BlockSpec((None, M, P), lambda g: (g, 0, 0)),  # lane-dense 128-wide
        ),
        compiler_params=pltpu.CompilerParams(
            dimension_semantics=("parallel",),    # v7x: grid steps split across the 2 TCs
        ),
    )(x_b, adj_bd,
      kp["wc0"], kp["b0"],
      kp["wra"], kp["bra"],
      kp["wrb"], kp["brb"],
      kp["wc7"], kp["b7"])


# ------------------------------ parameter init -------------------------------

def _linear_init(key, fan_in, fan_out):
    """Deterministic nn.Linear-style init: U(-1/sqrt(fan_in), 1/sqrt(fan_in))."""
    kw, kb = jax.random.split(key)
    bound = 1.0 / math.sqrt(fan_in)
    w = jax.random.uniform(kw, (fan_in, fan_out), jnp.float32, -bound, bound)
    b = jax.random.uniform(kb, (1, fan_out), jnp.float32, -bound, bound)
    return w, b


def _gcn_layer_params(key, d_in, d_out):
    k1, k2 = jax.random.split(key)
    w1, b1 = _linear_init(k1, d_in, d_out)   # fc1
    w2, b2 = _linear_init(k2, d_in, d_out)   # fc2
    return (w1, b1, w2, b2)


def init_gcn_params(key, feature_dim):
    keys = jax.random.split(key, 16)
    params = {
        "gcn_0": _gcn_layer_params(keys[0], feature_dim, STATE_DIM),
        "gcn_7": _gcn_layer_params(keys[13], STATE_DIM, OUT7_DIM),
    }
    for i in range(1, N_RES + 1):   # gcn_res_1 .. gcn_res_6
        params[f"gcn_res_{i}"] = (
            _gcn_layer_params(keys[2 * i - 1], STATE_DIM, STATE_DIM),
            _gcn_layer_params(keys[2 * i], STATE_DIM, STATE_DIM),
        )
    wf, bf = _linear_init(keys[14], OUT7_DIM, NUM_CLASSES)
    params["fc"] = (wf, bf)
    return params


def pack_params_for_kernel(params):
    """Zero-pad 120->128 (and F to a lane multiple), fuse (b1+b2), stack the
    6 residual blocks, vertically concat W1/W2 into one K=2*width matrix, fold
    the 32->2 classifier into gcn_7, and store weights in bf16 (biases f32)."""
    P = STATE_PAD
    wdt = jnp.bfloat16

    def pad2(w, rows, cols=P):
        return jnp.pad(w, ((0, rows - w.shape[0]), (0, cols - w.shape[1])))

    def cat(wa, wb):
        return jnp.concatenate([wa, wb], axis=0)

    # gcn_0: feature_dim -> 120 ;  Wcat0 = [[W1],[W2]]  -> (2*F_pad, 128)
    w1, b1, w2, b2 = params["gcn_0"]
    F = w1.shape[0]
    F_pad = _round_up(F, 128)
    kp = {
        "wc0": cat(pad2(w1, F_pad), pad2(w2, F_pad)).astype(wdt),
        "b0": pad2(b1 + b2, 1).astype(jnp.float32),
    }

    # 6 residual blocks (two GraphConvolutions each), stacked on a leading axis
    wa_l, ba_l, wb_l, bb_l = [], [], [], []
    for i in range(1, N_RES + 1):
        (w1a, b1a, w2a, b2a), (w1b, b1b, w2b, b2b) = params[f"gcn_res_{i}"]
        wa_l.append(cat(pad2(w1a, P), pad2(w2a, P)))
        ba_l.append(pad2(b1a + b2a, 1))
        wb_l.append(cat(pad2(w1b, P), pad2(w2b, P)))
        bb_l.append(pad2(b1b + b2b, 1))
    kp["wra"] = jnp.stack(wa_l).astype(wdt)      # (6, 256, 128) bf16
    kp["bra"] = jnp.stack(ba_l)                  # (6, 1, 128)   f32
    kp["wrb"] = jnp.stack(wb_l).astype(wdt)
    kp["brb"] = jnp.stack(bb_l)

    # gcn_7 (120 -> 32) with the final fc (32 -> 2) folded in (exact algebra):
    #   (h@W1 + (adj@h)@W2 + b1 + b2) @ Wf + bf
    # = h@(W1@Wf) + (adj@h)@(W2@Wf) + ((b1+b2)@Wf + bf)
    w17, b17, w27, b27 = params["gcn_7"]
    wf, bf = params["fc"]
    kp["wc7"] = cat(pad2(w17 @ wf, P), pad2(w27 @ wf, P)).astype(wdt)   # (256, 128)
    kp["b7"] = pad2((b17 + b27) @ wf + bf, 1).astype(jnp.float32)       # (1, 128)
    return kp


# ------------------------------- forward pass --------------------------------

@jax.jit
def gcn_forward(kp, x, adj):
    B, N, _ = x.shape
    h = gcn_fused_call(kp, x, adj)          # (G, bb*N, 128), classifier folded in
    h = h.reshape(B, N, STATE_PAD)
    # Real logits live in lanes [0:2] of the lane-dense output slab.
    return h[..., :NUM_CLASSES]


def gcn_forward_ref(params, x, adj):
    """Plain-JAX f32 reference implementing the PyTorch semantics (unpadded)."""
    def gconv(h, a, p):
        w1, b1, w2, b2 = p
        return h @ w1 + b1 + (a @ h) @ w2 + b2

    h = gconv(x, adj, params["gcn_0"])
    for i in range(1, N_RES + 1):
        p1, p2 = params[f"gcn_res_{i}"]
        t = jnp.maximum(gconv(h, adj, p1), 0.0)
        h = jnp.maximum(gconv(t, adj, p2) + h, 0.0)
    h = gconv(h, adj, params["gcn_7"])
    wf, bf = params["fc"]
    return h @ wf + bf


# ----------------------------------- main -------------------------------------

if __name__ == "__main__":
    key = jax.random.PRNGKey(0)
    k_params, k_x, k_adj = jax.random.split(key, 3)

    B, N, F = 8, 16, 64          # small: 8 graphs, 16 nodes each, feature_dim=64
    params = init_gcn_params(k_params, feature_dim=F)
    kp = pack_params_for_kernel(params)

    x = jax.random.normal(k_x, (B, N, F), dtype=jnp.float32)
    # row-normalized adjacency (soft), deterministic
    adj_logits = jax.random.normal(k_adj, (B, N, N), dtype=jnp.float32)
    adj = jax.nn.softmax(adj_logits, axis=-1)

    out = jax.block_until_ready(gcn_forward(kp, x, adj))
    assert out.shape == (B, N, NUM_CLASSES) and out.dtype == jnp.float32

    ref = gcn_forward_ref(params, x, adj)
    # bf16 MXU inputs (f32 accumulation) across ~15 stacked matmul layers:
    # expect ~1% drift vs. the f32 reference; a wiring bug would be O(1) off.
    np.testing.assert_allclose(np.asarray(out), np.asarray(ref), rtol=5e-2, atol=1e-1)

    print("KERNEL_OK")
</pallas_src>

<mosaic_0001>
module attributes {stable_mosaic.version = 11 : i64} {
  func.func @_gcn_fused_kernel(%arg0: i32, %arg1: memref<1x64x128xbf16, #tpu.memory_space<vmem>>, %arg2: memref<1x64x64xbf16, #tpu.memory_space<vmem>>, %arg3: memref<256x128xbf16, #tpu.memory_space<vmem>>, %arg4: memref<1x128xf32, #tpu.memory_space<vmem>>, %arg5: memref<6x256x128xbf16, #tpu.memory_space<vmem>>, %arg6: memref<6x1x128xf32, #tpu.memory_space<vmem>>, %arg7: memref<6x256x128xbf16, #tpu.memory_space<vmem>>, %arg8: memref<6x1x128xf32, #tpu.memory_space<vmem>>, %arg9: memref<256x128xbf16, #tpu.memory_space<vmem>>, %arg10: memref<1x128xf32, #tpu.memory_space<vmem>>, %arg11: memref<1x64x128xf32, #tpu.memory_space<vmem>>) attributes {dimension_semantics = [#tpu.dimension_semantics<parallel>], iteration_bounds = array<i64: 2>, scalar_prefetch = 0 : i64, scratch_operands = 0 : i64, tpu.core_type = #tpu.core_type<tc>, window_params = [{transform_indices = @transform_0, window_bounds = array<i64: 1, 64, 128>}, {transform_indices = @transform_1, window_bounds = array<i64: 1, 64, 64>}, {pipeline_mode = #tpu.pipeline_mode<synchronous>, transform_indices = @transform_2, window_bounds = array<i64: 256, 128>}, {pipeline_mode = #tpu.pipeline_mode<synchronous>, transform_indices = @transform_3, window_bounds = array<i64: 1, 128>}, {pipeline_mode = #tpu.pipeline_mode<synchronous>, transform_indices = @transform_4, window_bounds = array<i64: 6, 256, 128>}, {pipeline_mode = #tpu.pipeline_mode<synchronous>, transform_indices = @transform_5, window_bounds = array<i64: 6, 1, 128>}, {pipeline_mode = #tpu.pipeline_mode<synchronous>, transform_indices = @transform_6, window_bounds = array<i64: 6, 256, 128>}, {pipeline_mode = #tpu.pipeline_mode<synchronous>, transform_indices = @transform_7, window_bounds = array<i64: 6, 1, 128>}, {pipeline_mode = #tpu.pipeline_mode<synchronous>, transform_indices = @transform_8, window_bounds = array<i64: 256, 128>}, {pipeline_mode = #tpu.pipeline_mode<synchronous>, transform_indices = @transform_9, window_bounds = array<i64: 1, 128>}, {transform_indices = @transform_10, window_bounds = array<i64: 1, 64, 128>}]} {
    %c0 = arith.constant 0 : index
    %c0_0 = arith.constant 0 : index
    %c0_1 = arith.constant 0 : index
    %0 = vector.load %arg2[%c0, %c0_0, %c0_1] : memref<1x64x64xbf16, #tpu.memory_space<vmem>>, vector<1x64x64xbf16>
    %1 = vector.shape_cast %0 : vector<1x64x64xbf16> to vector<64x64xbf16>
    %c0_2 = arith.constant 0 : index
    %c0_3 = arith.constant 0 : index
    %c0_4 = arith.constant 0 : index
    %2 = vector.load %arg1[%c0_2, %c0_3, %c0_4] : memref<1x64x128xbf16, #tpu.memory_space<vmem>>, vector<1x64x128xbf16>
    %3 = vector.shape_cast %2 : vector<1x64x128xbf16> to vector<64x128xbf16>
    %c0_5 = arith.constant 0 : index
    %c0_6 = arith.constant 0 : index
    %4 = vector.load %arg3[%c0_5, %c0_6] : memref<256x128xbf16, #tpu.memory_space<vmem>>, vector<256x128xbf16>
    %c0_7 = arith.constant 0 : index
    %c0_8 = arith.constant 0 : index
    %5 = vector.load %arg4[%c0_7, %c0_8] : memref<1x128xf32, #tpu.memory_space<vmem>>, vector<1x128xf32>
    %cst = arith.constant dense<0.000000e+00> : vector<64x128xf32>
    %6 = tpu.matmul %1, %3, %cst {dimension_numbers = #tpu.dot_dimension_numbers<[1], [0], [0], [1], [0, 0, 1, 1], [], []>} : vector<64x64xbf16>, vector<64x128xbf16>, vector<64x128xf32> -> vector<64x128xf32>
    %7 = arith.truncf %6 : vector<64x128xf32> to vector<64x128xbf16>
    %8 = tpu.concatenate %3, %7 in 1 : vector<64x128xbf16>, vector<64x128xbf16> -> vector<64x256xbf16>
    %cst_9 = arith.constant dense<0.000000e+00> : vector<64x128xf32>
    %9 = tpu.matmul %8, %4, %cst_9 {dimension_numbers = #tpu.dot_dimension_numbers<[1], [0], [0], [1], [0, 0, 1, 1], [], []>} : vector<64x256xbf16>, vector<256x128xbf16>, vector<64x128xf32> -> vector<64x128xf32>
    %10 = vector.broadcast %5 : vector<1x128xf32> to vector<64x128xf32>
    %11 = arith.addf %9, %10 : vector<64x128xf32>
    %12 = arith.truncf %11 : vector<64x128xf32> to vector<64x128xbf16>
    %c0_10 = arith.constant 0 : index
    %c0_11 = arith.constant 0 : index
    %c0_12 = arith.constant 0 : index
    %13 = vector.load %arg5[%c0_10, %c0_11, %c0_12] : memref<6x256x128xbf16, #tpu.memory_space<vmem>>, vector<1x256x128xbf16>
    %14 = vector.shape_cast %13 : vector<1x256x128xbf16> to vector<256x128xbf16>
    %c0_13 = arith.constant 0 : index
    %c0_14 = arith.constant 0 : index
    %c0_15 = arith.constant 0 : index
    %15 = vector.load %arg6[%c0_13, %c0_14, %c0_15] : memref<6x1x128xf32, #tpu.memory_space<vmem>>, vector<1x1x128xf32>
    %16 = vector.shape_cast %15 : vector<1x1x128xf32> to vector<1x128xf32>
    %cst_16 = arith.constant dense<0.000000e+00> : vector<64x128xf32>
    %17 = tpu.matmul %1, %12, %cst_16 {dimension_numbers = #tpu.dot_dimension_numbers<[1], [0], [0], [1], [0, 0, 1, 1], [], []>} : vector<64x64xbf16>, vector<64x128xbf16>, vector<64x128xf32> -> vector<64x128xf32>
    %18 = arith.truncf %17 : vector<64x128xf32> to vector<64x128xbf16>
    %19 = tpu.concatenate %12, %18 in 1 : vector<64x128xbf16>, vector<64x128xbf16> -> vector<64x256xbf16>
    %cst_17 = arith.constant dense<0.000000e+00> : vector<64x128xf32>
    %20 = tpu.matmul %19, %14, %cst_17 {dimension_numbers = #tpu.dot_dimension_numbers<[1], [0], [0], [1], [0, 0, 1, 1], [], []>} : vector<64x256xbf16>, vector<256x128xbf16>, vector<64x128xf32> -> vector<64x128xf32>
    %21 = vector.broadcast %16 : vector<1x128xf32> to vector<64x128xf32>
    %22 = arith.addf %20, %21 : vector<64x128xf32>
    %cst_18 = arith.constant 0.000000e+00 : f32
    %23 = vector.broadcast %cst_18 : f32 to vector<64x128xf32>
    %24 = arith.maximumf %22, %23 : vector<64x128xf32>
    %25 = arith.truncf %24 : vector<64x128xf32> to vector<64x128xbf16>
    %c0_19 = arith.constant 0 : index
    %c0_20 = arith.constant 0 : index
    %c0_21 = arith.constant 0 : index
    %26 = vector.load %arg7[%c0_19, %c0_20, %c0_21] : memref<6x256x128xbf16, #tpu.memory_space<vmem>>, vector<1x256x128xbf16>
    %27 = vector.shape_cast %26 : vector<1x256x128xbf16> to vector<256x128xbf16>
    %c0_22 = arith.constant 0 : index
    %c0_23 = arith.constant 0 : index
    %c0_24 = arith.constant 0 : index
    %28 = vector.load %arg8[%c0_22, %c0_23, %c0_24] : memref<6x1x128xf32, #tpu.memory_space<vmem>>, vector<1x1x128xf32>
    %29 = vector.shape_cast %28 : vector<1x1x128xf32> to vector<1x128xf32>
    %cst_25 = arith.constant dense<0.000000e+00> : vector<64x128xf32>
    %30 = tpu.matmul %1, %25, %cst_25 {dimension_numbers = #tpu.dot_dimension_numbers<[1], [0], [0], [1], [0, 0, 1, 1], [], []>} : vector<64x64xbf16>, vector<64x128xbf16>, vector<64x128xf32> -> vector<64x128xf32>
    %31 = arith.truncf %30 : vector<64x128xf32> to vector<64x128xbf16>
    %32 = tpu.concatenate %25, %31 in 1 : vector<64x128xbf16>, vector<64x128xbf16> -> vector<64x256xbf16>
    %cst_26 = arith.constant dense<0.000000e+00> : vector<64x128xf32>
    %33 = tpu.matmul %32, %27, %cst_26 {dimension_numbers = #tpu.dot_dimension_numbers<[1], [0], [0], [1], [0, 0, 1, 1], [], []>} : vector<64x256xbf16>, vector<256x128xbf16>, vector<64x128xf32> -> vector<64x128xf32>
    %34 = vector.broadcast %29 : vector<1x128xf32> to vector<64x128xf32>
    %35 = arith.addf %33, %34 : vector<64x128xf32>
    %36 = arith.addf %35, %11 : vector<64x128xf32>
    %cst_27 = arith.constant 0.000000e+00 : f32
    %37 = vector.broadcast %cst_27 : f32 to vector<64x128xf32>
    %38 = arith.maximumf %36, %37 : vector<64x128xf32>
    %39 = arith.truncf %38 : vector<64x128xf32> to vector<64x128xbf16>
    %c1 = arith.constant 1 : index
    %c0_28 = arith.constant 0 : index
    %c0_29 = arith.constant 0 : index
    %40 = vector.load %arg5[%c1, %c0_28, %c0_29] : memref<6x256x128xbf16, #tpu.memory_space<vmem>>, vector<1x256x128xbf16>
    %41 = vector.shape_cast %40 : vector<1x256x128xbf16> to vector<256x128xbf16>
    %c1_30 = arith.constant 1 : index
    %c0_31 = arith.constant 0 : index
    %c0_32 = arith.constant 0 : index
    %42 = vector.load %arg6[%c1_30, %c0_31, %c0_32] : memref<6x1x128xf32, #tpu.memory_space<vmem>>, vector<1x1x128xf32>
    %43 = vector.shape_cast %42 : vector<1x1x128xf32> to vector<1x128xf32>
    %cst_33 = arith.constant dense<0.000000e+00> : vector<64x128xf32>
    %44 = tpu.matmul %1, %39, %cst_33 {dimension_numbers = #tpu.dot_dimension_numbers<[1], [0], [0], [1], [0, 0, 1, 1], [], []>} : vector<64x64xbf16>, vector<64x128xbf16>, vector<64x128xf32> -> vector<64x128xf32>
    %45 = arith.truncf %44 : vector<64x128xf32> to vector<64x128xbf16>
    %46 = tpu.concatenate %39, %45 in 1 : vector<64x128xbf16>, vector<64x128xbf16> -> vector<64x256xbf16>
    %cst_34 = arith.constant dense<0.000000e+00> : vector<64x128xf32>
    %47 = tpu.matmul %46, %41, %cst_34 {dimension_numbers = #tpu.dot_dimension_numbers<[1], [0], [0], [1], [0, 0, 1, 1], [], []>} : vector<64x256xbf16>, vector<256x128xbf16>, vector<64x128xf32> -> vector<64x128xf32>
    %48 = vector.broadcast %43 : vector<1x128xf32> to vector<64x128xf32>
    %49 = arith.addf %47, %48 : vector<64x128xf32>
    %cst_35 = arith.constant 0.000000e+00 : f32
    %50 = vector.broadcast %cst_35 : f32 to vector<64x128xf32>
    %51 = arith.maximumf %49, %50 : vector<64x128xf32>
    %52 = arith.truncf %51 : vector<64x128xf32> to vector<64x128xbf16>
    %c1_36 = arith.constant 1 : index
    %c0_37 = arith.constant 0 : index
    %c0_38 = arith.constant 0 : index
    %53 = vector.load %arg7[%c1_36, %c0_37, %c0_38] : memref<6x256x128xbf16, #tpu.memory_space<vmem>>, vector<1x256x128xbf16>
    %54 = vector.shape_cast %53 : vector<1x256x128xbf16> to vector<256x128xbf16>
    %c1_39 = arith.constant 1 : index
    %c0_40 = arith.constant 0 : index
    %c0_41 = arith.constant 0 : index
    %55 = vector.load %arg8[%c1_39, %c0_40, %c0_41] : memref<6x1x128xf32, #tpu.memory_space<vmem>>, vector<1x1x128xf32>
    %56 = vector.shape_cast %55 : vector<1x1x128xf32> to vector<1x128xf32>
    %cst_42 = arith.constant dense<0.000000e+00> : vector<64x128xf32>
    %57 = tpu.matmul %1, %52, %cst_42 {dimension_numbers = #tpu.dot_dimension_numbers<[1], [0], [0], [1], [0, 0, 1, 1], [], []>} : vector<64x64xbf16>, vector<64x128xbf16>, vector<64x128xf32> -> vector<64x128xf32>
    %58 = arith.truncf %57 : vector<64x128xf32> to vector<64x128xbf16>
    %59 = tpu.concatenate %52, %58 in 1 : vector<64x128xbf16>, vector<64x128xbf16> -> vector<64x256xbf16>
    %cst_43 = arith.constant dense<0.000000e+00> : vector<64x128xf32>
    %60 = tpu.matmul %59, %54, %cst_43 {dimension_numbers = #tpu.dot_dimension_numbers<[1], [0], [0], [1], [0, 0, 1, 1], [], []>} : vector<64x256xbf16>, vector<256x128xbf16>, vector<64x128xf32> -> vector<64x128xf32>
    %61 = vector.broadcast %56 : vector<1x128xf32> to vector<64x128xf32>
    %62 = arith.addf %60, %61 : vector<64x128xf32>
    %63 = arith.addf %62, %38 : vector<64x128xf32>
    %cst_44 = arith.constant 0.000000e+00 : f32
    %64 = vector.broadcast %cst_44 : f32 to vector<64x128xf32>
    %65 = arith.maximumf %63, %64 : vector<64x128xf32>
    %66 = arith.truncf %65 : vector<64x128xf32> to vector<64x128xbf16>
    %c2 = arith.constant 2 : index
    %c0_45 = arith.constant 0 : index
    %c0_46 = arith.constant 0 : index
    %67 = vector.load %arg5[%c2, %c0_45, %c0_46] : memref<6x256x128xbf16, #tpu.memory_space<vmem>>, vector<1x256x128xbf16>
    %68 = vector.shape_cast %67 : vector<1x256x128xbf16> to vector<256x128xbf16>
    %c2_47 = arith.constant 2 : index
    %c0_48 = arith.constant 0 : index
    %c0_49 = arith.constant 0 : index
    %69 = vector.load %arg6[%c2_47, %c0_48, %c0_49] : memref<6x1x128xf32, #tpu.memory_space<vmem>>, vector<1x1x128xf32>
    %70 = vector.shape_cast %69 : vector<1x1x128xf32> to vector<1x128xf32>
    %cst_50 = arith.constant dense<0.000000e+00> : vector<64x128xf32>
    %71 = tpu.matmul %1, %66, %cst_50 {dimension_numbers = #tpu.dot_dimension_numbers<[1], [0], [0], [1], [0, 0, 1, 1], [], []>} : vector<64x64xbf16>, vector<64x128xbf16>, vector<64x128xf32> -> vector<64x128xf32>
    %72 = arith.truncf %71 : vector<64x128xf32> to vector<64x128xbf16>
    %73 = tpu.concatenate %66, %72 in 1 : vector<64x128xbf16>, vector<64x128xbf16> -> vector<64x256xbf16>
    %cst_51 = arith.constant dense<0.000000e+00> : vector<64x128xf32>
    %74 = tpu.matmul %73, %68, %cst_51 {dimension_numbers = #tpu.dot_dimension_numbers<[1], [0], [0], [1], [0, 0, 1, 1], [], []>} : vector<64x256xbf16>, vector<256x128xbf16>, vector<64x128xf32> -> vector<64x128xf32>
    %75 = vector.broadcast %70 : vector<1x128xf32> to vector<64x128xf32>
    %76 = arith.addf %74, %75 : vector<64x128xf32>
    %cst_52 = arith.constant 0.000000e+00 : f32
    %77 = vector.broadcast %cst_52 : f32 to vector<64x128xf32>
    %78 = arith.maximumf %76, %77 : vector<64x128xf32>
    %79 = arith.truncf %78 : vector<64x128xf32> to vector<64x128xbf16>
    %c2_53 = arith.constant 2 : index
    %c0_54 = arith.constant 0 : index
    %c0_55 = arith.constant 0 : index
    %80 = vector.load %arg7[%c2_53, %c0_54, %c0_55] : memref<6x256x128xbf16, #tpu.memory_space<vmem>>, vector<1x256x128xbf16>
    %81 = vector.shape_cast %80 : vector<1x256x128xbf16> to vector<256x128xbf16>
    %c2_56 = arith.constant 2 : index
    %c0_57 = arith.constant 0 : index
    %c0_58 = arith.constant 0 : index
    %82 = vector.load %arg8[%c2_56, %c0_57, %c0_58] : memref<6x1x128xf32, #tpu.memory_space<vmem>>, vector<1x1x128xf32>
    %83 = vector.shape_cast %82 : vector<1x1x128xf32> to vector<1x128xf32>
    %cst_59 = arith.constant dense<0.000000e+00> : vector<64x128xf32>
    %84 = tpu.matmul %1, %79, %cst_59 {dimension_numbers = #tpu.dot_dimension_numbers<[1], [0], [0], [1], [0, 0, 1, 1], [], []>} : vector<64x64xbf16>, vector<64x128xbf16>, vector<64x128xf32> -> vector<64x128xf32>
    %85 = arith.truncf %84 : vector<64x128xf32> to vector<64x128xbf16>
    %86 = tpu.concatenate %79, %85 in 1 : vector<64x128xbf16>, vector<64x128xbf16> -> vector<64x256xbf16>
    %cst_60 = arith.constant dense<0.000000e+00> : vector<64x128xf32>
    %87 = tpu.matmul %86, %81, %cst_60 {dimension_numbers = #tpu.dot_dimension_numbers<[1], [0], [0], [1], [0, 0, 1, 1], [], []>} : vector<64x256xbf16>, vector<256x128xbf16>, vector<64x128xf32> -> vector<64x128xf32>
    %88 = vector.broadcast %83 : vector<1x128xf32> to vector<64x128xf32>
    %89 = arith.addf %87, %88 : vector<64x128xf32>
    %90 = arith.addf %89, %65 : vector<64x128xf32>
    %cst_61 = arith.constant 0.000000e+00 : f32
    %91 = vector.broadcast %cst_61 : f32 to vector<64x128xf32>
    %92 = arith.maximumf %90, %91 : vector<64x128xf32>
    %93 = arith.truncf %92 : vector<64x128xf32> to vector<64x128xbf16>
    %c3 = arith.constant 3 : index
    %c0_62 = arith.constant 0 : index
    %c0_63 = arith.constant 0 : index
    %94 = vector.load %arg5[%c3, %c0_62, %c0_63] : memref<6x256x128xbf16, #tpu.memory_space<vmem>>, vector<1x256x128xbf16>
    %95 = vector.shape_cast %94 : vector<1x256x128xbf16> to vector<256x128xbf16>
    %c3_64 = arith.constant 3 : index
    %c0_65 = arith.constant 0 : index
    %c0_66 = arith.constant 0 : index
    %96 = vector.load %arg6[%c3_64, %c0_65, %c0_66] : memref<6x1x128xf32, #tpu.memory_space<vmem>>, vector<1x1x128xf32>
    %97 = vector.shape_cast %96 : vector<1x1x128xf32> to vector<1x128xf32>
    %cst_67 = arith.constant dense<0.000000e+00> : vector<64x128xf32>
    %98 = tpu.matmul %1, %93, %cst_67 {dimension_numbers = #tpu.dot_dimension_numbers<[1], [0], [0], [1], [0, 0, 1, 1], [], []>} : vector<64x64xbf16>, vector<64x128xbf16>, vector<64x128xf32> -> vector<64x128xf32>
    %99 = arith.truncf %98 : vector<64x128xf32> to vector<64x128xbf16>
    %100 = tpu.concatenate %93, %99 in 1 : vector<64x128xbf16>, vector<64x128xbf16> -> vector<64x256xbf16>
    %cst_68 = arith.constant dense<0.000000e+00> : vector<64x128xf32>
    %101 = tpu.matmul %100, %95, %cst_68 {dimension_numbers = #tpu.dot_dimension_numbers<[1], [0], [0], [1], [0, 0, 1, 1], [], []>} : vector<64x256xbf16>, vector<256x128xbf16>, vector<64x128xf32> -> vector<64x128xf32>
    %102 = vector.broadcast %97 : vector<1x128xf32> to vector<64x128xf32>
    %103 = arith.addf %101, %102 : vector<64x128xf32>
    %cst_69 = arith.constant 0.000000e+00 : f32
    %104 = vector.broadcast %cst_69 : f32 to vector<64x128xf32>
    %105 = arith.maximumf %103, %104 : vector<64x128xf32>
    %106 = arith.truncf %105 : vector<64x128xf32> to vector<64x128xbf16>
    %c3_70 = arith.constant 3 : index
    %c0_71 = arith.constant 0 : index
    %c0_72 = arith.constant 0 : index
    %107 = vector.load %arg7[%c3_70, %c0_71, %c0_72] : memref<6x256x128xbf16, #tpu.memory_space<vmem>>, vector<1x256x128xbf16>
    %108 = vector.shape_cast %107 : vector<1x256x128xbf16> to vector<256x128xbf16>
    %c3_73 = arith.constant 3 : index
    %c0_74 = arith.constant 0 : index
    %c0_75 = arith.constant 0 : index
    %109 = vector.load %arg8[%c3_73, %c0_74, %c0_75] : memref<6x1x128xf32, #tpu.memory_space<vmem>>, vector<1x1x128xf32>
    %110 = vector.shape_cast %109 : vector<1x1x128xf32> to vector<1x128xf32>
    %cst_76 = arith.constant dense<0.000000e+00> : vector<64x128xf32>
    %111 = tpu.matmul %1, %106, %cst_76 {dimension_numbers = #tpu.dot_dimension_numbers<[1], [0], [0], [1], [0, 0, 1, 1], [], []>} : vector<64x64xbf16>, vector<64x128xbf16>, vector<64x128xf32> -> vector<64x128xf32>
    %112 = arith.truncf %111 : vector<64x128xf32> to vector<64x128xbf16>
    %113 = tpu.concatenate %106, %112 in 1 : vector<64x128xbf16>, vector<64x128xbf16> -> vector<64x256xbf16>
    %cst_77 = arith.constant dense<0.000000e+00> : vector<64x128xf32>
    %114 = tpu.matmul %113, %108, %cst_77 {dimension_numbers = #tpu.dot_dimension_numbers<[1], [0], [0], [1], [0, 0, 1, 1], [], []>} : vector<64x256xbf16>, vector<256x128xbf16>, vector<64x128xf32> -> vector<64x128xf32>
    %115 = vector.broadcast %110 : vector<1x128xf32> to vector<64x128xf32>
    %116 = arith.addf %114, %115 : vector<64x128xf32>
    %117 = arith.addf %116, %92 : vector<64x128xf32>
    %cst_78 = arith.constant 0.000000e+00 : f32
    %118 = vector.broadcast %cst_78 : f32 to vector<64x128xf32>
    %119 = arith.maximumf %117, %118 : vector<64x128xf32>
    %120 = arith.truncf %119 : vector<64x128xf32> to vector<64x128xbf16>
    %c4 = arith.constant 4 : index
    %c0_79 = arith.constant 0 : index
    %c0_80 = arith.constant 0 : index
    %121 = vector.load %arg5[%c4, %c0_79, %c0_80] : memref<6x256x128xbf16, #tpu.memory_space<vmem>>, vector<1x256x128xbf16>
    %122 = vector.shape_cast %121 : vector<1x256x128xbf16> to vector<256x128xbf16>
    %c4_81 = arith.constant 4 : index
    %c0_82 = arith.constant 0 : index
    %c0_83 = arith.constant 0 : index
    %123 = vector.load %arg6[%c4_81, %c0_82, %c0_83] : memref<6x1x128xf32, #tpu.memory_space<vmem>>, vector<1x1x128xf32>
    %124 = vector.shape_cast %123 : vector<1x1x128xf32> to vector<1x128xf32>
    %cst_84 = arith.constant dense<0.000000e+00> : vector<64x128xf32>
    %125 = tpu.matmul %1, %120, %cst_84 {dimension_numbers = #tpu.dot_dimension_numbers<[1], [0], [0], [1], [0, 0, 1, 1], [], []>} : vector<64x64xbf16>, vector<64x128xbf16>, vector<64x128xf32> -> vector<64x128xf32>
    %126 = arith.truncf %125 : vector<64x128xf32> to vector<64x128xbf16>
    %127 = tpu.concatenate %120, %126 in 1 : vector<64x128xbf16>, vector<64x128xbf16> -> vector<64x256xbf16>
    %cst_85 = arith.constant dense<0.000000e+00> : vector<64x128xf32>
    %128 = tpu.matmul %127, %122, %cst_85 {dimension_numbers = #tpu.dot_dimension_numbers<[1], [0], [0], [1], [0, 0, 1, 1], [], []>} : vector<64x256xbf16>, vector<256x128xbf16>, vector<64x128xf32> -> vector<64x128xf32>
    %129 = vector.broadcast %124 : vector<1x128xf32> to vector<64x128xf32>
    %130 = arith.addf %128, %129 : vector<64x128xf32>
    %cst_86 = arith.constant 0.000000e+00 : f32
    %131 = vector.broadcast %cst_86 : f32 to vector<64x128xf32>
    %132 = arith.maximumf %130, %131 : vector<64x128xf32>
    %133 = arith.truncf %132 : vector<64x128xf32> to vector<64x128xbf16>
    %c4_87 = arith.constant 4 : index
    %c0_88 = arith.constant 0 : index
    %c0_89 = arith.constant 0 : index
    %134 = vector.load %arg7[%c4_87, %c0_88, %c0_89] : memref<6x256x128xbf16, #tpu.memory_space<vmem>>, vector<1x256x128xbf16>
    %135 = vector.shape_cast %134 : vector<1x256x128xbf16> to vector<256x128xbf16>
    %c4_90 = arith.constant 4 : index
    %c0_91 = arith.constant 0 : index
    %c0_92 = arith.constant 0 : index
    %136 = vector.load %arg8[%c4_90, %c0_91, %c0_92] : memref<6x1x128xf32, #tpu.memory_space<vmem>>, vector<1x1x128xf32>
    %137 = vector.shape_cast %136 : vector<1x1x128xf32> to vector<1x128xf32>
    %cst_93 = arith.constant dense<0.000000e+00> : vector<64x128xf32>
    %138 = tpu.matmul %1, %133, %cst_93 {dimension_numbers = #tpu.dot_dimension_numbers<[1], [0], [0], [1], [0, 0, 1, 1], [], []>} : vector<64x64xbf16>, vector<64x128xbf16>, vector<64x128xf32> -> vector<64x128xf32>
    %139 = arith.truncf %138 : vector<64x128xf32> to vector<64x128xbf16>
    %140 = tpu.concatenate %133, %139 in 1 : vector<64x128xbf16>, vector<64x128xbf16> -> vector<64x256xbf16>
    %cst_94 = arith.constant dense<0.000000e+00> : vector<64x128xf32>
    %141 = tpu.matmul %140, %135, %cst_94 {dimension_numbers = #tpu.dot_dimension_numbers<[1], [0], [0], [1], [0, 0, 1, 1], [], []>} : vector<64x256xbf16>, vector<256x128xbf16>, vector<64x128xf32> -> vector<64x128xf32>
    %142 = vector.broadcast %137 : vector<1x128xf32> to vector<64x128xf32>
    %143 = arith.addf %141, %142 : vector<64x128xf32>
    %144 = arith.addf %143, %119 : vector<64x128xf32>
    %cst_95 = arith.constant 0.000000e+00 : f32
    %145 = vector.broadcast %cst_95 : f32 to vector<64x128xf32>
    %146 = arith.maximumf %144, %145 : vector<64x128xf32>
    %147 = arith.truncf %146 : vector<64x128xf32> to vector<64x128xbf16>
    %c5 = arith.constant 5 : index
    %c0_96 = arith.constant 0 : index
    %c0_97 = arith.constant 0 : index
    %148 = vector.load %arg5[%c5, %c0_96, %c0_97] : memref<6x256x128xbf16, #tpu.memory_space<vmem>>, vector<1x256x128xbf16>
    %149 = vector.shape_cast %148 : vector<1x256x128xbf16> to vector<256x128xbf16>
    %c5_98 = arith.constant 5 : index
    %c0_99 = arith.constant 0 : index
    %c0_100 = arith.constant 0 : index
    %150 = vector.load %arg6[%c5_98, %c0_99, %c0_100] : memref<6x1x128xf32, #tpu.memory_space<vmem>>, vector<1x1x128xf32>
    %151 = vector.shape_cast %150 : vector<1x1x128xf32> to vector<1x128xf32>
    %cst_101 = arith.constant dense<0.000000e+00> : vector<64x128xf32>
    %152 = tpu.matmul %1, %147, %cst_101 {dimension_numbers = #tpu.dot_dimension_numbers<[1], [0], [0], [1], [0, 0, 1, 1], [], []>} : vector<64x64xbf16>, vector<64x128xbf16>, vector<64x128xf32> -> vector<64x128xf32>
    %153 = arith.truncf %152 : vector<64x128xf32> to vector<64x128xbf16>
    %154 = tpu.concatenate %147, %153 in 1 : vector<64x128xbf16>, vector<64x128xbf16> -> vector<64x256xbf16>
    %cst_102 = arith.constant dense<0.000000e+00> : vector<64x128xf32>
    %155 = tpu.matmul %154, %149, %cst_102 {dimension_numbers = #tpu.dot_dimension_numbers<[1], [0], [0], [1], [0, 0, 1, 1], [], []>} : vector<64x256xbf16>, vector<256x128xbf16>, vector<64x128xf32> -> vector<64x128xf32>
    %156 = vector.broadcast %151 : vector<1x128xf32> to vector<64x128xf32>
    %157 = arith.addf %155, %156 : vector<64x128xf32>
    %cst_103 = arith.constant 0.000000e+00 : f32
    %158 = vector.broadcast %cst_103 : f32 to vector<64x128xf32>
    %159 = arith.maximumf %157, %158 : vector<64x128xf32>
    %160 = arith.truncf %159 : vector<64x128xf32> to vector<64x128xbf16>
    %c5_104 = arith.constant 5 : index
    %c0_105 = arith.constant 0 : index
    %c0_106 = arith.constant 0 : index
    %161 = vector.load %arg7[%c5_104, %c0_105, %c0_106] : memref<6x256x128xbf16, #tpu.memory_space<vmem>>, vector<1x256x128xbf16>
    %162 = vector.shape_cast %161 : vector<1x256x128xbf16> to vector<256x128xbf16>
    %c5_107 = arith.constant 5 : index
    %c0_108 = arith.constant 0 : index
    %c0_109 = arith.constant 0 : index
    %163 = vector.load %arg8[%c5_107, %c0_108, %c0_109] : memref<6x1x128xf32, #tpu.memory_space<vmem>>, vector<1x1x128xf32>
    %164 = vector.shape_cast %163 : vector<1x1x128xf32> to vector<1x128xf32>
    %cst_110 = arith.constant dense<0.000000e+00> : vector<64x128xf32>
    %165 = tpu.matmul %1, %160, %cst_110 {dimension_numbers = #tpu.dot_dimension_numbers<[1], [0], [0], [1], [0, 0, 1, 1], [], []>} : vector<64x64xbf16>, vector<64x128xbf16>, vector<64x128xf32> -> vector<64x128xf32>
    %166 = arith.truncf %165 : vector<64x128xf32> to vector<64x128xbf16>
    %167 = tpu.concatenate %160, %166 in 1 : vector<64x128xbf16>, vector<64x128xbf16> -> vector<64x256xbf16>
    %cst_111 = arith.constant dense<0.000000e+00> : vector<64x128xf32>
    %168 = tpu.matmul %167, %162, %cst_111 {dimension_numbers = #tpu.dot_dimension_numbers<[1], [0], [0], [1], [0, 0, 1, 1], [], []>} : vector<64x256xbf16>, vector<256x128xbf16>, vector<64x128xf32> -> vector<64x128xf32>
    %169 = vector.broadcast %164 : vector<1x128xf32> to vector<64x128xf32>
    %170 = arith.addf %168, %169 : vector<64x128xf32>
    %171 = arith.addf %170, %146 : vector<64x128xf32>
    %cst_112 = arith.constant 0.000000e+00 : f32
    %172 = vector.broadcast %cst_112 : f32 to vector<64x128xf32>
    %173 = arith.maximumf %171, %172 : vector<64x128xf32>
    %174 = arith.truncf %173 : vector<64x128xf32> to vector<64x128xbf16>
    %c0_113 = arith.constant 0 : index
    %c0_114 = arith.constant 0 : index
    %175 = vector.load %arg9[%c0_113, %c0_114] : memref<256x128xbf16, #tpu.memory_space<vmem>>, vector<256x128xbf16>
    %c0_115 = arith.constant 0 : index
    %c0_116 = arith.constant 0 : index
    %176 = vector.load %arg10[%c0_115, %c0_116] : memref<1x128xf32, #tpu.memory_space<vmem>>, vector<1x128xf32>
    %cst_117 = arith.constant dense<0.000000e+00> : vector<64x128xf32>
    %177 = tpu.matmul %1, %174, %cst_117 {dimension_numbers = #tpu.dot_dimension_numbers<[1], [0], [0], [1], [0, 0, 1, 1], [], []>} : vector<64x64xbf16>, vector<64x128xbf16>, vector<64x128xf32> -> vector<64x128xf32>
    %178 = arith.truncf %177 : vector<64x128xf32> to vector<64x128xbf16>
    %179 = tpu.concatenate %174, %178 in 1 : vector<64x128xbf16>, vector<64x128xbf16> -> vector<64x256xbf16>
    %cst_118 = arith.constant dense<0.000000e+00> : vector<64x128xf32>
    %180 = tpu.matmul %179, %175, %cst_118 {dimension_numbers = #tpu.dot_dimension_numbers<[1], [0], [0], [1], [0, 0, 1, 1], [], []>} : vector<64x256xbf16>, vector<256x128xbf16>, vector<64x128xf32> -> vector<64x128xf32>
    %181 = vector.broadcast %176 : vector<1x128xf32> to vector<64x128xf32>
    %182 = arith.addf %180, %181 : vector<64x128xf32>
    %c0_119 = arith.constant 0 : index
    %c0_120 = arith.constant 0 : index
    %c0_121 = arith.constant 0 : index
    %183 = vector.load %arg11[%c0_119, %c0_120, %c0_121] : memref<1x64x128xf32, #tpu.memory_space<vmem>>, vector<1x64x128xf32>
    %184 = vector.shape_cast %183 : vector<1x64x128xf32> to vector<64x128xf32>
    %185 = vector.shape_cast %182 : vector<64x128xf32> to vector<1x64x128xf32>
    tpu.vector_store %arg11[%c0_119, %c0_120, %c0_121], %185 {strides = array<i32>} : memref<1x64x128xf32, #tpu.memory_space<vmem>>, vector<1x64x128xf32>,
    return
  }
  func.func @transform_0(%arg0: i32) -> (i32, i32, i32) {
    %c0_i32 = arith.constant 0 : i32
    %c0_i32_0 = arith.constant 0 : i32
    %c0_i32_1 = arith.constant 0 : i32
    return %arg0, %c0_i32, %c0_i32_0 : i32, i32, i32
  }
  func.func @transform_1(%arg0: i32) -> (i32, i32, i32) {
    %c0_i32 = arith.constant 0 : i32
    %c0_i32_0 = arith.constant 0 : i32
    %c0_i32_1 = arith.constant 0 : i32
    return %arg0, %c0_i32, %c0_i32_0 : i32, i32, i32
  }
  func.func @transform_2(%arg0: i32) -> (i32, i32) {
    %c0_i32 = arith.constant 0 : i32
    %c0_i32_0 = arith.constant 0 : i32
    %c0_i32_1 = arith.constant 0 : i32
    return %c0_i32, %c0_i32_0 : i32, i32
  }
  func.func @transform_3(%arg0: i32) -> (i32, i32) {
    %c0_i32 = arith.constant 0 : i32
    %c0_i32_0 = arith.constant 0 : i32
    %c0_i32_1 = arith.constant 0 : i32
    return %c0_i32, %c0_i32_0 : i32, i32
  }
  func.func @transform_4(%arg0: i32) -> (i32, i32, i32) {
    %c0_i32 = arith.constant 0 : i32
    %c0_i32_0 = arith.constant 0 : i32
    %c0_i32_1 = arith.constant 0 : i32
    %c0_i32_2 = arith.constant 0 : i32
    return %c0_i32, %c0_i32_0, %c0_i32_1 : i32, i32, i32
  }
  func.func @transform_5(%arg0: i32) -> (i32, i32, i32) {
    %c0_i32 = arith.constant 0 : i32
    %c0_i32_0 = arith.constant 0 : i32
    %c0_i32_1 = arith.constant 0 : i32
    %c0_i32_2 = arith.constant 0 : i32
    return %c0_i32, %c0_i32_0, %c0_i32_1 : i32, i32, i32
  }
  func.func @transform_6(%arg0: i32) -> (i32, i32, i32) {
    %c0_i32 = arith.constant 0 : i32
    %c0_i32_0 = arith.constant 0 : i32
    %c0_i32_1 = arith.constant 0 : i32
    %c0_i32_2 = arith.constant 0 : i32
    return %c0_i32, %c0_i32_0, %c0_i32_1 : i32, i32, i32
  }
  func.func @transform_7(%arg0: i32) -> (i32, i32, i32) {
    %c0_i32 = arith.constant 0 : i32
    %c0_i32_0 = arith.constant 0 : i32
    %c0_i32_1 = arith.constant 0 : i32
    %c0_i32_2 = arith.constant 0 : i32
    return %c0_i32, %c0_i32_0, %c0_i32_1 : i32, i32, i32
  }
  func.func @transform_8(%arg0: i32) -> (i32, i32) {
    %c0_i32 = arith.constant 0 : i32
    %c0_i32_0 = arith.constant 0 : i32
    %c0_i32_1 = arith.constant 0 : i32
    return %c0_i32, %c0_i32_0 : i32, i32
  }
  func.func @transform_9(%arg0: i32) -> (i32, i32) {
    %c0_i32 = arith.constant 0 : i32
    %c0_i32_0 = arith.constant 0 : i32
    %c0_i32_1 = arith.constant 0 : i32
    return %c0_i32, %c0_i32_0 : i32, i32
  }
  func.func @transform_10(%arg0: i32) -> (i32, i32, i32) {
    %c0_i32 = arith.constant 0 : i32
    %c0_i32_0 = arith.constant 0 : i32
    %c0_i32_1 = arith.constant 0 : i32
    return %arg0, %c0_i32, %c0_i32_0 : i32, i32, i32
  }
}

</mosaic_0001>

<bundles_post_ra>
// kernel: gcn_forward.1
= control target key start
LH: loop header
LB: loop body
LE: loop exit
PB: predicated region body
PF: predicated region fallthrough
CT: control target
= control target key end

     0   :  { %15 = vsyncpa [#allocation3], 0  ;;  %s6287_s13 = smov 0   ;;  %s7297_s0 = inlined_call_operand.vmem [shape: bf16[2,64,128], index: 0, kind: input, shape index: {}]   ;;  %s7298_s1 = inlined_call_operand.vmem [shape: bf16[2,64,64], index: 1, kind: input, shape index: {}]   ;;  %s7299_s2 = inlined_call_operand.vmem [shape: bf16[256,128], index: 2, kind: input, shape index: {}]   ;;  %s7300_s3 = inlined_call_operand.vmem [shape: f32[1,128], index: 3, kind: input, shape index: {}]   ;;  %s7301_s4 = inlined_call_operand.vmem [shape: bf16[6,256,128], index: 4, kind: input, shape index: {}]   ;;  %s7302_s5 = inlined_call_operand.vmem [shape: f32[6,1,128], index: 5, kind: input, shape index: {}]   ;;  %s7303_s6 = inlined_call_operand.hbm [shape: bf16[6,256,128], index: 6, kind: input, shape index: {}]   ;;  %s7304_s7 = inlined_call_operand.vmem [shape: f32[6,1,128], index: 7, kind: input, shape index: {}]   ;;  %s7305_s8 = inlined_call_operand.vmem [shape: bf16[256,128], index: 8, kind: input, shape index: {}]   ;;  %s7306_s9 = inlined_call_operand.vmem [shape: f32[1,128], index: 9, kind: input, shape index: {}]   ;;  %s7307_s10 = inlined_call_operand.vmem [shape: f32[2,64,128], index: 10, kind: output, shape index: {}]  }
   0x1 LB: > { %s4538_s14 = sadd.s32 4294967295, %s6227_s13   ;;  %p4540_p0 = scmp.ge.s32.totalorder %s6227_s13, 1  ;;  %s6227_s13 = sphi %s6287_s13, %s21_s13  }
   0x2   : > { %p272_p1 = scmp.lt.s32.totalorder %s6227_s13, 3  ;;  %s6229_s15 = smov [#allocation2]  }
   0x3   : > { %s296_s16 = sshll.u32 %s6229_s15, 4  ;;  %p5932_p3 = scmp.eq.s32.totalorder %s4538_s14, 0  ;;  %s297_s16 = int_to_ptr.vmem [resolvable:$true] %s296_s16 }
   0x4   : > { %p6295_p2 = pnand %p4540_p0, %p272_p1  ;;  %s6202_s18 = scalar_lea.vmem %s297_s16, 12288 }
   0x5   : > { %p6203_p7 = scmp.ne.s32.totalorder %s297_s16, %s6202_s18  ;;  %p6210_p10 = scmp.lt.s32.totalorder %s297_s16, %s297_s16 }
   0x6   : > { %p5928_p4 = pneg %p6295_p2  ;;  %p6211_p11 = scmp.lt.s32.totalorder %s6202_s18, %s6202_s18 }
   0x8   : > { %p5929_p5 = pnand %p5932_p3, %p5928_p4  ;;  %p6212_p12 = por %p6211_p11, %p6210_p10 }
   0xa   : > { %p6193_p6 = pneg %p5929_p5 }
   0xc   : > { %p6205_p8 = pnand %p6203_p7, %p6193_p6 }
   0xe   : > { %p6206_p9 = pneg %p6205_p8 }
  0x10   : > { %p6213_p13 = pnand %p6212_p12, %p6206_p9 }
  0x12   : > { %6216 = shalt.err (!%p6213_p13)
}
  0x13   : > { %s6230_s19 = smov 64   ;;  %s6231_s20 = smov 4  }
  0x14   : > { %5931 = dma.hbm_to_vmem [thread:$0]  (!%p5929_p5), %s7303_s6, 12288, %s297_s16, [#allocation3], %s6230_s19, %s6230_s19, %s6231_s20  }
  0x15   : > { %337 = sbr.rel (%p6295_p2) target bundleno = 6327 (0x18b7), region = 60 }
  0x1a   : > { %6222 = dma.done.wait (%p5932_p3), [#allocation3], 12288  }
  0x1b   : > { %6224 = vsyncadd (%p5932_p3), [#allocation3], 4294955008  ;;  %p380_p0 = scmp.lt.s32.totalorder %s4538_s14, 1  ;;  %vm489_vm0 = vcmask 523264   ;;  %v5953_v6 = vld [vmem:[%s7299_s2 + $0x78] sm:$0xff]   ;;  %v5955_v9 = vld [vmem:[%s7299_s2 + $0x70] sm:$0xff]  }
  0x1c   : > { %v5954_v8 = vld [vmem:[%s7299_s2 + $0x38] sm:$0xff]   ;;  %v5956_v10 = vld [vmem:[%s7299_s2 + $0x30] sm:$0xff]   ;;  %v5957_v11 = vld [vmem:[%s7299_s2 + $0x68] sm:$0xff]  }
  0x1d   : > { %s7310_s14 = smov (!%p380_p0, %s4538_s14), 1  ;;  %v5958_v13 = vld [vmem:[%s7299_s2 + $0x28] sm:$0xff]   ;;  %v5959_v14 = vld [vmem:[%s7299_s2 + $0x60] sm:$0xff]   ;;  %v5961_v16 = vld [vmem:[%s7299_s2 + $0x58] sm:$0xff]  }
  0x1e   : > { %s5025_s23 = sshll.u32 %s7310_s14, 5  ;;  %v5960_v15 = vld [vmem:[%s7299_s2 + $0x20] sm:$0xff]   ;;  %v5962_v17 = vld [vmem:[%s7299_s2 + $0x18] sm:$0xff]   ;;  %v5963_v18 = vld [vmem:[%s7299_s2 + $0x50] sm:$0xff]   ;;  %s5027_s21 = sshll.u32 %s7310_s14, 6 }
  0x1f   : > { %s6315_s26 = scalar_lea.vmem %s7298_s1, %s5025_s23  ;;  %s6320_s29 = scalar_lea.vmem %s7297_s0, %s5025_s23  ;;  %v5964_v19 = vld [vmem:[%s7299_s2 + $0x10] sm:$0xff]   ;;  %v5965_v20 = vld [vmem:[%s7299_s2 + $0x48] sm:$0xff]   ;;  %v5967_v22 = vld [vmem:[%s7299_s2 + $0x40] sm:$0xff]  }
  0x20   : > { %v5945_v0 = vld [vmem:[%s6315_s26] sm:$0xff]   ;;  %v5949_v1 = vld [vmem:[%s6320_s29 + $0x18] sm:$0xff]   ;;  %v5950_v2 = vld [vmem:[%s6320_s29 + $0x10] sm:$0xff]   ;;  %s7284_s25 = scalar_lea.vmem %s7307_s10, %s5027_s21 }
  0x21   : > { %5708 = vmatprep.mubr.msk.bf16.mxu1 %vm489_vm0, %v5945_v0  ;;  %5724 = vmatprep.mubr.msk.bf16.mxu0 %vm489_vm0, %v5945_v0  ;;  %v5951_v3 = vld [vmem:[%s6320_s29 + $0x8] sm:$0xff]   ;;  %v5952_v4 = vld [vmem:[%s6320_s29] sm:$0xff]   ;;  %v5947_v7 = vld [vmem:[%s6315_s26 + $0x10] sm:$0xff]  }
  0x22   : > { %5700 = vmatprep.subr.bf16.mxu1 %v5949_v1  ;;  %v5946_v5 = vld [vmem:[%s6315_s26 + $0x8] sm:$0xff]   ;;  %v5948_v12 = vld [vmem:[%s6315_s26 + $0x18] sm:$0xff]   ;;  %v5968_v23 = vld [vmem:[%s7299_s2] sm:$0xff]  }
  0x23   : > { %5701 = vmatpush3.bf16.msra.mxu1 %v5949_v1  ;;  %v5966_v21 = vld [vmem:[%s7299_s2 + $0x8] sm:$0xff]   ;;  %v6177_v36 = vld [vmem:[%s6320_s29 + $0x10] sm:$0xff]   ;;  %v6178_v37 = vld [vmem:[%s6320_s29 + $0x18] sm:$0xff]  }
  0x24   : > { %5702 = vmatprep.subr.bf16.mxu1 %v5950_v2  ;;  %v6386_v38 = vld [vmem:[%s6315_s26] sm:$0xff]  }
  0x25   : > { %v4563_v59 = vld [vmem:[%s7300_s3] ss:$0 sm:$0xff] }
  0x27   : > { %5703 = vmatpush3.bf16.msra.mxu1 %v5950_v2 }
  0x28   : > { %5704 = vmatprep.subr.bf16.mxu1 %v5951_v3 }
  0x2b   : > { %5705 = vmatpush3.bf16.msra.mxu1 %v5951_v3 }
  0x2c   : > { %5706 = vmatprep.subr.bf16.mxu1 %v5952_v4 }
  0x2f   : > { %5707 = vmatpush3.bf16.msra.mxu1 %v5952_v4 }
  0x30   : > { %5036 = vmatprep.subr.bf16.mxu1 %v5953_v6 }
  0x32   : > { %5709 = vmatmul.mubr.msk.bf16.vlgmr.msra.gmra.mxu1 %vm489_vm0, %v5946_v5 }
  0x33   : > { %5712 = vmatprep.mubr.msk.bf16.mxu1 %vm489_vm0, %v5947_v7  ;;  %5037 = vmatpush3.bf16.msra.mxu1 %v5954_v8 }
  0x34   : > { %5038 = vmatprep.subr.bf16.mxu1 %v5955_v9 }
  0x37   : > { %5039 = vmatpush3.bf16.msra.mxu1 %v5956_v10 }
  0x38   : > { %5040 = vmatprep.subr.bf16.mxu1 %v5957_v11 }
  0x3a   : > { %5713 = vmatmul.mubr.msk.bf16.gmra.mxu1 %vm489_vm0, %v5948_v12  ;;  %v5969_v12 = vld [vmem:[%s7301_s4 + $0x78] sm:$0xff]  }
  0x3b   : > { %5041 = vmatpush3.bf16.msra.mxu1 %v5958_v13  ;;  %v5970_v13 = vld [vmem:[%s7301_s4 + $0x38] sm:$0xff]  }
  0x3c   : > { %5042 = vmatprep.subr.bf16.mxu1 %v5959_v14  ;;  %v5971_v14 = vld [vmem:[%s7301_s4 + $0x70] sm:$0xff]  }
  0x3f   : > { %5043 = vmatpush3.bf16.msra.mxu1 %v5960_v15  ;;  %v6435_v15 = vld [vmem:[%s6315_s26 + $0x8] sm:$0xff]  }
  0x40   : > { %5044 = vmatprep.subr.bf16.mxu1 %v5961_v16  ;;  %v6440_v16 = vld [vmem:[%s6315_s26 + $0x10] sm:$0xff]  }
  0x43   : > { %5045 = vmatpush3.bf16.msra.mxu1 %v5962_v17  ;;  %v5972_v17 = vld [vmem:[%s7301_s4 + $0x30] sm:$0xff]  }
  0x44   : > { %5046 = vmatprep.subr.bf16.mxu1 %v5963_v18  ;;  %v5973_v18 = vld [vmem:[%s7301_s4 + $0x68] sm:$0xff]  }
  0x47   : > { %5047 = vmatpush3.bf16.msra.mxu1 %v5964_v19  ;;  %v5974_v19 = vld [vmem:[%s7301_s4 + $0x28] sm:$0xff]  }
  0x48   : > { %5048 = vmatprep.subr.bf16.mxu1 %v5965_v20  ;;  %v5975_v20 = vld [vmem:[%s7301_s4 + $0x60] sm:$0xff]  }
  0x4b   : > { %5049 = vmatpush3.bf16.msra.mxu1 %v5966_v21  ;;  %v6457_v21 = vld [vmem:[%s6315_s26 + $0x18] sm:$0xff]  }
  0x4c   : > { %5050 = vmatprep.subr.bf16.mxu1 %v5967_v22  ;;  %v5976_v22 = vld [vmem:[%s7301_s4 + $0x20] sm:$0xff]  }
  0x4f   : > { %5051 = vmatpush3.bf16.msra.mxu1 %v5968_v23  ;;  %v5977_v23 = vld [vmem:[%s7301_s4 + $0x58] sm:$0xff]  }
  0xf2   : > { %v5710_v24 = vpop.f32.mrf.mxu1 }
  0xf4   : > { %v536_v25 = vpop.f32.mrf.mxu1 }
  0xf6   : > { %v5711_v26 = vpop.f32.mrf.mxu1 }
  0xf7   : > { %v568_v30 = vpack.c.bf16 %v5711_v26, %v5710_v24  ;;  %v5978_v24 = vld [vmem:[%s7301_s4 + $0x18] sm:$0xff]   ;;  %v5980_v26 = vld [vmem:[%s7301_s4 + $0x10] sm:$0xff]  }
  0xf8   : > { %v539_v27 = vpop.f32.mrf.mxu1 }
  0xf9   : > { %v567_v28 = vpack.c.bf16 %v539_v27, %v536_v25  ;;  %v5979_v25 = vld [vmem:[%s7301_s4 + $0x50] sm:$0xff]   ;;  %v5981_v27 = vld [vmem:[%s7301_s4 + $0x48] sm:$0xff]  }
  0xfa   : > { %v5714_v29 = vpop.f32.mrf.mxu1 }
  0xfb   : > { %705 = vmatprep.mubr.bf16.mxu1 %v567_v28  ;;  %v5982_v28 = vld [vmem:[%s7301_s4 + $0x8] sm:$0xff]  }
  0xfc   : > { %706 = vmatmul.mubr.bf16.vlgmr.msra.gmra.mxu1 %v5952_v4  ;;  %v552_v31 = vpop.f32.mrf.mxu1 }
  0xfd   : > { %713 = vmatprep.mubr.bf16.mxu1 %v568_v30  ;;  %v5984_v30 = vld [vmem:[%s7301_s4] sm:$0xff]  }
  0xfe   : > { %v5715_v32 = vpop.f32.mrf.mxu1 }
  0xff   : > { %v570_v35 = vpack.c.bf16 %v5715_v32, %v5714_v29  ;;  %v5983_v29 = vld [vmem:[%s7301_s4 + $0x40] sm:$0xff]  }
 0x100   : > { %v555_v33 = vpop.f32.mrf.mxu1 }
 0x101   : > { %v569_v34 = vpack.c.bf16 %v555_v33, %v552_v31 }
 0x104   : > { %714 = vmatmul.mubr.bf16.gmra.mxu1 %v5951_v3 }
 0x105   : > { %721 = vmatprep.mubr.bf16.mxu1 %v569_v34 }
 0x10c   : > { %722 = vmatmul.mubr.bf16.gmra.mxu1 %v6177_v36 }
 0x10d   : > { %729 = vmatprep.mubr.bf16.mxu1 %v570_v35 }
 0x114   : > { %730 = vmatmul.mubr.bf16.gmra.mxu1 %v6178_v37 }
 0x115   : > { %5740 = vmatprep.mubr.msk.bf16.mxu1 %vm489_vm0, %v6386_v38 }
 0x1bc   : > { %v5052_v39 = vpop.f32.mrf.mxu1 }
 0x1be   : > { %v5053_v40 = vpop.f32.mrf.mxu1 }
 0x1bf   : > { %v5054_v6 = vadd.f32 %v5053_v40, %v5052_v39 }
 0x1c0   : > { %v5055_v41 = vpop.f32.mrf.mxu1 }
 0x1c1   : > { %v6421_v10 = vadd.f32 %v5054_v6, %v4563_v59 }
 0x1c2   : > { %v5056_v42 = vpop.f32.mrf.mxu1 }
 0x1c3   : > { %v5057_v3 = vadd.f32 %v5056_v42, %v5055_v41 }
 0x1c4   : > { %v5058_v43 = vpop.f32.mrf.mxu1 }
 0x1c5   : > { %v6416_v8 = vadd.f32 %v5057_v3, %v4563_v59 }
 0x1c6   : > { %v5059_v44 = vpop.f32.mrf.mxu1 }
 0x1c7   : > { %v5060_v0 = vadd.f32 %v5059_v44, %v5058_v43  ;;  %v738_v11 = vpack.c.bf16 %v6416_v8, %v6421_v10  ;;  %v5985_v44 = vld [vmem:[#allocation2 + $0x78] sm:$0xff]  }
 0x1c8   : > { %v5061_v45 = vpop.f32.mrf.mxu1 }
 0x1c9   : > { %v6413_v7 = vadd.f32 %v5060_v0, %v4563_v59 }
 0x1ca   : > { %v5062_v46 = vpop.f32.mrf.mxu1 }
 0x1cb   : > { %v5063_v60 = vadd.f32 %v5062_v46, %v5061_v45  ;;  %v5986_v45 = vld [vmem:[#allocation2 + $0x38] sm:$0xff]   ;;  %v5987_v46 = vld [vmem:[#allocation2 + $0x70] sm:$0xff]  }
 0x1cc   : > { %v5064_v47 = vpop.f32.mrf.mxu1 }
 0x1cd   : > { %v6405_v4 = vadd.f32 %v5063_v60, %v4563_v59 }
 0x1ce   : > { %v5065_v48 = vpop.f32.mrf.mxu1 }
 0x1cf   : > { %v5066_v57 = vadd.f32 %v5065_v48, %v5064_v47  ;;  %v739_v9 = vpack.c.bf16 %v6405_v4, %v6413_v7  ;;  %v5988_v47 = vld [vmem:[#allocation2 + $0x30] sm:$0xff]   ;;  %v5989_v48 = vld [vmem:[#allocation2 + $0x68] sm:$0xff]  }
 0x1d0   : > { %v5067_v49 = vpop.f32.mrf.mxu1 }
 0x1d1   : > { %v6399_v1 = vadd.f32 %v5066_v57, %v4563_v59 }
 0x1d2   : > { %v5068_v50 = vpop.f32.mrf.mxu1 }
 0x1d3   : > { %v5069_v54 = vadd.f32 %v5068_v50, %v5067_v49  ;;  %v5990_v49 = vld [vmem:[#allocation2 + $0x28] sm:$0xff]   ;;  %v5991_v50 = vld [vmem:[#allocation2 + $0x60] sm:$0xff]  }
 0x1d4   : > { %v5070_v51 = vpop.f32.mrf.mxu1 }
 0x1d5   : > { %v6393_v61 = vadd.f32 %v5069_v54, %v4563_v59  ;;  %v5995_v54 = vld [vmem:[#allocation2 + $0x50] sm:$0xff]  }
 0x1d6   : > { %v5071_v52 = vpop.f32.mrf.mxu1 }
 0x1d7   : > { %v5072_v55 = vadd.f32 %v5071_v52, %v5070_v51  ;;  %v6410_v5 = vpack.c.bf16 %v6393_v61, %v6399_v1  ;;  %v5992_v51 = vld [vmem:[#allocation2 + $0x20] sm:$0xff]   ;;  %v5993_v52 = vld [vmem:[#allocation2 + $0x58] sm:$0xff]  }
 0x1d8   : > { %v5073_v53 = vpop.f32.mrf.mxu1 }
 0x1d9   : > { %v6395_v62 = vadd.f32 %v5072_v55, %v4563_v59  ;;  %v5996_v55 = vld [vmem:[#allocation2 + $0x10] sm:$0xff]  }
 0x1da   : > { %v5074_v56 = vpop.f32.mrf.mxu1 }
 0x1db   : > { %v5075_v58 = vadd.f32 %v5074_v56, %v5073_v53  ;;  %v5994_v53 = vld [vmem:[#allocation2 + $0x18] sm:$0xff]  }
 0x1dd   : > { %v6397_v63 = vadd.f32 %v5075_v58, %v4563_v59 }
 0x1df   : > { %v6403_v2 = vpack.c.bf16 %v6397_v63, %v6395_v62 }
 0x1e1   : > { %5716 = vmatprep.subr.bf16.mxu0 %v6403_v2 }
 0x1e2   : > { %5717 = vmatpush3.bf16.msra.mxu0 %v6403_v2 }
 0x1e3   : > { %5718 = vmatprep.subr.bf16.mxu0 %v6410_v5 }
 0x1e6   : > { %5719 = vmatpush3.bf16.msra.mxu0 %v6410_v5 }
 0x1e7   : > { %5720 = vmatprep.subr.bf16.mxu0 %v739_v9 }
 0x1ea   : > { %5721 = vmatpush3.bf16.msra.mxu0 %v739_v9 }
 0x1eb   : > { %5722 = vmatprep.subr.bf16.mxu0 %v738_v11 }
 0x1ee   : > { %5723 = vmatpush3.bf16.msra.mxu0 %v738_v11 }
 0x1ef   : > { %5084 = vmatprep.subr.bf16.mxu0 %v5969_v12 }
 0x1f1   : > { %5725 = vmatmul.mubr.msk.bf16.vlgmr.msra.gmra.mxu0 %vm489_vm0, %v6435_v15 }
 0x1f2   : > { %5728 = vmatprep.mubr.msk.bf16.mxu0 %vm489_vm0, %v6440_v16  ;;  %5085 = vmatpush3.bf16.msra.mxu0 %v5970_v13 }
 0x1f3   : > { %5086 = vmatprep.subr.bf16.mxu0 %v5971_v14 }
 0x1f6   : > { %5087 = vmatpush3.bf16.msra.mxu0 %v5972_v17 }
 0x1f7   : > { %5088 = vmatprep.subr.bf16.mxu0 %v5973_v18 }
 0x1f9   : > { %5729 = vmatmul.mubr.msk.bf16.gmra.mxu0 %vm489_vm0, %v6457_v21 }
 0x1fa   : > { %5089 = vmatpush3.bf16.msra.mxu0 %v5974_v19 }
 0x1fb   : > { %5090 = vmatprep.subr.bf16.mxu0 %v5975_v20  ;;  %v4584_v20 = vld [vmem:[%s7302_s5] ss:$0 sm:$0xff] }
 0x1fe   : > { %5091 = vmatpush3.bf16.msra.mxu0 %v5976_v22 }
 0x1ff   : > { %5092 = vmatprep.subr.bf16.mxu0 %v5977_v23 }
 0x202   : > { %5093 = vmatpush3.bf16.msra.mxu0 %v5978_v24 }
 0x203   : > { %5094 = vmatprep.subr.bf16.mxu0 %v5979_v25 }
 0x206   : > { %5095 = vmatpush3.bf16.msra.mxu0 %v5980_v26 }
 0x207   : > { %5096 = vmatprep.subr.bf16.mxu0 %v5981_v27 }
 0x20a   : > { %5097 = vmatpush3.bf16.msra.mxu0 %v5982_v28 }
 0x20b   : > { %5098 = vmatprep.subr.bf16.mxu0 %v5983_v29 }
 0x20e   : > { %5099 = vmatpush3.bf16.msra.mxu0 %v5984_v30 }
 0x20f   : > { %5132 = vmatprep.subr.bf16.mxu0 %v5985_v44 }
 0x2b1   : > { %v5726_v31 = vpop.f32.mrf.mxu0 }
 0x2b3   : > { %v809_v32 = vpop.f32.mrf.mxu0 }
 0x2b5   : > { %v5727_v33 = vpop.f32.mrf.mxu0 }
 0x2b6   : > { %v841_v37 = vpack.c.bf16 %v5727_v33, %v5726_v31 }
 0x2b7   : > { %v812_v34 = vpop.f32.mrf.mxu0 }
 0x2b8   : > { %v840_v35 = vpack.c.bf16 %v812_v34, %v809_v32 }
 0x2b9   : > { %v5730_v36 = vpop.f32.mrf.mxu0 }
 0x2ba   : > { %978 = vmatprep.mubr.bf16.mxu0 %v840_v35 }
 0x2bb   : > { %979 = vmatmul.mubr.bf16.vlgmr.msra.gmra.mxu0 %v738_v11  ;;  %v825_v39 = vpop.f32.mrf.mxu0 }
 0x2bc   : > { %986 = vmatprep.mubr.bf16.mxu0 %v841_v37  ;;  %5133 = vmatpush3.bf16.msra.mxu0 %v5986_v45 }
 0x2bd   : > { %v5731_v40 = vpop.f32.mrf.mxu0  ;;  %5134 = vmatprep.subr.bf16.mxu0 %v5987_v46 }
 0x2be   : > { %v843_v43 = vpack.c.bf16 %v5731_v40, %v5730_v36 }
 0x2bf   : > { %v828_v41 = vpop.f32.mrf.mxu0 }
 0x2c0   : > { %v842_v42 = vpack.c.bf16 %v828_v41, %v825_v39  ;;  %5135 = vmatpush3.bf16.msra.mxu0 %v5988_v47 }
 0x2c1   : > { %5136 = vmatprep.subr.bf16.mxu0 %v5989_v48 }
 0x2c3   : > { %987 = vmatmul.mubr.bf16.gmra.mxu0 %v739_v9 }
 0x2c4   : > { %994 = vmatprep.mubr.bf16.mxu0 %v842_v42  ;;  %5137 = vmatpush3.bf16.msra.mxu0 %v5990_v49  ;;  %v5997_v49 = vld [vmem:[#allocation2 + $0x48] sm:$0xff]  }
 0x2c5   : > { %5138 = vmatprep.subr.bf16.mxu0 %v5991_v50  ;;  %v5998_v50 = vld [vmem:[#allocation2 + $0x8] sm:$0xff]  }
 0x2c8   : > { %5139 = vmatpush3.bf16.msra.mxu0 %v5992_v51  ;;  %v5999_v51 = vld [vmem:[#allocation2 + $0x40] sm:$0xff]  }
 0x2c9   : > { %5140 = vmatprep.subr.bf16.mxu0 %v5993_v52  ;;  %v6000_v52 = vld [vmem:[#allocation2] sm:$0xff]  }
 0x2cb   : > { %995 = vmatmul.mubr.bf16.gmra.mxu0 %v6410_v5 }
 0x2cc   : > { %1002 = vmatprep.mubr.bf16.mxu0 %v843_v43  ;;  %5141 = vmatpush3.bf16.msra.mxu0 %v5994_v53 }
 0x2cd   : > { %5142 = vmatprep.subr.bf16.mxu0 %v5995_v54 }
 0x2d0   : > { %5143 = vmatpush3.bf16.msra.mxu0 %v5996_v55 }
 0x2d1   : > { %5144 = vmatprep.subr.bf16.mxu0 %v5997_v49 }
 0x2d3   : > { %1003 = vmatmul.mubr.bf16.gmra.mxu0 %v6403_v2 }
 0x2d4   : > { %5145 = vmatpush3.bf16.msra.mxu0 %v5998_v50 }
 0x2d5   : > { %5146 = vmatprep.subr.bf16.mxu0 %v5999_v51 }
 0x2d8   : > { %5147 = vmatpush3.bf16.msra.mxu0 %v6000_v52 }
 0x37b   : > { %v5100_v56 = vpop.f32.mrf.mxu0 }
 0x37d   : > { %v5101_v57 = vpop.f32.mrf.mxu0 }
 0x37e   : > { %v5102_v35 = vadd.f32 %v5101_v57, %v5100_v56 }
 0x37f   : > { %v5103_v58 = vpop.f32.mrf.mxu0 }
 0x380   : > { %v981_v43 = vadd.f32 %v5102_v35, %v4584_v20 }
 0x381   : > { %v5104_v59 = vpop.f32.mrf.mxu0 }
 0x382   : > { %v5105_v30 = vadd.f32 %v5104_v59, %v5103_v58  ;;  %v1011_v47 = vmax.f32 %v981_v43, 0.0 }
 0x383   : > { %v5106_v60 = vpop.f32.mrf.mxu0 }
 0x384   : > { %v984_v40 = vadd.f32 %v5105_v30, %v4584_v20 }
 0x385   : > { %v5107_v0 = vpop.f32.mrf.mxu0 }
 0x386   : > { %v5108_v27 = vadd.f32 %v5107_v0, %v5106_v60  ;;  %v1012_v45 = vmax.f32 %v984_v40, 0.0 }
 0x387   : > { %v5109_v2 = vpop.f32.mrf.mxu0 }
 0x388   : > { %v989_v36 = vadd.f32 %v5108_v27, %v4584_v20  ;;  %v1019_v48 = vpack.c.bf16 %v1012_v45, %v1011_v47 }
 0x389   : > { %v5110_v3 = vpop.f32.mrf.mxu0 }
 0x38a   : > { %v5111_v23 = vadd.f32 %v5110_v3, %v5109_v2  ;;  %v1013_v44 = vmax.f32 %v989_v36, 0.0 }
 0x38b   : > { %v5112_v5 = vpop.f32.mrf.mxu0 }
 0x38c   : > { %v992_v31 = vadd.f32 %v5111_v23, %v4584_v20 }
 0x38d   : > { %v5113_v6 = vpop.f32.mrf.mxu0 }
 0x38e   : > { %v5114_v19 = vadd.f32 %v5113_v6, %v5112_v5  ;;  %v1014_v41 = vmax.f32 %v992_v31, 0.0 }
 0x38f   : > { %v5115_v9 = vpop.f32.mrf.mxu0 }
 0x390   : > { %v997_v28 = vadd.f32 %v5114_v19, %v4584_v20  ;;  %v1020_v46 = vpack.c.bf16 %v1014_v41, %v1013_v44 }
 0x391   : > { %v5116_v11 = vpop.f32.mrf.mxu0 }
 0x392   : > { %v5117_v14 = vadd.f32 %v5116_v11, %v5115_v9  ;;  %v1015_v37 = vmax.f32 %v997_v28, 0.0 }
 0x393   : > { %v5118_v12 = vpop.f32.mrf.mxu0 }
 0x394   : > { %v1000_v24 = vadd.f32 %v5117_v14, %v4584_v20 }
 0x395   : > { %v5119_v13 = vpop.f32.mrf.mxu0 }
 0x396   : > { %v5120_v17 = vadd.f32 %v5119_v13, %v5118_v12  ;;  %v1016_v32 = vmax.f32 %v1000_v24, 0.0 }
 0x397   : > { %v5121_v18 = vpop.f32.mrf.mxu0 }
 0x398   : > { %v1005_v25 = vadd.f32 %v5120_v17, %v4584_v20  ;;  %v1021_v42 = vpack.c.bf16 %v1016_v32, %v1015_v37 }
 0x399   : > { %v5122_v22 = vpop.f32.mrf.mxu0 }
 0x39a   : > { %v5123_v26 = vadd.f32 %v5122_v22, %v5121_v18  ;;  %v1017_v33 = vmax.f32 %v1005_v25, 0.0 }
 0x39c   : > { %v1008_v29 = vadd.f32 %v5123_v26, %v4584_v20 }
 0x39e   : > { %v1018_v34 = vmax.f32 %v1008_v29, 0.0  ;;  %v4605_v29 = vld [vmem:[%s7304_s7] ss:$0 sm:$0xff] }
 0x3a0   : > { %v1022_v39 = vpack.c.bf16 %v1018_v34, %v1017_v33 }
 0x3a2   : > { %5732 = vmatprep.subr.bf16.mxu1 %v1022_v39 }
 0x3a3   : > { %5733 = vmatpush3.bf16.msra.mxu1 %v1022_v39 }
 0x3a4   : > { %5734 = vmatprep.subr.bf16.mxu1 %v1021_v42 }
 0x3a7   : > { %5735 = vmatpush3.bf16.msra.mxu1 %v1021_v42 }
 0x3a8   : > { %5736 = vmatprep.subr.bf16.mxu1 %v1020_v46 }
 0x3ab   : > { %5737 = vmatpush3.bf16.msra.mxu1 %v1020_v46 }
 0x3ac   : > { %5738 = vmatprep.subr.bf16.mxu1 %v1019_v48 }
 0x3af   : > { %5739 = vmatpush3.bf16.msra.mxu1 %v1019_v48 }
 0x3b2   : > { %5741 = vmatmul.mubr.msk.bf16.vlgmr.msra.gmra.mxu1 %vm489_vm0, %v6435_v15 }
 0x3b3   : > { %5744 = vmatprep.mubr.msk.bf16.mxu1 %vm489_vm0, %v6440_v16 }
 0x3ba   : > { %5745 = vmatmul.mubr.msk.bf16.gmra.mxu1 %vm489_vm0, %v6457_v21 }
 0x3bb   : > { %5756 = vmatprep.mubr.msk.bf16.mxu1 %vm489_vm0, %v6386_v38 }
 0x472   : > { %v5742_v53 = vpop.f32.mrf.mxu1 }
 0x474   : > { %v1090_v54 = vpop.f32.mrf.mxu1 }
 0x476   : > { %v5743_v55 = vpop.f32.mrf.mxu1 }
 0x477   : > { %v1122_v59 = vpack.c.bf16 %v5743_v55, %v5742_v53 }
 0x478   : > { %v1093_v56 = vpop.f32.mrf.mxu1 }
 0x479   : > { %v1121_v57 = vpack.c.bf16 %v1093_v56, %v1090_v54 }
 0x47a   : > { %v5746_v58 = vpop.f32.mrf.mxu1 }
 0x47b   : > { %1259 = vmatprep.mubr.bf16.mxu0 %v1121_v57 }
 0x47c   : > { %1260 = vmatmul.mubr.bf16.vlgmr.msra.gmra.mxu0 %v1019_v48  ;;  %v1106_v60 = vpop.f32.mrf.mxu1 }
 0x47d   : > { %1267 = vmatprep.mubr.bf16.mxu0 %v1122_v59  ;;  %v6002_v59 = vld [vmem:[%s7301_s4 + $0xb8] sm:$0xff]  }
 0x47e   : > { %v5747_v0 = vpop.f32.mrf.mxu1 }
 0x47f   : > { %v1124_v5 = vpack.c.bf16 %v5747_v0, %v5746_v58  ;;  %v6001_v58 = vld [vmem:[%s7301_s4 + $0xf8] sm:$0xff]   ;;  %v6004_v0 = vld [vmem:[%s7301_s4 + $0xb0] sm:$0xff]  }
 0x480   : > { %v1109_v2 = vpop.f32.mrf.mxu1 }
 0x481   : > { %v1123_v3 = vpack.c.bf16 %v1109_v2, %v1106_v60  ;;  %v6003_v60 = vld [vmem:[%s7301_s4 + $0xf0] sm:$0xff]   ;;  %v6005_v2 = vld [vmem:[%s7301_s4 + $0xe8] sm:$0xff]  }
 0x484   : > { %1268 = vmatmul.mubr.bf16.gmra.mxu0 %v1020_v46 }
 0x485   : > { %1275 = vmatprep.mubr.bf16.mxu0 %v1123_v3  ;;  %v6006_v3 = vld [vmem:[%s7301_s4 + $0xa8] sm:$0xff]  }
 0x48c   : > { %1276 = vmatmul.mubr.bf16.gmra.mxu0 %v1021_v42 }
 0x48d   : > { %1283 = vmatprep.mubr.bf16.mxu0 %v1124_v5  ;;  %v6007_v5 = vld [vmem:[%s7301_s4 + $0xe0] sm:$0xff]  }
 0x494   : > { %1284 = vmatmul.mubr.bf16.gmra.mxu0 %v1022_v39 }
 0x495   : > { %5772 = vmatprep.mubr.msk.bf16.mxu0 %vm489_vm0, %v6386_v38 }
 0x53c   : > { %v5148_v6 = vpop.f32.mrf.mxu0 }
 0x53e   : > { %v5149_v9 = vpop.f32.mrf.mxu0 }
 0x53f   : > { %v5150_v44 = vadd.f32 %v5149_v9, %v5148_v6  ;;  %v6008_v6 = vld [vmem:[%s7301_s4 + $0xa0] sm:$0xff]   ;;  %v6009_v9 = vld [vmem:[%s7301_s4 + $0xd8] sm:$0xff]  }
 0x540   : > { %v5151_v11 = vpop.f32.mrf.mxu0 }
 0x541   : > { %v1262_v51 = vadd.f32 %v5150_v44, %v4605_v29  ;;  %v6025_v44 = vld [vmem:[#allocation2 + $0xd8] sm:$0xff]  }
 0x542   : > { %v5152_v12 = vpop.f32.mrf.mxu0 }
 0x543   : > { %v5153_v39 = vadd.f32 %v5152_v12, %v5151_v11  ;;  %v6547_v54 = vadd.f32 %v1262_v51, %v6421_v10  ;;  %v6010_v11 = vld [vmem:[%s7301_s4 + $0x98] sm:$0xff]   ;;  %v6011_v12 = vld [vmem:[%s7301_s4 + $0xd0] sm:$0xff]  }
 0x544   : > { %v5154_v13 = vpop.f32.mrf.mxu0  ;;  %v6028_v51 = vld [vmem:[#allocation2 + $0x90] sm:$0xff]  }
 0x545   : > { %v1265_v48 = vadd.f32 %v5153_v39, %v4605_v29  ;;  %v1300_v57 = vmax.f32 %v6547_v54, 0.0  ;;  %v6022_v39 = vld [vmem:[#allocation2 + $0xa8] sm:$0xff]  }
 0x546   : > { %v5155_v14 = vpop.f32.mrf.mxu0 }
 0x547   : > { %v5156_v35 = vadd.f32 %v5155_v14, %v5154_v13  ;;  %v6012_v13 = vld [vmem:[%s7301_s4 + $0x90] sm:$0xff]   ;;  %v6013_v14 = vld [vmem:[%s7301_s4 + $0xc8] sm:$0xff]  }
 0x548   : > { %v5157_v17 = vpop.f32.mrf.mxu0 }
 0x549   : > { %v1270_v45 = vadd.f32 %v5156_v35, %v4605_v29  ;;  %v6019_v35 = vld [vmem:[#allocation2 + $0xf0] sm:$0xff]  }
 0x54a   : > { %v5158_v18 = vpop.f32.mrf.mxu0 }
 0x54b   : > { %v5159_v31 = vadd.f32 %v5158_v18, %v5157_v17  ;;  %v6525_v52 = vadd.f32 %v1270_v45, %v6413_v7  ;;  %v6014_v17 = vld [vmem:[%s7301_s4 + $0x88] sm:$0xff]   ;;  %v6015_v18 = vld [vmem:[%s7301_s4 + $0xc0] sm:$0xff]   ;;  %v6026_v45 = vld [vmem:[#allocation2 + $0x98] sm:$0xff]  }
 0x54c   : > { %v5160_v19 = vpop.f32.mrf.mxu0 }
 0x54d   : > { %v1273_v40 = vadd.f32 %v5159_v31, %v4605_v29  ;;  %v1302_v55 = vmax.f32 %v6525_v52, 0.0 }
 0x54e   : > { %v5161_v20 = vpop.f32.mrf.mxu0 }
 0x54f   : > { %v5162_v27 = vadd.f32 %v5161_v20, %v5160_v19  ;;  %v6519_v49 = vadd.f32 %v1273_v40, %v6405_v4  ;;  %v6535_v4 = vadd.f32 %v1265_v48, %v6416_v8  ;;  %v6016_v19 = vld [vmem:[%s7301_s4 + $0x80] sm:$0xff]   ;;  %v6027_v48 = vld [vmem:[#allocation2 + $0xd0] sm:$0xff]  }
 0x550   : > { %v5163_v22 = vpop.f32.mrf.mxu0  ;;  %v6023_v40 = vld [vmem:[#allocation2 + $0xe0] sm:$0xff]  }
 0x551   : > { %v1278_v36 = vadd.f32 %v5162_v27, %v4605_v29  ;;  %v1303_v7 = vmax.f32 %v6519_v49, 0.0  ;;  %v1301_v56 = vmax.f32 %v6535_v4, 0.0 }
 0x552   : > { %v5164_v23 = vpop.f32.mrf.mxu0 }
 0x553   : > { %v5165_v25 = vadd.f32 %v5164_v23, %v5163_v22  ;;  %v6513_v46 = vadd.f32 %v1278_v36, %v6399_v1  ;;  %v1309_v8 = vpack.c.bf16 %v1303_v7, %v1302_v55  ;;  %v1308_v10 = vpack.c.bf16 %v1301_v56, %v1300_v57  ;;  %v6020_v36 = vld [vmem:[#allocation2 + $0xb0] sm:$0xff]  }
 0x554   : > { %v5166_v24 = vpop.f32.mrf.mxu0 }
 0x555   : > { %v1281_v32 = vadd.f32 %v5165_v25, %v4605_v29  ;;  %v1304_v1 = vmax.f32 %v6513_v46, 0.0 }
 0x556   : > { %v5167_v26 = vpop.f32.mrf.mxu0 }
 0x557   : > { %v5168_v28 = vadd.f32 %v5167_v26, %v5166_v24  ;;  %v6507_v41 = vadd.f32 %v1281_v32, %v6393_v61 }
 0x558   : > { %v5169_v30 = vpop.f32.mrf.mxu0 }
 0x559   : > { %v1286_v33 = vadd.f32 %v5168_v28, %v4605_v29 }
 0x55a   : > { %v5170_v34 = vpop.f32.mrf.mxu0 }
 0x55b   : > { %v5171_v37 = vadd.f32 %v5170_v34, %v5169_v30  ;;  %v6510_v42 = vadd.f32 %v1286_v33, %v6395_v62  ;;  %v1305_v62 = vmax.f32 %v6507_v41, 0.0  ;;  %v6017_v33 = vld [vmem:[#allocation2 + $0xf8] sm:$0xff]  }
 0x55c   : > { %v6018_v34 = vld [vmem:[#allocation2 + $0xb8] sm:$0xff]  }
 0x55d   : > { %v1289_v43 = vadd.f32 %v5171_v37, %v4605_v29  ;;  %v1306_v50 = vmax.f32 %v6510_v42, 0.0  ;;  %v6542_v53 = vpack.c.bf16 %v1305_v62, %v1304_v1  ;;  %v6021_v37 = vld [vmem:[#allocation2 + $0xe8] sm:$0xff]  }
 0x55f   : > { %v6516_v47 = vadd.f32 %v1289_v43, %v6397_v63  ;;  %v6024_v43 = vld [vmem:[#allocation2 + $0xa0] sm:$0xff]  }
 0x561   : > { %v1307_v61 = vmax.f32 %v6516_v47, 0.0 }
 0x563   : > { %v6532_v63 = vpack.c.bf16 %v1307_v61, %v1306_v50 }
 0x565   : > { %5748 = vmatprep.subr.bf16.mxu1 %v6532_v63 }
 0x566   : > { %5749 = vmatpush3.bf16.msra.mxu1 %v6532_v63 }
 0x567   : > { %5750 = vmatprep.subr.bf16.mxu1 %v6542_v53 }
 0x56a   : > { %5751 = vmatpush3.bf16.msra.mxu1 %v6542_v53 }
 0x56b   : > { %5752 = vmatprep.subr.bf16.mxu1 %v1309_v8 }
 0x56e   : > { %5753 = vmatpush3.bf16.msra.mxu1 %v1309_v8 }
 0x56f   : > { %5754 = vmatprep.subr.bf16.mxu1 %v1308_v10 }
 0x572   : > { %5755 = vmatpush3.bf16.msra.mxu1 %v1308_v10 }
 0x573   : > { %5180 = vmatprep.subr.bf16.mxu1 %v6001_v58 }
 0x575   : > { %5757 = vmatmul.mubr.msk.bf16.vlgmr.msra.gmra.mxu1 %vm489_vm0, %v6435_v15 }
 0x576   : > { %5760 = vmatprep.mubr.msk.bf16.mxu1 %vm489_vm0, %v6440_v16  ;;  %5181 = vmatpush3.bf16.msra.mxu1 %v6002_v59 }
 0x577   : > { %5182 = vmatprep.subr.bf16.mxu1 %v6003_v60 }
 0x57a   : > { %5183 = vmatpush3.bf16.msra.mxu1 %v6004_v0 }
 0x57b   : > { %5184 = vmatprep.subr.bf16.mxu1 %v6005_v2 }
 0x57d   : > { %5761 = vmatmul.mubr.msk.bf16.gmra.mxu1 %vm489_vm0, %v6457_v21 }
 0x57e   : > { %5185 = vmatpush3.bf16.msra.mxu1 %v6006_v3 }
 0x57f   : > { %5186 = vmatprep.subr.bf16.mxu1 %v6007_v5 }
 0x582   : > { %5187 = vmatpush3.bf16.msra.mxu1 %v6008_v6 }
 0x583   : > { %5188 = vmatprep.subr.bf16.mxu1 %v6009_v9 }
 0x586   : > { %5189 = vmatpush3.bf16.msra.mxu1 %v6010_v11 }
 0x587   : > { %5190 = vmatprep.subr.bf16.mxu1 %v6011_v12 }
 0x58a   : > { %5191 = vmatpush3.bf16.msra.mxu1 %v6012_v13 }
 0x58b   : > { %5192 = vmatprep.subr.bf16.mxu1 %v6013_v14 }
 0x58e   : > { %5193 = vmatpush3.bf16.msra.mxu1 %v6014_v17 }
 0x58f   : > { %5194 = vmatprep.subr.bf16.mxu1 %v6015_v18  ;;  %v4659_v18 = vld [vmem:[%s7302_s5 + $0x1] ss:$0 sm:$0xff] }
 0x592   : > { %5195 = vmatpush3.bf16.msra.mxu1 %v6016_v19 }
 0x593   : > { %5228 = vmatprep.subr.bf16.mxu1 %v6017_v33 }
 0x635   : > { %v5758_v20 = vpop.f32.mrf.mxu1 }
 0x637   : > { %v1381_v22 = vpop.f32.mrf.mxu1 }
 0x639   : > { %v5759_v23 = vpop.f32.mrf.mxu1 }
 0x63a   : > { %v1413_v27 = vpack.c.bf16 %v5759_v23, %v5758_v20 }
 0x63b   : > { %v1384_v24 = vpop.f32.mrf.mxu1 }
 0x63c   : > { %v1412_v25 = vpack.c.bf16 %v1384_v24, %v1381_v22 }
 0x63d   : > { %v5762_v26 = vpop.f32.mrf.mxu1 }
 0x63e   : > { %1550 = vmatprep.mubr.bf16.mxu1 %v1412_v25 }
 0x63f   : > { %1551 = vmatmul.mubr.bf16.vlgmr.msra.gmra.mxu1 %v1308_v10  ;;  %v1397_v28 = vpop.f32.mrf.mxu1 }
 0x640   : > { %1558 = vmatprep.mubr.bf16.mxu1 %v1413_v27  ;;  %5229 = vmatpush3.bf16.msra.mxu1 %v6018_v34 }
 0x641   : > { %v5763_v29 = vpop.f32.mrf.mxu1  ;;  %5230 = vmatprep.subr.bf16.mxu1 %v6019_v35 }
 0x642   : > { %v1415_v32 = vpack.c.bf16 %v5763_v29, %v5762_v26 }
 0x643   : > { %v1400_v30 = vpop.f32.mrf.mxu1 }
 0x644   : > { %v1414_v31 = vpack.c.bf16 %v1400_v30, %v1397_v28  ;;  %5231 = vmatpush3.bf16.msra.mxu1 %v6020_v36 }
 0x645   : > { %5232 = vmatprep.subr.bf16.mxu1 %v6021_v37 }
 0x647   : > { %1559 = vmatmul.mubr.bf16.gmra.mxu1 %v1309_v8 }
 0x648   : > { %1566 = vmatprep.mubr.bf16.mxu1 %v1414_v31  ;;  %5233 = vmatpush3.bf16.msra.mxu1 %v6022_v39 }
 0x649   : > { %5234 = vmatprep.subr.bf16.mxu1 %v6023_v40 }
 0x64c   : > { %5235 = vmatpush3.bf16.msra.mxu1 %v6024_v43 }
 0x64d   : > { %5236 = vmatprep.subr.bf16.mxu1 %v6025_v44 }
 0x64f   : > { %1567 = vmatmul.mubr.bf16.gmra.mxu1 %v6542_v53 }
 0x650   : > { %1574 = vmatprep.mubr.bf16.mxu1 %v1415_v32  ;;  %5237 = vmatpush3.bf16.msra.mxu1 %v6026_v45 }
 0x651   : > { %5238 = vmatprep.subr.bf16.mxu1 %v6027_v48 }
 0x654   : > { %5239 = vmatpush3.bf16.msra.mxu1 %v6028_v51 }
 0x657   : > { %1575 = vmatmul.mubr.bf16.gmra.mxu1 %v6532_v63 }
 0x6ff   : > { %v5196_v63 = vpop.f32.mrf.mxu1 }
 0x701   : > { %v5197_v53 = vpop.f32.mrf.mxu1 }
 0x702   : > { %v5198_v33 = vadd.f32 %v5197_v53, %v5196_v63  ;;  %v6029_v63 = vld [vmem:[#allocation2 + $0xc8] sm:$0xff]  }
 0x703   : > { %v5199_v8 = vpop.f32.mrf.mxu1  ;;  %v6030_v53 = vld [vmem:[#allocation2 + $0x88] sm:$0xff]   ;;  %5240 = vmatprep.subr.bf16.mxu1 %v6029_v63 }
 0x704   : > { %v1553_v43 = vadd.f32 %v5198_v33, %v4659_v18  ;;  %5241 = vmatpush3.bf16.msra.mxu1 %v6030_v53 }
 0x705   : > { %v5200_v10 = vpop.f32.mrf.mxu1 }
 0x706   : > { %v5201_v28 = vadd.f32 %v5200_v10, %v5199_v8  ;;  %v1583_v51 = vmax.f32 %v1553_v43, 0.0  ;;  %v6031_v10 = vld [vmem:[#allocation2 + $0xc0] sm:$0xff]  }
 0x707   : > { %v5202_v58 = vpop.f32.mrf.mxu1  ;;  %5242 = vmatprep.subr.bf16.mxu1 %v6031_v10 }
 0x708   : > { %v1556_v37 = vadd.f32 %v5201_v28, %v4659_v18 }
 0x709   : > { %v5203_v59 = vpop.f32.mrf.mxu1 }
 0x70a   : > { %v5204_v25 = vadd.f32 %v5203_v59, %v5202_v58  ;;  %v1584_v45 = vmax.f32 %v1556_v37, 0.0  ;;  %v6032_v58 = vld [vmem:[#allocation2 + $0x80] sm:$0xff]  }
 0x70b   : > { %v5205_v60 = vpop.f32.mrf.mxu1  ;;  %5243 = vmatpush3.bf16.msra.mxu1 %v6032_v58 }
 0x70c   : > { %v1561_v34 = vadd.f32 %v5204_v25, %v4659_v18  ;;  %v1591_v8 = vpack.c.bf16 %v1584_v45, %v1583_v51 }
 0x70d   : > { %v5206_v0 = vpop.f32.mrf.mxu1 }
 0x70e   : > { %v5207_v20 = vadd.f32 %v5206_v0, %v5205_v60  ;;  %v1585_v44 = vmax.f32 %v1561_v34, 0.0 }
 0x70f   : > { %v5208_v2 = vpop.f32.mrf.mxu1 }
 0x710   : > { %v1564_v29 = vadd.f32 %v5207_v20, %v4659_v18 }
 0x711   : > { %v5209_v3 = vpop.f32.mrf.mxu1 }
 0x712   : > { %v5210_v17 = vadd.f32 %v5209_v3, %v5208_v2  ;;  %v1586_v39 = vmax.f32 %v1564_v29, 0.0 }
 0x713   : > { %v5211_v5 = vpop.f32.mrf.mxu1 }
 0x714   : > { %v1569_v26 = vadd.f32 %v5210_v17, %v4659_v18  ;;  %v1592_v48 = vpack.c.bf16 %v1586_v39, %v1585_v44 }
 0x715   : > { %v5212_v6 = vpop.f32.mrf.mxu1 }
 0x716   : > { %v5213_v12 = vadd.f32 %v5212_v6, %v5211_v5  ;;  %v1587_v35 = vmax.f32 %v1569_v26, 0.0 }
 0x717   : > { %v5214_v9 = vpop.f32.mrf.mxu1 }
 0x718   : > { %v1572_v22 = vadd.f32 %v5213_v12, %v4659_v18 }
 0x719   : > { %v5215_v11 = vpop.f32.mrf.mxu1 }
 0x71a   : > { %v5216_v13 = vadd.f32 %v5215_v11, %v5214_v9  ;;  %v1588_v30 = vmax.f32 %v1572_v22, 0.0 }
 0x71b   : > { %v5217_v14 = vpop.f32.mrf.mxu1 }
 0x71c   : > { %v1577_v23 = vadd.f32 %v5216_v13, %v4659_v18  ;;  %v1593_v40 = vpack.c.bf16 %v1588_v30, %v1587_v35 }
 0x71d   : > { %v5218_v19 = vpop.f32.mrf.mxu1 }
 0x71e   : > { %v5219_v24 = vadd.f32 %v5218_v19, %v5217_v14  ;;  %v1589_v31 = vmax.f32 %v1577_v23, 0.0 }
 0x720   : > { %v1580_v27 = vadd.f32 %v5219_v24, %v4659_v18 }
 0x722   : > { %v1590_v32 = vmax.f32 %v1580_v27, 0.0 }
 0x724   : > { %v1594_v36 = vpack.c.bf16 %v1590_v32, %v1589_v31 }
 0x726   : > { %5764 = vmatprep.subr.bf16.mxu0 %v1594_v36 }
 0x727   : > { %5765 = vmatpush3.bf16.msra.mxu0 %v1594_v36 }
 0x728   : > { %5766 = vmatprep.subr.bf16.mxu0 %v1593_v40 }
 0x72b   : > { %5767 = vmatpush3.bf16.msra.mxu0 %v1593_v40 }
 0x72c   : > { %5768 = vmatprep.subr.bf16.mxu0 %v1592_v48 }
 0x72f   : > { %5769 = vmatpush3.bf16.msra.mxu0 %v1592_v48 }
 0x730   : > { %5770 = vmatprep.subr.bf16.mxu0 %v1591_v8 }
 0x733   : > { %5771 = vmatpush3.bf16.msra.mxu0 %v1591_v8 }
 0x736   : > { %5773 = vmatmul.mubr.msk.bf16.vlgmr.msra.gmra.mxu0 %vm489_vm0, %v6435_v15 }
 0x737   : > { %5776 = vmatprep.mubr.msk.bf16.mxu0 %vm489_vm0, %v6440_v16 }
 0x73e   : > { %5777 = vmatmul.mubr.msk.bf16.gmra.mxu0 %vm489_vm0, %v6457_v21 }
 0x73f   : > { %5788 = vmatprep.mubr.msk.bf16.mxu0 %vm489_vm0, %v6386_v38 }
 0x7f6   : > { %v5774_v59 = vpop.f32.mrf.mxu0 }
 0x7f8   : > { %v1664_v60 = vpop.f32.mrf.mxu0 }
 0x7fa   : > { %v5775_v0 = vpop.f32.mrf.mxu0 }
 0x7fb   : > { %v1696_v6 = vpack.c.bf16 %v5775_v0, %v5774_v59 }
 0x7fc   : > { %v1667_v2 = vpop.f32.mrf.mxu0 }
 0x7fd   : > { %v1695_v3 = vpack.c.bf16 %v1667_v2, %v1664_v60 }
 0x7fe   : > { %v5778_v5 = vpop.f32.mrf.mxu0 }
 0x7ff   : > { %1833 = vmatprep.mubr.bf16.mxu1 %v1695_v3 }
 0x800   : > { %1834 = vmatmul.mubr.bf16.vlgmr.msra.gmra.mxu1 %v1591_v8  ;;  %v1680_v9 = vpop.f32.mrf.mxu0 }
 0x801   : > { %1841 = vmatprep.mubr.bf16.mxu1 %v1696_v6  ;;  %v6035_v6 = vld [vmem:[%s7301_s4 + $0x170] sm:$0xff]  }
 0x802   : > { %v5779_v11 = vpop.f32.mrf.mxu0 }
 0x803   : > { %v1698_v14 = vpack.c.bf16 %v5779_v11, %v5778_v5  ;;  %v6034_v5 = vld [vmem:[%s7301_s4 + $0x138] sm:$0xff]   ;;  %v6037_v11 = vld [vmem:[%s7301_s4 + $0x168] sm:$0xff]  }
 0x804   : > { %v1683_v12 = vpop.f32.mrf.mxu0 }
 0x805   : > { %v1697_v13 = vpack.c.bf16 %v1683_v12, %v1680_v9  ;;  %v6036_v9 = vld [vmem:[%s7301_s4 + $0x130] sm:$0xff]   ;;  %v6038_v12 = vld [vmem:[%s7301_s4 + $0x128] sm:$0xff]  }
 0x808   : > { %1842 = vmatmul.mubr.bf16.gmra.mxu1 %v1592_v48 }
 0x809   : > { %1849 = vmatprep.mubr.bf16.mxu1 %v1697_v13  ;;  %v6041_v13 = vld [vmem:[%s7301_s4 + $0x158] sm:$0xff]  }
 0x810   : > { %1850 = vmatmul.mubr.bf16.gmra.mxu1 %v1593_v40 }
 0x811   : > { %1857 = vmatprep.mubr.bf16.mxu1 %v1698_v14  ;;  %v6042_v14 = vld [vmem:[%s7301_s4 + $0x118] sm:$0xff]  }
 0x818   : > { %1858 = vmatmul.mubr.bf16.gmra.mxu1 %v1594_v36 }
 0x819   : > { %5804 = vmatprep.mubr.msk.bf16.mxu1 %vm489_vm0, %v6386_v38  ;;  %v4681_v38 = vld [vmem:[%s7304_s7 + $0x1] ss:$0 sm:$0xff] }
 0x8c0   : > { %v5244_v17 = vpop.f32.mrf.mxu1 }
 0x8c2   : > { %v5245_v18 = vpop.f32.mrf.mxu1 }
 0x8c3   : > { %v5246_v10 = vadd.f32 %v5245_v18, %v5244_v17  ;;  %v6044_v17 = vld [vmem:[%s7301_s4 + $0x110] sm:$0xff]   ;;  %v6045_v18 = vld [vmem:[%s7301_s4 + $0x148] sm:$0xff]  }
 0x8c4   : > { %v5247_v19 = vpop.f32.mrf.mxu1 }
 0x8c5   : > { %v1836_v2 = vadd.f32 %v5246_v10, %v4681_v38 }
 0x8c6   : > { %v5248_v20 = vpop.f32.mrf.mxu1 }
 0x8c7   : > { %v5249_v48 = vadd.f32 %v5248_v20, %v5247_v19  ;;  %v6046_v19 = vld [vmem:[%s7301_s4 + $0x108] sm:$0xff]   ;;  %v6047_v20 = vld [vmem:[%s7301_s4 + $0x140] sm:$0xff]  }
 0x8c8   : > { %v5250_v22 = vpop.f32.mrf.mxu1 }
 0x8c9   : > { %v1839_v0 = vadd.f32 %v5249_v48, %v4681_v38  ;;  %v6058_v48 = vld [vmem:[#allocation2 + $0x118] sm:$0xff]  }
 0x8ca   : > { %v5251_v23 = vpop.f32.mrf.mxu1 }
 0x8cb   : > { %v5252_v43 = vadd.f32 %v5251_v23, %v5250_v22  ;;  %v6048_v22 = vld [vmem:[%s7301_s4 + $0x100] sm:$0xff]  }
 0x8cc   : > { %v5253_v24 = vpop.f32.mrf.mxu1 }
 0x8cd   : > { %v1844_v58 = vadd.f32 %v5252_v43, %v4681_v38  ;;  %v6055_v43 = vld [vmem:[#allocation2 + $0x160] sm:$0xff]  }
 0x8ce   : > { %v5254_v25 = vpop.f32.mrf.mxu1 }
 0x8cf   : > { %v5255_v36 = vadd.f32 %v5254_v25, %v5253_v24  ;;  %v6659_v46 = vadd.f32 %v1844_v58, %v1302_v55 }
 0x8d0   : > { %v5256_v26 = vpop.f32.mrf.mxu1 }
 0x8d1   : > { %v1847_v51 = vadd.f32 %v5255_v36, %v4681_v38  ;;  %v1876_v4 = vmax.f32 %v6659_v46, 0.0  ;;  %v6051_v36 = vld [vmem:[#allocation2 + $0x170] sm:$0xff]  }
 0x8d2   : > { %v5257_v27 = vpop.f32.mrf.mxu1 }
 0x8d3   : > { %v5258_v33 = vadd.f32 %v5257_v27, %v5256_v26  ;;  %v6652_v41 = vadd.f32 %v1847_v51, %v1303_v7  ;;  %v6683_v7 = vadd.f32 %v1836_v2, %v1300_v57  ;;  %v6033_v57 = vld [vmem:[%s7301_s4 + $0x178] sm:$0xff]   ;;  %v6059_v51 = vld [vmem:[#allocation2 + $0x150] sm:$0xff]  }
 0x8d4   : > { %v5259_v28 = vpop.f32.mrf.mxu1 }
 0x8d5   : > { %v1852_v44 = vadd.f32 %v5258_v33, %v4681_v38  ;;  %v1874_v3 = vmax.f32 %v6683_v7, 0.0 }
 0x8d6   : > { %v5260_v29 = vpop.f32.mrf.mxu1 }
 0x8d7   : > { %v5261_v31 = vadd.f32 %v5260_v29, %v5259_v28  ;;  %v6644_v59 = vadd.f32 %v1852_v44, %v1304_v1  ;;  %v1877_v1 = vmax.f32 %v6652_v41, 0.0  ;;  %v6056_v44 = vld [vmem:[#allocation2 + $0x120] sm:$0xff]  }
 0x8d8   : > { %v5262_v30 = vpop.f32.mrf.mxu1 }
 0x8d9   : > { %v1855_v37 = vadd.f32 %v5261_v31, %v4681_v38  ;;  %v1878_v47 = vmax.f32 %v6644_v59, 0.0 }
 0x8da   : > { %v5263_v32 = vpop.f32.mrf.mxu1 }
 0x8db   : > { %v5264_v34 = vadd.f32 %v5263_v32, %v5262_v30  ;;  %v6636_v8 = vadd.f32 %v1855_v37, %v1305_v62  ;;  %v6052_v37 = vld [vmem:[#allocation2 + $0x130] sm:$0xff]  }
 0x8dc   : > { %v5265_v35 = vpop.f32.mrf.mxu1 }
 0x8dd   : > { %v1860_v39 = vadd.f32 %v5264_v34, %v4681_v38  ;;  %v1879_v42 = vmax.f32 %v6636_v8, 0.0 }
 0x8de   : > { %v5266_v40 = vpop.f32.mrf.mxu1 }
 0x8df   : > { %v5267_v45 = vadd.f32 %v5266_v40, %v5265_v35  ;;  %v6640_v63 = vadd.f32 %v1860_v39, %v1306_v50  ;;  %v6678_v52 = vpack.c.bf16 %v1879_v42, %v1878_v47  ;;  %v6050_v35 = vld [vmem:[#allocation2 + $0x138] sm:$0xff]   ;;  %v6053_v39 = vld [vmem:[#allocation2 + $0x168] sm:$0xff]  }
 0x8e0   : > { %v6054_v40 = vld [vmem:[#allocation2 + $0x128] sm:$0xff]  }
 0x8e1   : > { %v1863_v53 = vadd.f32 %v5267_v45, %v4681_v38  ;;  %v1880_v50 = vmax.f32 %v6640_v63, 0.0  ;;  %v6049_v38 = vld [vmem:[#allocation2 + $0x178] sm:$0xff]  }
 0x8e2   : > { %v6057_v45 = vld [vmem:[#allocation2 + $0x158] sm:$0xff]  }
 0x8e3   : > { %v6648_v60 = vadd.f32 %v1863_v53, %v1307_v61  ;;  %v6670_v61 = vadd.f32 %v1839_v0, %v1301_v56  ;;  %v1883_v56 = vpack.c.bf16 %v1877_v1, %v1876_v4  ;;  %v6060_v53 = vld [vmem:[#allocation2 + $0x110] sm:$0xff]  }
 0x8e5   : > { %v1881_v62 = vmax.f32 %v6648_v60, 0.0  ;;  %v1875_v55 = vmax.f32 %v6670_v61, 0.0 }
 0x8e7   : > { %v6666_v49 = vpack.c.bf16 %v1881_v62, %v1880_v50  ;;  %v1882_v54 = vpack.c.bf16 %v1875_v55, %v1874_v3 }
 0x8e9   : > { %5780 = vmatprep.subr.bf16.mxu0 %v6666_v49 }
 0x8ea   : > { %5781 = vmatpush3.bf16.msra.mxu0 %v6666_v49 }
 0x8eb   : > { %5782 = vmatprep.subr.bf16.mxu0 %v6678_v52 }
 0x8ee   : > { %5783 = vmatpush3.bf16.msra.mxu0 %v6678_v52 }
 0x8ef   : > { %5784 = vmatprep.subr.bf16.mxu0 %v1883_v56 }
 0x8f2   : > { %5785 = vmatpush3.bf16.msra.mxu0 %v1883_v56 }
 0x8f3   : > { %5786 = vmatprep.subr.bf16.mxu0 %v1882_v54 }
 0x8f6   : > { %5787 = vmatpush3.bf16.msra.mxu0 %v1882_v54 }
 0x8f7   : > { %5276 = vmatprep.subr.bf16.mxu0 %v6033_v57 }
 0x8f9   : > { %5789 = vmatmul.mubr.msk.bf16.vlgmr.msra.gmra.mxu0 %vm489_vm0, %v6435_v15  ;;  %v6039_v15 = vld [vmem:[%s7301_s4 + $0x160] sm:$0xff]  }
 0x8fa   : > { %5792 = vmatprep.mubr.msk.bf16.mxu0 %vm489_vm0, %v6440_v16  ;;  %5277 = vmatpush3.bf16.msra.mxu0 %v6034_v5  ;;  %v6040_v16 = vld [vmem:[%s7301_s4 + $0x120] sm:$0xff]  }
 0x8fb   : > { %5278 = vmatprep.subr.bf16.mxu0 %v6035_v6 }
 0x8fe   : > { %5279 = vmatpush3.bf16.msra.mxu0 %v6036_v9 }
 0x8ff   : > { %5280 = vmatprep.subr.bf16.mxu0 %v6037_v11 }
 0x901   : > { %5793 = vmatmul.mubr.msk.bf16.gmra.mxu0 %vm489_vm0, %v6457_v21  ;;  %v6043_v21 = vld [vmem:[%s7301_s4 + $0x150] sm:$0xff]  }
 0x902   : > { %5281 = vmatpush3.bf16.msra.mxu0 %v6038_v12 }
 0x903   : > { %5282 = vmatprep.subr.bf16.mxu0 %v6039_v15 }
 0x906   : > { %5283 = vmatpush3.bf16.msra.mxu0 %v6040_v16 }
 0x907   : > { %5284 = vmatprep.subr.bf16.mxu0 %v6041_v13 }
 0x90a   : > { %5285 = vmatpush3.bf16.msra.mxu0 %v6042_v14 }
 0x90b   : > { %5286 = vmatprep.subr.bf16.mxu0 %v6043_v21  ;;  %v4735_v21 = vld [vmem:[%s7302_s5 + $0x2] ss:$0 sm:$0xff] }
 0x90e   : > { %5287 = vmatpush3.bf16.msra.mxu0 %v6044_v17 }
 0x90f   : > { %5288 = vmatprep.subr.bf16.mxu0 %v6045_v18 }
 0x912   : > { %5289 = vmatpush3.bf16.msra.mxu0 %v6046_v19 }
 0x913   : > { %5290 = vmatprep.subr.bf16.mxu0 %v6047_v20 }
 0x916   : > { %5291 = vmatpush3.bf16.msra.mxu0 %v6048_v22 }
 0x917   : > { %5324 = vmatprep.subr.bf16.mxu0 %v6049_v38 }
 0x9b9   : > { %v5790_v23 = vpop.f32.mrf.mxu0 }
 0x9bb   : > { %v1955_v24 = vpop.f32.mrf.mxu0 }
 0x9bd   : > { %v5791_v25 = vpop.f32.mrf.mxu0 }
 0x9be   : > { %v1987_v29 = vpack.c.bf16 %v5791_v25, %v5790_v23 }
 0x9bf   : > { %v1958_v26 = vpop.f32.mrf.mxu0 }
 0x9c0   : > { %v1986_v27 = vpack.c.bf16 %v1958_v26, %v1955_v24 }
 0x9c1   : > { %v5794_v28 = vpop.f32.mrf.mxu0 }
 0x9c2   : > { %2124 = vmatprep.mubr.bf16.mxu0 %v1986_v27 }
 0x9c3   : > { %2125 = vmatmul.mubr.bf16.vlgmr.msra.gmra.mxu0 %v1882_v54  ;;  %v1971_v30 = vpop.f32.mrf.mxu0 }
 0x9c4   : > { %2132 = vmatprep.mubr.bf16.mxu0 %v1987_v29  ;;  %5325 = vmatpush3.bf16.msra.mxu0 %v6050_v35 }
 0x9c5   : > { %v5795_v31 = vpop.f32.mrf.mxu0  ;;  %5326 = vmatprep.subr.bf16.mxu0 %v6051_v36 }
 0x9c6   : > { %v1989_v34 = vpack.c.bf16 %v5795_v31, %v5794_v28 }
 0x9c7   : > { %v1974_v32 = vpop.f32.mrf.mxu0 }
 0x9c8   : > { %v1988_v33 = vpack.c.bf16 %v1974_v32, %v1971_v30  ;;  %5327 = vmatpush3.bf16.msra.mxu0 %v6052_v37 }
 0x9c9   : > { %5328 = vmatprep.subr.bf16.mxu0 %v6053_v39 }
 0x9cb   : > { %2133 = vmatmul.mubr.bf16.gmra.mxu0 %v1883_v56 }
 0x9cc   : > { %2140 = vmatprep.mubr.bf16.mxu0 %v1988_v33  ;;  %5329 = vmatpush3.bf16.msra.mxu0 %v6054_v40 }
 0x9cd   : > { %5330 = vmatprep.subr.bf16.mxu0 %v6055_v43 }
 0x9d0   : > { %5331 = vmatpush3.bf16.msra.mxu0 %v6056_v44 }
 0x9d1   : > { %5332 = vmatprep.subr.bf16.mxu0 %v6057_v45 }
 0x9d3   : > { %2141 = vmatmul.mubr.bf16.gmra.mxu0 %v6678_v52 }
 0x9d4   : > { %2148 = vmatprep.mubr.bf16.mxu0 %v1989_v34  ;;  %5333 = vmatpush3.bf16.msra.mxu0 %v6058_v48  ;;  %v6758_v48 = vld [vmem:[%s6315_s26 + $0x8] sm:$0xff]  }
 0x9d5   : > { %5334 = vmatprep.subr.bf16.mxu0 %v6059_v51  ;;  %v6763_v51 = vld [vmem:[%s6315_s26 + $0x10] sm:$0xff]  }
 0x9d8   : > { %5335 = vmatpush3.bf16.msra.mxu0 %v6060_v53  ;;  %v6768_v53 = vld [vmem:[%s6315_s26 + $0x18] sm:$0xff]  }
 0x9db   : > { %2149 = vmatmul.mubr.bf16.gmra.mxu0 %v6666_v49 }
 0xa83   : > { %v5292_v10 = vpop.f32.mrf.mxu0 }
 0xa85   : > { %v5293_v58 = vpop.f32.mrf.mxu0 }
 0xa86   : > { %v5294_v31 = vadd.f32 %v5293_v58, %v5292_v10  ;;  %v6773_v10 = vld [vmem:[%s6315_s26] sm:$0xff]   ;;  %v6061_v58 = vld [vmem:[#allocation2 + $0x148] sm:$0xff]  }
 0xa87   : > { %v5295_v0 = vpop.f32.mrf.mxu0  ;;  %5336 = vmatprep.subr.bf16.mxu0 %v6061_v58 }
 0xa88   : > { %v2127_v37 = vadd.f32 %v5294_v31, %v4735_v21 }
 0xa89   : > { %v5296_v2 = vpop.f32.mrf.mxu0 }
 0xa8a   : > { %v5297_v26 = vadd.f32 %v5296_v2, %v5295_v0  ;;  %v2157_v44 = vmax.f32 %v2127_v37, 0.0  ;;  %v6062_v0 = vld [vmem:[#allocation2 + $0x108] sm:$0xff]   ;;  %v6063_v2 = vld [vmem:[#allocation2 + $0x140] sm:$0xff]  }
 0xa8b   : > { %v5298_v49 = vpop.f32.mrf.mxu0  ;;  %5337 = vmatpush3.bf16.msra.mxu0 %v6062_v0 }
 0xa8c   : > { %v2130_v38 = vadd.f32 %v5297_v26, %v4735_v21  ;;  %5338 = vmatprep.subr.bf16.mxu0 %v6063_v2 }
 0xa8d   : > { %v5299_v52 = vpop.f32.mrf.mxu0 }
 0xa8e   : > { %v5300_v23 = vadd.f32 %v5299_v52, %v5298_v49  ;;  %v2158_v40 = vmax.f32 %v2130_v38, 0.0  ;;  %v6064_v49 = vld [vmem:[#allocation2 + $0x100] sm:$0xff]  }
 0xa8f   : > { %v5301_v56 = vpop.f32.mrf.mxu0  ;;  %5339 = vmatpush3.bf16.msra.mxu0 %v6064_v49 }
 0xa90   : > { %v2135_v32 = vadd.f32 %v5300_v23, %v4735_v21  ;;  %v2165_v45 = vpack.c.bf16 %v2158_v40, %v2157_v44 }
 0xa91   : > { %v5302_v54 = vpop.f32.mrf.mxu0 }
 0xa92   : > { %v5303_v18 = vadd.f32 %v5302_v54, %v5301_v56  ;;  %v2159_v39 = vmax.f32 %v2135_v32, 0.0 }
 0xa93   : > { %v5304_v57 = vpop.f32.mrf.mxu0 }
 0xa94   : > { %v2138_v27 = vadd.f32 %v5303_v18, %v4735_v21 }
 0xa95   : > { %v5305_v5 = vpop.f32.mrf.mxu0 }
 0xa96   : > { %v5306_v14 = vadd.f32 %v5305_v5, %v5304_v57  ;;  %v2160_v35 = vmax.f32 %v2138_v27, 0.0 }
 0xa97   : > { %v5307_v6 = vpop.f32.mrf.mxu0 }
 0xa98   : > { %v2143_v24 = vadd.f32 %v5306_v14, %v4735_v21  ;;  %v2166_v43 = vpack.c.bf16 %v2160_v35, %v2159_v39 }
 0xa99   : > { %v5308_v9 = vpop.f32.mrf.mxu0 }
 0xa9a   : > { %v5309_v15 = vadd.f32 %v5308_v9, %v5307_v6  ;;  %v2161_v33 = vmax.f32 %v2143_v24, 0.0 }
 0xa9b   : > { %v5310_v11 = vpop.f32.mrf.mxu0 }
 0xa9c   : > { %v2146_v19 = vadd.f32 %v5309_v15, %v4735_v21 }
 0xa9d   : > { %v5311_v12 = vpop.f32.mrf.mxu0 }
 0xa9e   : > { %v5312_v16 = vadd.f32 %v5311_v12, %v5310_v11  ;;  %v2162_v28 = vmax.f32 %v2146_v19, 0.0 }
 0xa9f   : > { %v5313_v13 = vpop.f32.mrf.mxu0 }
 0xaa0   : > { %v2151_v20 = vadd.f32 %v5312_v16, %v4735_v21  ;;  %v2167_v36 = vpack.c.bf16 %v2162_v28, %v2161_v33  ;;  %v4757_v33 = vld [vmem:[%s7304_s7 + $0x2] ss:$0 sm:$0xff] }
 0xaa1   : > { %v5314_v17 = vpop.f32.mrf.mxu0 }
 0xaa2   : > { %v5315_v22 = vadd.f32 %v5314_v17, %v5313_v13  ;;  %v2163_v29 = vmax.f32 %v2151_v20, 0.0 }
 0xaa4   : > { %v2154_v25 = vadd.f32 %v5315_v22, %v4735_v21 }
 0xaa6   : > { %v2164_v30 = vmax.f32 %v2154_v25, 0.0 }
 0xaa8   : > { %v2168_v34 = vpack.c.bf16 %v2164_v30, %v2163_v29 }
 0xaaa   : > { %5796 = vmatprep.subr.bf16.mxu1 %v2168_v34 }
 0xaab   : > { %5797 = vmatpush3.bf16.msra.mxu1 %v2168_v34 }
 0xaac   : > { %5798 = vmatprep.subr.bf16.mxu1 %v2167_v36 }
 0xaaf   : > { %5799 = vmatpush3.bf16.msra.mxu1 %v2167_v36 }
 0xab0   : > { %5800 = vmatprep.subr.bf16.mxu1 %v2166_v43 }
 0xab3   : > { %5801 = vmatpush3.bf16.msra.mxu1 %v2166_v43 }
 0xab4   : > { %5802 = vmatprep.subr.bf16.mxu1 %v2165_v45 }
 0xab7   : > { %5803 = vmatpush3.bf16.msra.mxu1 %v2165_v45 }
 0xaba   : > { %5805 = vmatmul.mubr.msk.bf16.vlgmr.msra.gmra.mxu1 %vm489_vm0, %v6758_v48 }
 0xabb   : > { %5808 = vmatprep.mubr.msk.bf16.mxu1 %vm489_vm0, %v6763_v51 }
 0xac2   : > { %5809 = vmatmul.mubr.msk.bf16.gmra.mxu1 %vm489_vm0, %v6768_v53 }
 0xac3   : > { %5820 = vmatprep.mubr.msk.bf16.mxu1 %vm489_vm0, %v6773_v10 }
 0xb7a   : > { %v5806_v52 = vpop.f32.mrf.mxu1 }
 0xb7c   : > { %v2238_v56 = vpop.f32.mrf.mxu1 }
 0xb7e   : > { %v5807_v54 = vpop.f32.mrf.mxu1 }
 0xb7f   : > { %v2270_v9 = vpack.c.bf16 %v5807_v54, %v5806_v52 }
 0xb80   : > { %v2241_v57 = vpop.f32.mrf.mxu1 }
 0xb81   : > { %v2269_v5 = vpack.c.bf16 %v2241_v57, %v2238_v56 }
 0xb82   : > { %v5810_v6 = vpop.f32.mrf.mxu1 }
 0xb83   : > { %2407 = vmatprep.mubr.bf16.mxu0 %v2269_v5 }
 0xb84   : > { %2408 = vmatmul.mubr.bf16.vlgmr.msra.gmra.mxu0 %v2165_v45  ;;  %v2254_v11 = vpop.f32.mrf.mxu1 }
 0xb85   : > { %2415 = vmatprep.mubr.bf16.mxu0 %v2270_v9  ;;  %v6066_v9 = vld [vmem:[%s7301_s4 + $0x1b8] sm:$0xff]  }
 0xb86   : > { %v5811_v12 = vpop.f32.mrf.mxu1 }
 0xb87   : > { %v2272_v13 = vpack.c.bf16 %v5811_v12, %v5810_v6  ;;  %v6068_v12 = vld [vmem:[%s7301_s4 + $0x1b0] sm:$0xff]  }
 0xb88   : > { %v2257_v15 = vpop.f32.mrf.mxu1 }
 0xb89   : > { %v2271_v16 = vpack.c.bf16 %v2257_v15, %v2254_v11  ;;  %v6067_v11 = vld [vmem:[%s7301_s4 + $0x1f0] sm:$0xff]   ;;  %v6069_v15 = vld [vmem:[%s7301_s4 + $0x1e8] sm:$0xff]  }
 0xb8c   : > { %2416 = vmatmul.mubr.bf16.gmra.mxu0 %v2166_v43 }
 0xb8d   : > { %2423 = vmatprep.mubr.bf16.mxu0 %v2271_v16  ;;  %v6070_v16 = vld [vmem:[%s7301_s4 + $0x1a8] sm:$0xff]  }
 0xb94   : > { %2424 = vmatmul.mubr.bf16.gmra.mxu0 %v2167_v36 }
 0xb95   : > { %2431 = vmatprep.mubr.bf16.mxu0 %v2272_v13  ;;  %v6071_v13 = vld [vmem:[%s7301_s4 + $0x1e0] sm:$0xff]  }
 0xb9c   : > { %2432 = vmatmul.mubr.bf16.gmra.mxu0 %v2168_v34 }
 0xb9d   : > { %5836 = vmatprep.mubr.msk.bf16.mxu0 %vm489_vm0, %v6773_v10 }
 0xc44   : > { %v5340_v14 = vpop.f32.mrf.mxu0 }
 0xc46   : > { %v5341_v21 = vpop.f32.mrf.mxu0 }
 0xc47   : > { %v5342_v49 = vadd.f32 %v5341_v21, %v5340_v14  ;;  %v6072_v14 = vld [vmem:[%s7301_s4 + $0x1a0] sm:$0xff]   ;;  %v6073_v21 = vld [vmem:[%s7301_s4 + $0x1d8] sm:$0xff]  }
 0xc48   : > { %v5343_v17 = vpop.f32.mrf.mxu0 }
 0xc49   : > { %v2410_v5 = vadd.f32 %v5342_v49, %v4757_v33  ;;  %v6089_v49 = vld [vmem:[#allocation2 + $0x1d8] sm:$0xff]  }
 0xc4a   : > { %v5344_v18 = vpop.f32.mrf.mxu0 }
 0xc4b   : > { %v5345_v44 = vadd.f32 %v5344_v18, %v5343_v17  ;;  %v6074_v17 = vld [vmem:[%s7301_s4 + $0x198] sm:$0xff]   ;;  %v6075_v18 = vld [vmem:[%s7301_s4 + $0x1d0] sm:$0xff]  }
 0xc4c   : > { %v5346_v19 = vpop.f32.mrf.mxu0 }
 0xc4d   : > { %v2413_v57 = vadd.f32 %v5345_v44, %v4757_v33  ;;  %v6086_v44 = vld [vmem:[#allocation2 + $0x1a8] sm:$0xff]  }
 0xc4e   : > { %v5347_v20 = vpop.f32.mrf.mxu0 }
 0xc4f   : > { %v5348_v39 = vadd.f32 %v5347_v20, %v5346_v19  ;;  %v6076_v19 = vld [vmem:[%s7301_s4 + $0x190] sm:$0xff]   ;;  %v6077_v20 = vld [vmem:[%s7301_s4 + $0x1c8] sm:$0xff]  }
 0xc50   : > { %v5349_v22 = vpop.f32.mrf.mxu0 }
 0xc51   : > { %v2418_v52 = vadd.f32 %v5348_v39, %v4757_v33  ;;  %v6083_v39 = vld [vmem:[#allocation2 + $0x1f0] sm:$0xff]  }
 0xc52   : > { %v5350_v23 = vpop.f32.mrf.mxu0 }
 0xc53   : > { %v5351_v38 = vadd.f32 %v5350_v23, %v5349_v22  ;;  %v6807_v59 = vadd.f32 %v2418_v52, %v1876_v4  ;;  %v6078_v22 = vld [vmem:[%s7301_s4 + $0x188] sm:$0xff]   ;;  %v6079_v23 = vld [vmem:[%s7301_s4 + $0x1c0] sm:$0xff]   ;;  %v6090_v52 = vld [vmem:[#allocation2 + $0x198] sm:$0xff]  }
 0xc54   : > { %v5352_v24 = vpop.f32.mrf.mxu0 }
 0xc55   : > { %v2421_v45 = vadd.f32 %v5351_v38, %v4757_v33  ;;  %v2450_v61 = vmax.f32 %v6807_v59, 0.0 }
 0xc56   : > { %v5353_v25 = vpop.f32.mrf.mxu0 }
 0xc57   : > { %v5354_v31 = vadd.f32 %v5353_v25, %v5352_v24  ;;  %v6800_v8 = vadd.f32 %v2421_v45, %v1877_v1  ;;  %v6831_v1 = vadd.f32 %v2410_v5, %v1874_v3  ;;  %v6065_v3 = vld [vmem:[%s7301_s4 + $0x1f8] sm:$0xff]   ;;  %v6080_v24 = vld [vmem:[%s7301_s4 + $0x180] sm:$0xff]   ;;  %v6092_v5 = vld [vmem:[#allocation2 + $0x190] sm:$0xff]  }
 0xc58   : > { %v5355_v26 = vpop.f32.mrf.mxu0  ;;  %v6087_v45 = vld [vmem:[#allocation2 + $0x1e0] sm:$0xff]  }
 0xc59   : > { %v2426_v40 = vadd.f32 %v5354_v31, %v4757_v33  ;;  %v2448_v6 = vmax.f32 %v6831_v1, 0.0 }
 0xc5a   : > { %v5356_v27 = vpop.f32.mrf.mxu0 }
 0xc5b   : > { %v5357_v29 = vadd.f32 %v5356_v27, %v5355_v26  ;;  %v6792_v56 = vadd.f32 %v2426_v40, %v1878_v47  ;;  %v2451_v47 = vmax.f32 %v6800_v8, 0.0  ;;  %v6084_v40 = vld [vmem:[#allocation2 + $0x1b0] sm:$0xff]  }
 0xc5c   : > { %v5358_v28 = vpop.f32.mrf.mxu0 }
 0xc5d   : > { %v2429_v35 = vadd.f32 %v5357_v29, %v4757_v33  ;;  %v2452_v60 = vmax.f32 %v6792_v56, 0.0 }
 0xc5e   : > { %v5359_v30 = vpop.f32.mrf.mxu0 }
 0xc5f   : > { %v5360_v32 = vadd.f32 %v5359_v30, %v5358_v28  ;;  %v6784_v58 = vadd.f32 %v2429_v35, %v1879_v42 }
 0xc60   : > { %v5361_v34 = vpop.f32.mrf.mxu0 }
 0xc61   : > { %v2434_v36 = vadd.f32 %v5360_v32, %v4757_v33  ;;  %v2453_v63 = vmax.f32 %v6784_v58, 0.0 }
 0xc62   : > { %v5362_v37 = vpop.f32.mrf.mxu0 }
 0xc63   : > { %v5363_v43 = vadd.f32 %v5362_v37, %v5361_v34  ;;  %v6788_v0 = vadd.f32 %v2434_v36, %v1880_v50  ;;  %v6826_v46 = vpack.c.bf16 %v2453_v63, %v2452_v60  ;;  %v6081_v36 = vld [vmem:[#allocation2 + $0x1f8] sm:$0xff]  }
 0xc64   : > { %v6082_v37 = vld [vmem:[#allocation2 + $0x1b8] sm:$0xff]  }
 0xc65   : > { %v2437_v2 = vadd.f32 %v5363_v43, %v4757_v33  ;;  %v2454_v42 = vmax.f32 %v6788_v0, 0.0  ;;  %v6085_v43 = vld [vmem:[#allocation2 + $0x1e8] sm:$0xff]  }
 0xc67   : > { %v6796_v54 = vadd.f32 %v2437_v2, %v1881_v62  ;;  %v6818_v62 = vadd.f32 %v2413_v57, %v1875_v55  ;;  %v2457_v55 = vpack.c.bf16 %v2451_v47, %v2450_v61  ;;  %v6088_v2 = vld [vmem:[#allocation2 + $0x1a0] sm:$0xff]   ;;  %v6091_v57 = vld [vmem:[#allocation2 + $0x1d0] sm:$0xff]  }
 0xc69   : > { %v2455_v50 = vmax.f32 %v6796_v54, 0.0  ;;  %v2449_v4 = vmax.f32 %v6818_v62, 0.0 }
 0xc6b   : > { %v6814_v41 = vpack.c.bf16 %v2455_v50, %v2454_v42  ;;  %v2456_v7 = vpack.c.bf16 %v2449_v4, %v2448_v6 }
 0xc6d   : > { %5812 = vmatprep.subr.bf16.mxu1 %v6814_v41 }
 0xc6e   : > { %5813 = vmatpush3.bf16.msra.mxu1 %v6814_v41 }
 0xc6f   : > { %5814 = vmatprep.subr.bf16.mxu1 %v6826_v46 }
 0xc72   : > { %5815 = vmatpush3.bf16.msra.mxu1 %v6826_v46 }
 0xc73   : > { %5816 = vmatprep.subr.bf16.mxu1 %v2457_v55 }
 0xc76   : > { %5817 = vmatpush3.bf16.msra.mxu1 %v2457_v55 }
 0xc77   : > { %5818 = vmatprep.subr.bf16.mxu1 %v2456_v7 }
 0xc7a   : > { %5819 = vmatpush3.bf16.msra.mxu1 %v2456_v7 }
 0xc7b   : > { %5372 = vmatprep.subr.bf16.mxu1 %v6065_v3 }
 0xc7d   : > { %5821 = vmatmul.mubr.msk.bf16.vlgmr.msra.gmra.mxu1 %vm489_vm0, %v6758_v48 }
 0xc7e   : > { %5824 = vmatprep.mubr.msk.bf16.mxu1 %vm489_vm0, %v6763_v51  ;;  %5373 = vmatpush3.bf16.msra.mxu1 %v6066_v9 }
 0xc7f   : > { %5374 = vmatprep.subr.bf16.mxu1 %v6067_v11 }
 0xc82   : > { %5375 = vmatpush3.bf16.msra.mxu1 %v6068_v12 }
 0xc83   : > { %5376 = vmatprep.subr.bf16.mxu1 %v6069_v15 }
 0xc85   : > { %5825 = vmatmul.mubr.msk.bf16.gmra.mxu1 %vm489_vm0, %v6768_v53 }
 0xc86   : > { %5377 = vmatpush3.bf16.msra.mxu1 %v6070_v16 }
 0xc87   : > { %5378 = vmatprep.subr.bf16.mxu1 %v6071_v13 }
 0xc8a   : > { %5379 = vmatpush3.bf16.msra.mxu1 %v6072_v14 }
 0xc8b   : > { %5380 = vmatprep.subr.bf16.mxu1 %v6073_v21 }
 0xc8e   : > { %5381 = vmatpush3.bf16.msra.mxu1 %v6074_v17 }
 0xc8f   : > { %5382 = vmatprep.subr.bf16.mxu1 %v6075_v18 }
 0xc92   : > { %5383 = vmatpush3.bf16.msra.mxu1 %v6076_v19 }
 0xc93   : > { %5384 = vmatprep.subr.bf16.mxu1 %v6077_v20 }
 0xc96   : > { %5385 = vmatpush3.bf16.msra.mxu1 %v6078_v22 }
 0xc97   : > { %5386 = vmatprep.subr.bf16.mxu1 %v6079_v23  ;;  %v4811_v23 = vld [vmem:[%s7302_s5 + $0x3] ss:$0 sm:$0xff] }
 0xc9a   : > { %5387 = vmatpush3.bf16.msra.mxu1 %v6080_v24 }
 0xc9b   : > { %5420 = vmatprep.subr.bf16.mxu1 %v6081_v36 }
 0xd3d   : > { %v5822_v25 = vpop.f32.mrf.mxu1 }
 0xd3f   : > { %v2529_v26 = vpop.f32.mrf.mxu1 }
 0xd41   : > { %v5823_v27 = vpop.f32.mrf.mxu1 }
 0xd42   : > { %v2561_v31 = vpack.c.bf16 %v5823_v27, %v5822_v25 }
 0xd43   : > { %v2532_v28 = vpop.f32.mrf.mxu1 }
 0xd44   : > { %v2560_v29 = vpack.c.bf16 %v2532_v28, %v2529_v26 }
 0xd45   : > { %v5826_v30 = vpop.f32.mrf.mxu1 }
 0xd46   : > { %2698 = vmatprep.mubr.bf16.mxu1 %v2560_v29 }
 0xd47   : > { %2699 = vmatmul.mubr.bf16.vlgmr.msra.gmra.mxu1 %v2456_v7  ;;  %v2545_v32 = vpop.f32.mrf.mxu1 }
 0xd48   : > { %2706 = vmatprep.mubr.bf16.mxu1 %v2561_v31  ;;  %5421 = vmatpush3.bf16.msra.mxu1 %v6082_v37 }
 0xd49   : > { %v5827_v33 = vpop.f32.mrf.mxu1  ;;  %5422 = vmatprep.subr.bf16.mxu1 %v6083_v39 }
 0xd4a   : > { %v2563_v35 = vpack.c.bf16 %v5827_v33, %v5826_v30 }
 0xd4b   : > { %v2548_v34 = vpop.f32.mrf.mxu1 }
 0xd4c   : > { %v2562_v38 = vpack.c.bf16 %v2548_v34, %v2545_v32  ;;  %5423 = vmatpush3.bf16.msra.mxu1 %v6084_v40 }
 0xd4d   : > { %5424 = vmatprep.subr.bf16.mxu1 %v6085_v43 }
 0xd4f   : > { %2707 = vmatmul.mubr.bf16.gmra.mxu1 %v2457_v55 }
 0xd50   : > { %2714 = vmatprep.mubr.bf16.mxu1 %v2562_v38  ;;  %5425 = vmatpush3.bf16.msra.mxu1 %v6086_v44 }
 0xd51   : > { %5426 = vmatprep.subr.bf16.mxu1 %v6087_v45 }
 0xd54   : > { %5427 = vmatpush3.bf16.msra.mxu1 %v6088_v2 }
 0xd55   : > { %5428 = vmatprep.subr.bf16.mxu1 %v6089_v49 }
 0xd57   : > { %2715 = vmatmul.mubr.bf16.gmra.mxu1 %v6826_v46 }
 0xd58   : > { %2722 = vmatprep.mubr.bf16.mxu1 %v2563_v35  ;;  %5429 = vmatpush3.bf16.msra.mxu1 %v6090_v52 }
 0xd59   : > { %5430 = vmatprep.subr.bf16.mxu1 %v6091_v57 }
 0xd5c   : > { %5431 = vmatpush3.bf16.msra.mxu1 %v6092_v5 }
 0xd5f   : > { %2723 = vmatmul.mubr.bf16.gmra.mxu1 %v6814_v41 }
 0xe07   : > { %v5388_v41 = vpop.f32.mrf.mxu1 }
 0xe09   : > { %v5389_v46 = vpop.f32.mrf.mxu1 }
 0xe0a   : > { %v5390_v36 = vadd.f32 %v5389_v46, %v5388_v41  ;;  %v6093_v41 = vld [vmem:[#allocation2 + $0x1c8] sm:$0xff]  }
 0xe0b   : > { %v5391_v55 = vpop.f32.mrf.mxu1  ;;  %v6094_v46 = vld [vmem:[#allocation2 + $0x188] sm:$0xff]   ;;  %5432 = vmatprep.subr.bf16.mxu1 %v6093_v41 }
 0xe0c   : > { %v2701_v2 = vadd.f32 %v5390_v36, %v4811_v23  ;;  %5433 = vmatpush3.bf16.msra.mxu1 %v6094_v46 }
 0xe0d   : > { %v5392_v7 = vpop.f32.mrf.mxu1 }
 0xe0e   : > { %v5393_v32 = vadd.f32 %v5392_v7, %v5391_v55  ;;  %v2731_v5 = vmax.f32 %v2701_v2, 0.0  ;;  %v6095_v7 = vld [vmem:[#allocation2 + $0x1c0] sm:$0xff]  }
 0xe0f   : > { %v5394_v3 = vpop.f32.mrf.mxu1  ;;  %5434 = vmatprep.subr.bf16.mxu1 %v6095_v7 }
 0xe10   : > { %v2704_v43 = vadd.f32 %v5393_v32, %v4811_v23 }
 0xe11   : > { %v5395_v9 = vpop.f32.mrf.mxu1 }
 0xe12   : > { %v5396_v29 = vadd.f32 %v5395_v9, %v5394_v3  ;;  %v2732_v52 = vmax.f32 %v2704_v43, 0.0  ;;  %v6096_v3 = vld [vmem:[#allocation2 + $0x180] sm:$0xff]  }
 0xe13   : > { %v5397_v11 = vpop.f32.mrf.mxu1  ;;  %5435 = vmatpush3.bf16.msra.mxu1 %v6096_v3 }
 0xe14   : > { %v2709_v37 = vadd.f32 %v5396_v29, %v4811_v23  ;;  %v2739_v55 = vpack.c.bf16 %v2732_v52, %v2731_v5 }
 0xe15   : > { %v5398_v12 = vpop.f32.mrf.mxu1 }
 0xe16   : > { %v5399_v25 = vadd.f32 %v5398_v12, %v5397_v11  ;;  %v2733_v49 = vmax.f32 %v2709_v37, 0.0 }
 0xe17   : > { %v5400_v15 = vpop.f32.mrf.mxu1 }
 0xe18   : > { %v2712_v33 = vadd.f32 %v5399_v25, %v4811_v23 }
 0xe19   : > { %v5401_v16 = vpop.f32.mrf.mxu1 }
 0xe1a   : > { %v5402_v22 = vadd.f32 %v5401_v16, %v5400_v15  ;;  %v2734_v44 = vmax.f32 %v2712_v33, 0.0 }
 0xe1b   : > { %v5403_v13 = vpop.f32.mrf.mxu1 }
 0xe1c   : > { %v2717_v30 = vadd.f32 %v5402_v22, %v4811_v23  ;;  %v2740_v57 = vpack.c.bf16 %v2734_v44, %v2733_v49 }
 0xe1d   : > { %v5404_v14 = vpop.f32.mrf.mxu1 }
 0xe1e   : > { %v5405_v18 = vadd.f32 %v5404_v14, %v5403_v13  ;;  %v2735_v39 = vmax.f32 %v2717_v30, 0.0 }
 0xe1f   : > { %v5406_v21 = vpop.f32.mrf.mxu1 }
 0xe20   : > { %v2720_v26 = vadd.f32 %v5405_v18, %v4811_v23 }
 0xe21   : > { %v5407_v17 = vpop.f32.mrf.mxu1 }
 0xe22   : > { %v5408_v19 = vadd.f32 %v5407_v17, %v5406_v21  ;;  %v2736_v34 = vmax.f32 %v2720_v26, 0.0 }
 0xe23   : > { %v5409_v20 = vpop.f32.mrf.mxu1 }
 0xe24   : > { %v2725_v27 = vadd.f32 %v5408_v19, %v4811_v23  ;;  %v2741_v45 = vpack.c.bf16 %v2736_v34, %v2735_v39  ;;  %v4833_v39 = vld [vmem:[%s7304_s7 + $0x3] ss:$0 sm:$0xff] }
 0xe25   : > { %v5410_v24 = vpop.f32.mrf.mxu1 }
 0xe26   : > { %v5411_v28 = vadd.f32 %v5410_v24, %v5409_v20  ;;  %v2737_v38 = vmax.f32 %v2725_v27, 0.0 }
 0xe28   : > { %v2728_v31 = vadd.f32 %v5411_v28, %v4811_v23 }
 0xe2a   : > { %v2738_v35 = vmax.f32 %v2728_v31, 0.0 }
 0xe2c   : > { %v2742_v40 = vpack.c.bf16 %v2738_v35, %v2737_v38 }
 0xe2e   : > { %5828 = vmatprep.subr.bf16.mxu0 %v2742_v40 }
 0xe2f   : > { %5829 = vmatpush3.bf16.msra.mxu0 %v2742_v40 }
 0xe30   : > { %5830 = vmatprep.subr.bf16.mxu0 %v2741_v45 }
 0xe33   : > { %5831 = vmatpush3.bf16.msra.mxu0 %v2741_v45 }
 0xe34   : > { %5832 = vmatprep.subr.bf16.mxu0 %v2740_v57 }
 0xe37   : > { %5833 = vmatpush3.bf16.msra.mxu0 %v2740_v57 }
 0xe38   : > { %5834 = vmatprep.subr.bf16.mxu0 %v2739_v55 }
 0xe3b   : > { %5835 = vmatpush3.bf16.msra.mxu0 %v2739_v55 }
 0xe3e   : > { %5837 = vmatmul.mubr.msk.bf16.vlgmr.msra.gmra.mxu0 %vm489_vm0, %v6758_v48 }
 0xe3f   : > { %5840 = vmatprep.mubr.msk.bf16.mxu0 %vm489_vm0, %v6763_v51 }
 0xe46   : > { %5841 = vmatmul.mubr.msk.bf16.gmra.mxu0 %vm489_vm0, %v6768_v53 }
 0xe47   : > { %5852 = vmatprep.mubr.msk.bf16.mxu0 %vm489_vm0, %v6773_v10 }
 0xefe   : > { %v5838_v9 = vpop.f32.mrf.mxu0 }
 0xf00   : > { %v2812_v11 = vpop.f32.mrf.mxu0 }
 0xf02   : > { %v5839_v12 = vpop.f32.mrf.mxu0 }
 0xf03   : > { %v2844_v14 = vpack.c.bf16 %v5839_v12, %v5838_v9 }
 0xf04   : > { %v2815_v15 = vpop.f32.mrf.mxu0 }
 0xf05   : > { %v2843_v16 = vpack.c.bf16 %v2815_v15, %v2812_v11 }
 0xf06   : > { %v5842_v13 = vpop.f32.mrf.mxu0 }
 0xf07   : > { %2981 = vmatprep.mubr.bf16.mxu1 %v2843_v16 }
 0xf08   : > { %2982 = vmatmul.mubr.bf16.vlgmr.msra.gmra.mxu1 %v2739_v55  ;;  %v2828_v21 = vpop.f32.mrf.mxu0 }
 0xf09   : > { %2989 = vmatprep.mubr.bf16.mxu1 %v2844_v14  ;;  %v6098_v14 = vld [vmem:[%s7301_s4 + $0x238] sm:$0xff]  }
 0xf0a   : > { %v5843_v17 = vpop.f32.mrf.mxu0 }
 0xf0b   : > { %v2846_v20 = vpack.c.bf16 %v5843_v17, %v5842_v13  ;;  %v6100_v17 = vld [vmem:[%s7301_s4 + $0x230] sm:$0xff]  }
 0xf0c   : > { %v2831_v18 = vpop.f32.mrf.mxu0 }
 0xf0d   : > { %v2845_v19 = vpack.c.bf16 %v2831_v18, %v2828_v21  ;;  %v6099_v21 = vld [vmem:[%s7301_s4 + $0x270] sm:$0xff]   ;;  %v6101_v18 = vld [vmem:[%s7301_s4 + $0x268] sm:$0xff]  }
 0xf10   : > { %2990 = vmatmul.mubr.bf16.gmra.mxu1 %v2740_v57 }
 0xf11   : > { %2997 = vmatprep.mubr.bf16.mxu1 %v2845_v19  ;;  %v6102_v19 = vld [vmem:[%s7301_s4 + $0x228] sm:$0xff]  }
 0xf18   : > { %2998 = vmatmul.mubr.bf16.gmra.mxu1 %v2741_v45 }
 0xf19   : > { %3005 = vmatprep.mubr.bf16.mxu1 %v2846_v20  ;;  %v6103_v20 = vld [vmem:[%s7301_s4 + $0x260] sm:$0xff]  }
 0xf20   : > { %3006 = vmatmul.mubr.bf16.gmra.mxu1 %v2742_v40 }
 0xf21   : > { %5868 = vmatprep.mubr.msk.bf16.mxu1 %vm489_vm0, %v6773_v10 }
 0xfc8   : > { %v5436_v22 = vpop.f32.mrf.mxu1 }
 0xfca   : > { %v5437_v23 = vpop.f32.mrf.mxu1 }
 0xfcb   : > { %v5438_v3 = vadd.f32 %v5437_v23, %v5436_v22  ;;  %v6104_v22 = vld [vmem:[%s7301_s4 + $0x220] sm:$0xff]   ;;  %v6105_v23 = vld [vmem:[%s7301_s4 + $0x258] sm:$0xff]  }
 0xfcc   : > { %v5439_v24 = vpop.f32.mrf.mxu1 }
 0xfcd   : > { %v2984_v16 = vadd.f32 %v5438_v3, %v4833_v39  ;;  %v6121_v3 = vld [vmem:[#allocation2 + $0x258] sm:$0xff]  }
 0xfce   : > { %v5440_v25 = vpop.f32.mrf.mxu1 }
 0xfcf   : > { %v5441_v5 = vadd.f32 %v5440_v25, %v5439_v24  ;;  %v6106_v24 = vld [vmem:[%s7301_s4 + $0x218] sm:$0xff]   ;;  %v6107_v25 = vld [vmem:[%s7301_s4 + $0x250] sm:$0xff]  }
 0xfd0   : > { %v5442_v26 = vpop.f32.mrf.mxu1 }
 0xfd1   : > { %v2987_v15 = vadd.f32 %v5441_v5, %v4833_v39  ;;  %v6118_v5 = vld [vmem:[#allocation2 + $0x228] sm:$0xff]  }
 0xfd2   : > { %v5443_v27 = vpop.f32.mrf.mxu1 }
 0xfd3   : > { %v5444_v49 = vadd.f32 %v5443_v27, %v5442_v26  ;;  %v6108_v26 = vld [vmem:[%s7301_s4 + $0x210] sm:$0xff]   ;;  %v6109_v27 = vld [vmem:[%s7301_s4 + $0x248] sm:$0xff]  }
 0xfd4   : > { %v5445_v28 = vpop.f32.mrf.mxu1 }
 0xfd5   : > { %v2992_v9 = vadd.f32 %v5444_v49, %v4833_v39  ;;  %v6115_v49 = vld [vmem:[#allocation2 + $0x270] sm:$0xff]  }
 0xfd6   : > { %v5446_v29 = vpop.f32.mrf.mxu1 }
 0xfd7   : > { %v5447_v43 = vadd.f32 %v5446_v29, %v5445_v28  ;;  %v6943_v56 = vadd.f32 %v2992_v9, %v2450_v61  ;;  %v6110_v28 = vld [vmem:[%s7301_s4 + $0x208] sm:$0xff]   ;;  %v6111_v29 = vld [vmem:[%s7301_s4 + $0x240] sm:$0xff]   ;;  %v6122_v9 = vld [vmem:[#allocation2 + $0x218] sm:$0xff]  }
 0xfd8   : > { %v5448_v30 = vpop.f32.mrf.mxu1 }
 0xfd9   : > { %v2995_v55 = vadd.f32 %v5447_v43, %v4833_v39  ;;  %v3024_v62 = vmax.f32 %v6943_v56, 0.0 }
 0xfda   : > { %v5449_v31 = vpop.f32.mrf.mxu1 }
 0xfdb   : > { %v5450_v36 = vadd.f32 %v5449_v31, %v5448_v30  ;;  %v6936_v58 = vadd.f32 %v2995_v55, %v2451_v47  ;;  %v6967_v47 = vadd.f32 %v2984_v16, %v2448_v6  ;;  %v6097_v6 = vld [vmem:[%s7301_s4 + $0x278] sm:$0xff]   ;;  %v6112_v30 = vld [vmem:[%s7301_s4 + $0x200] sm:$0xff]   ;;  %v6124_v16 = vld [vmem:[#allocation2 + $0x210] sm:$0xff]  }
 0xfdc   : > { %v5451_v32 = vpop.f32.mrf.mxu1  ;;  %v6119_v55 = vld [vmem:[#allocation2 + $0x260] sm:$0xff]  }
 0xfdd   : > { %v3000_v52 = vadd.f32 %v5450_v36, %v4833_v39  ;;  %v3022_v13 = vmax.f32 %v6967_v47, 0.0 }
 0xfde   : > { %v5452_v33 = vpop.f32.mrf.mxu1 }
 0xfdf   : > { %v5453_v38 = vadd.f32 %v5452_v33, %v5451_v32  ;;  %v6928_v11 = vadd.f32 %v3000_v52, %v2452_v60  ;;  %v3025_v60 = vmax.f32 %v6936_v58, 0.0  ;;  %v6116_v52 = vld [vmem:[#allocation2 + $0x230] sm:$0xff]  }
 0xfe0   : > { %v5454_v34 = vpop.f32.mrf.mxu1 }
 0xfe1   : > { %v3003_v44 = vadd.f32 %v5453_v38, %v4833_v39  ;;  %v3026_v54 = vmax.f32 %v6928_v11, 0.0 }
 0xfe2   : > { %v5455_v35 = vpop.f32.mrf.mxu1 }
 0xfe3   : > { %v5456_v37 = vadd.f32 %v5455_v35, %v5454_v34  ;;  %v6920_v41 = vadd.f32 %v3003_v44, %v2453_v63 }
 0xfe4   : > { %v5457_v40 = vpop.f32.mrf.mxu1 }
 0xfe5   : > { %v3008_v45 = vadd.f32 %v5456_v37, %v4833_v39  ;;  %v3027_v0 = vmax.f32 %v6920_v41, 0.0 }
 0xfe6   : > { %v5458_v2 = vpop.f32.mrf.mxu1 }
 0xfe7   : > { %v5459_v57 = vadd.f32 %v5458_v2, %v5457_v40  ;;  %v6924_v46 = vadd.f32 %v3008_v45, %v2454_v42  ;;  %v6962_v59 = vpack.c.bf16 %v3027_v0, %v3026_v54  ;;  %v6113_v45 = vld [vmem:[#allocation2 + $0x278] sm:$0xff]  }
 0xfe8   : > { %v6114_v2 = vld [vmem:[#allocation2 + $0x238] sm:$0xff]  }
 0xfe9   : > { %v3011_v7 = vadd.f32 %v5459_v57, %v4833_v39  ;;  %v3028_v63 = vmax.f32 %v6924_v46, 0.0  ;;  %v6117_v57 = vld [vmem:[#allocation2 + $0x268] sm:$0xff]  }
 0xfeb   : > { %v6932_v12 = vadd.f32 %v3011_v7, %v2455_v50  ;;  %v6954_v50 = vadd.f32 %v2987_v15, %v2449_v4  ;;  %v3031_v4 = vpack.c.bf16 %v3025_v60, %v3024_v62  ;;  %v6120_v7 = vld [vmem:[#allocation2 + $0x220] sm:$0xff]   ;;  %v6123_v15 = vld [vmem:[#allocation2 + $0x250] sm:$0xff]  }
 0xfed   : > { %v3029_v42 = vmax.f32 %v6932_v12, 0.0  ;;  %v3023_v61 = vmax.f32 %v6954_v50, 0.0 }
 0xfef   : > { %v6950_v8 = vpack.c.bf16 %v3029_v42, %v3028_v63  ;;  %v3030_v1 = vpack.c.bf16 %v3023_v61, %v3022_v13 }
 0xff1   : > { %5844 = vmatprep.subr.bf16.mxu0 %v6950_v8 }
 0xff2   : > { %5845 = vmatpush3.bf16.msra.mxu0 %v6950_v8 }
 0xff3   : > { %5846 = vmatprep.subr.bf16.mxu0 %v6962_v59 }
 0xff6   : > { %5847 = vmatpush3.bf16.msra.mxu0 %v6962_v59 }
 0xff7   : > { %5848 = vmatprep.subr.bf16.mxu0 %v3031_v4 }
 0xffa   : > { %5849 = vmatpush3.bf16.msra.mxu0 %v3031_v4 }
 0xffb   : > { %5850 = vmatprep.subr.bf16.mxu0 %v3030_v1 }
 0xffe   : > { %5851 = vmatpush3.bf16.msra.mxu0 %v3030_v1 }
 0xfff   : > { %5468 = vmatprep.subr.bf16.mxu0 %v6097_v6 }
0x1001   : > { %5853 = vmatmul.mubr.msk.bf16.vlgmr.msra.gmra.mxu0 %vm489_vm0, %v6758_v48 }
0x1002   : > { %5856 = vmatprep.mubr.msk.bf16.mxu0 %vm489_vm0, %v6763_v51  ;;  %5469 = vmatpush3.bf16.msra.mxu0 %v6098_v14 }
0x1003   : > { %5470 = vmatprep.subr.bf16.mxu0 %v6099_v21 }
0x1006   : > { %5471 = vmatpush3.bf16.msra.mxu0 %v6100_v17 }
0x1007   : > { %5472 = vmatprep.subr.bf16.mxu0 %v6101_v18 }
0x1009   : > { %5857 = vmatmul.mubr.msk.bf16.gmra.mxu0 %vm489_vm0, %v6768_v53 }
0x100a   : > { %5473 = vmatpush3.bf16.msra.mxu0 %v6102_v19 }
0x100b   : > { %5474 = vmatprep.subr.bf16.mxu0 %v6103_v20 }
0x100e   : > { %5475 = vmatpush3.bf16.msra.mxu0 %v6104_v22 }
0x100f   : > { %5476 = vmatprep.subr.bf16.mxu0 %v6105_v23 }
0x1012   : > { %5477 = vmatpush3.bf16.msra.mxu0 %v6106_v24 }
0x1013   : > { %5478 = vmatprep.subr.bf16.mxu0 %v6107_v25 }
0x1016   : > { %5479 = vmatpush3.bf16.msra.mxu0 %v6108_v26 }
0x1017   : > { %5480 = vmatprep.subr.bf16.mxu0 %v6109_v27 }
0x101a   : > { %5481 = vmatpush3.bf16.msra.mxu0 %v6110_v28 }
0x101b   : > { %5482 = vmatprep.subr.bf16.mxu0 %v6111_v29  ;;  %v4887_v29 = vld [vmem:[%s7302_s5 + $0x4] ss:$0 sm:$0xff] }
0x101e   : > { %5483 = vmatpush3.bf16.msra.mxu0 %v6112_v30 }
0x101f   : > { %5516 = vmatprep.subr.bf16.mxu0 %v6113_v45 }
0x10c1   : > { %v5854_v31 = vpop.f32.mrf.mxu0 }
0x10c3   : > { %v3103_v32 = vpop.f32.mrf.mxu0 }
0x10c5   : > { %v5855_v33 = vpop.f32.mrf.mxu0 }
0x10c6   : > { %v3135_v36 = vpack.c.bf16 %v5855_v33, %v5854_v31 }
0x10c7   : > { %v3106_v34 = vpop.f32.mrf.mxu0 }
0x10c8   : > { %v3134_v38 = vpack.c.bf16 %v3106_v34, %v3103_v32 }
0x10c9   : > { %v5858_v35 = vpop.f32.mrf.mxu0 }
0x10ca   : > { %3272 = vmatprep.mubr.bf16.mxu0 %v3134_v38 }
0x10cb   : > { %3273 = vmatmul.mubr.bf16.vlgmr.msra.gmra.mxu0 %v3030_v1  ;;  %v3119_v37 = vpop.f32.mrf.mxu0 }
0x10cc   : > { %3280 = vmatprep.mubr.bf16.mxu0 %v3135_v36  ;;  %5517 = vmatpush3.bf16.msra.mxu0 %v6114_v2 }
0x10cd   : > { %v5859_v39 = vpop.f32.mrf.mxu0  ;;  %5518 = vmatprep.subr.bf16.mxu0 %v6115_v49 }
0x10ce   : > { %v3137_v44 = vpack.c.bf16 %v5859_v39, %v5858_v35 }
0x10cf   : > { %v3122_v40 = vpop.f32.mrf.mxu0 }
0x10d0   : > { %v3136_v43 = vpack.c.bf16 %v3122_v40, %v3119_v37  ;;  %5519 = vmatpush3.bf16.msra.mxu0 %v6116_v52 }
0x10d1   : > { %5520 = vmatprep.subr.bf16.mxu0 %v6117_v57 }
0x10d3   : > { %3281 = vmatmul.mubr.bf16.gmra.mxu0 %v3031_v4 }
0x10d4   : > { %3288 = vmatprep.mubr.bf16.mxu0 %v3136_v43  ;;  %5521 = vmatpush3.bf16.msra.mxu0 %v6118_v5 }
0x10d5   : > { %5522 = vmatprep.subr.bf16.mxu0 %v6119_v55 }
0x10d8   : > { %5523 = vmatpush3.bf16.msra.mxu0 %v6120_v7 }
0x10d9   : > { %5524 = vmatprep.subr.bf16.mxu0 %v6121_v3 }
0x10db   : > { %3289 = vmatmul.mubr.bf16.gmra.mxu0 %v6962_v59 }
0x10dc   : > { %3296 = vmatprep.mubr.bf16.mxu0 %v3137_v44  ;;  %5525 = vmatpush3.bf16.msra.mxu0 %v6122_v9 }
0x10dd   : > { %5526 = vmatprep.subr.bf16.mxu0 %v6123_v15 }
0x10e0   : > { %5527 = vmatpush3.bf16.msra.mxu0 %v6124_v16 }
0x10e3   : > { %3297 = vmatmul.mubr.bf16.gmra.mxu0 %v6950_v8 }
0x118b   : > { %v5484_v8 = vpop.f32.mrf.mxu0 }
0x118d   : > { %v5485_v59 = vpop.f32.mrf.mxu0 }
0x118e   : > { %v5486_v45 = vadd.f32 %v5485_v59, %v5484_v8  ;;  %v6125_v8 = vld [vmem:[#allocation2 + $0x248] sm:$0xff]  }
0x118f   : > { %v5487_v4 = vpop.f32.mrf.mxu0  ;;  %v6126_v59 = vld [vmem:[#allocation2 + $0x208] sm:$0xff]   ;;  %5528 = vmatprep.subr.bf16.mxu0 %v6125_v8 }
0x1190   : > { %v3275_v7 = vadd.f32 %v5486_v45, %v4887_v29  ;;  %5529 = vmatpush3.bf16.msra.mxu0 %v6126_v59 }
0x1191   : > { %v5488_v1 = vpop.f32.mrf.mxu0 }
0x1192   : > { %v5489_v37 = vadd.f32 %v5488_v1, %v5487_v4  ;;  %v3305_v16 = vmax.f32 %v3275_v7, 0.0  ;;  %v6127_v1 = vld [vmem:[#allocation2 + $0x240] sm:$0xff]  }
0x1193   : > { %v5490_v6 = vpop.f32.mrf.mxu0  ;;  %5530 = vmatprep.subr.bf16.mxu0 %v6127_v1 }
0x1194   : > { %v3278_v57 = vadd.f32 %v5489_v37, %v4887_v29 }
0x1195   : > { %v5491_v14 = vpop.f32.mrf.mxu0 }
0x1196   : > { %v5492_v38 = vadd.f32 %v5491_v14, %v5490_v6  ;;  %v3306_v9 = vmax.f32 %v3278_v57, 0.0  ;;  %v6128_v6 = vld [vmem:[#allocation2 + $0x200] sm:$0xff]  }
0x1197   : > { %v5493_v21 = vpop.f32.mrf.mxu0  ;;  %5531 = vmatpush3.bf16.msra.mxu0 %v6128_v6 }
0x1198   : > { %v3283_v2 = vadd.f32 %v5492_v38, %v4887_v29  ;;  %v3313_v4 = vpack.c.bf16 %v3306_v9, %v3305_v16 }
0x1199   : > { %v5494_v17 = vpop.f32.mrf.mxu0 }
0x119a   : > { %v5495_v31 = vadd.f32 %v5494_v17, %v5493_v21  ;;  %v3307_v3 = vmax.f32 %v3283_v2, 0.0 }
0x119b   : > { %v5496_v18 = vpop.f32.mrf.mxu0 }
0x119c   : > { %v3286_v39 = vadd.f32 %v5495_v31, %v4887_v29 }
0x119d   : > { %v5497_v19 = vpop.f32.mrf.mxu0 }
0x119e   : > { %v5498_v28 = vadd.f32 %v5497_v19, %v5496_v18  ;;  %v3308_v5 = vmax.f32 %v3286_v39, 0.0 }
0x119f   : > { %v5499_v20 = vpop.f32.mrf.mxu0 }
0x11a0   : > { %v3291_v35 = vadd.f32 %v5498_v28, %v4887_v29  ;;  %v3314_v15 = vpack.c.bf16 %v3308_v5, %v3307_v3 }
0x11a1   : > { %v5500_v22 = vpop.f32.mrf.mxu0 }
0x11a2   : > { %v5501_v25 = vadd.f32 %v5500_v22, %v5499_v20  ;;  %v3309_v49 = vmax.f32 %v3291_v35, 0.0 }
0x11a3   : > { %v5502_v23 = vpop.f32.mrf.mxu0 }
0x11a4   : > { %v3294_v32 = vadd.f32 %v5501_v25, %v4887_v29 }
0x11a5   : > { %v5503_v24 = vpop.f32.mrf.mxu0 }
0x11a6   : > { %v5504_v26 = vadd.f32 %v5503_v24, %v5502_v23  ;;  %v3310_v40 = vmax.f32 %v3294_v32, 0.0 }
0x11a7   : > { %v5505_v27 = vpop.f32.mrf.mxu0 }
0x11a8   : > { %v3299_v33 = vadd.f32 %v5504_v26, %v4887_v29  ;;  %v3315_v55 = vpack.c.bf16 %v3310_v40, %v3309_v49 }
0x11a9   : > { %v5506_v30 = vpop.f32.mrf.mxu0 }
0x11aa   : > { %v5507_v34 = vadd.f32 %v5506_v30, %v5505_v27  ;;  %v3311_v43 = vmax.f32 %v3299_v33, 0.0 }
0x11ac   : > { %v3302_v36 = vadd.f32 %v5507_v34, %v4887_v29 }
0x11ae   : > { %v3312_v44 = vmax.f32 %v3302_v36, 0.0 }
0x11b0   : > { %v3316_v52 = vpack.c.bf16 %v3312_v44, %v3311_v43 }
0x11b2   : > { %5860 = vmatprep.subr.bf16.mxu1 %v3316_v52 }
0x11b3   : > { %5861 = vmatpush3.bf16.msra.mxu1 %v3316_v52 }
0x11b4   : > { %5862 = vmatprep.subr.bf16.mxu1 %v3315_v55 }
0x11b7   : > { %5863 = vmatpush3.bf16.msra.mxu1 %v3315_v55 }
0x11b8   : > { %5864 = vmatprep.subr.bf16.mxu1 %v3314_v15 }
0x11bb   : > { %5865 = vmatpush3.bf16.msra.mxu1 %v3314_v15 }
0x11bc   : > { %5866 = vmatprep.subr.bf16.mxu1 %v3313_v4 }
0x11bf   : > { %5867 = vmatpush3.bf16.msra.mxu1 %v3313_v4 }
0x11c2   : > { %5869 = vmatmul.mubr.msk.bf16.vlgmr.msra.gmra.mxu1 %vm489_vm0, %v6758_v48 }
0x11c3   : > { %5872 = vmatprep.mubr.msk.bf16.mxu1 %vm489_vm0, %v6763_v51 }
0x11ca   : > { %5873 = vmatmul.mubr.msk.bf16.gmra.mxu1 %vm489_vm0, %v6768_v53 }
0x11cb   : > { %5884 = vmatprep.mubr.msk.bf16.mxu1 %vm489_vm0, %v6773_v10 }
0x1282   : > { %v5870_v14 = vpop.f32.mrf.mxu1 }
0x1284   : > { %v3386_v21 = vpop.f32.mrf.mxu1 }
0x1286   : > { %v5871_v48 = vpop.f32.mrf.mxu1 }
0x1287   : > { %v3418_v19 = vpack.c.bf16 %v5871_v48, %v5870_v14  ;;  %v6130_v48 = vld [vmem:[%s7301_s4 + $0x2b8] sm:$0xff]  }
0x1288   : > { %v3389_v17 = vpop.f32.mrf.mxu1 }
0x1289   : > { %v3417_v18 = vpack.c.bf16 %v3389_v17, %v3386_v21  ;;  %v6131_v17 = vld [vmem:[%s7301_s4 + $0x2f0] sm:$0xff]  }
0x128a   : > { %v5874_v51 = vpop.f32.mrf.mxu1 }
0x128b   : > { %3555 = vmatprep.mubr.bf16.mxu0 %v3417_v18  ;;  %v7128_v18 = vld [vmem:[%s6315_s26 + $0x8] sm:$0xff]  }
0x128c   : > { %3556 = vmatmul.mubr.bf16.vlgmr.msra.gmra.mxu0 %v3313_v4  ;;  %v3402_v53 = vpop.f32.mrf.mxu1 }
0x128d   : > { %3563 = vmatprep.mubr.bf16.mxu0 %v3418_v19  ;;  %v6132_v19 = vld [vmem:[%s7301_s4 + $0x2b0] sm:$0xff]  }
0x128e   : > { %v5875_v20 = vpop.f32.mrf.mxu1 }
0x128f   : > { %v3420_v24 = vpack.c.bf16 %v5875_v20, %v5874_v51  ;;  %v7133_v51 = vld [vmem:[%s6315_s26 + $0x10] sm:$0xff]   ;;  %v6134_v20 = vld [vmem:[%s7301_s4 + $0x2a8] sm:$0xff]  }
0x1290   : > { %v3405_v22 = vpop.f32.mrf.mxu1 }
0x1291   : > { %v3419_v23 = vpack.c.bf16 %v3405_v22, %v3402_v53  ;;  %v6133_v53 = vld [vmem:[%s7301_s4 + $0x2e8] sm:$0xff]   ;;  %v6135_v22 = vld [vmem:[%s7301_s4 + $0x2e0] sm:$0xff]  }
0x1294   : > { %3564 = vmatmul.mubr.bf16.gmra.mxu0 %v3314_v15 }
0x1295   : > { %3571 = vmatprep.mubr.bf16.mxu0 %v3419_v23  ;;  %v7150_v23 = vld [vmem:[%s6315_s26 + $0x18] sm:$0xff]  }
0x129c   : > { %3572 = vmatmul.mubr.bf16.gmra.mxu0 %v3315_v55 }
0x129d   : > { %3579 = vmatprep.mubr.bf16.mxu0 %v3420_v24  ;;  %v6136_v24 = vld [vmem:[%s7301_s4 + $0x2a0] sm:$0xff]  }
0x12a4   : > { %3580 = vmatmul.mubr.bf16.gmra.mxu0 %v3316_v52 }
0x12a5   : > { %5900 = vmatprep.mubr.msk.bf16.mxu0 %vm489_vm0, %v6773_v10  ;;  %v4909_v10 = vld [vmem:[%s7304_s7 + $0x4] ss:$0 sm:$0xff] }
0x134c   : > { %v5532_v25 = vpop.f32.mrf.mxu0 }
0x134e   : > { %v5533_v26 = vpop.f32.mrf.mxu0 }
0x134f   : > { %v5534_v4 = vadd.f32 %v5533_v26, %v5532_v25  ;;  %v6137_v25 = vld [vmem:[%s7301_s4 + $0x2d8] sm:$0xff]  }
0x1350   : > { %v5535_v27 = vpop.f32.mrf.mxu0  ;;  %v6138_v26 = vld [vmem:[%s7301_s4 + $0x298] sm:$0xff]  }
0x1351   : > { %v3558_v14 = vadd.f32 %v5534_v4, %v4909_v10  ;;  %v6154_v4 = vld [vmem:[#allocation2 + $0x298] sm:$0xff]  }
0x1352   : > { %v5536_v28 = vpop.f32.mrf.mxu0 }
0x1353   : > { %v5537_v7 = vadd.f32 %v5536_v28, %v5535_v27  ;;  %v6139_v27 = vld [vmem:[%s7301_s4 + $0x2d0] sm:$0xff]  }
0x1354   : > { %v5538_v29 = vpop.f32.mrf.mxu0  ;;  %v6140_v28 = vld [vmem:[%s7301_s4 + $0x290] sm:$0xff]  }
0x1355   : > { %v3561_v6 = vadd.f32 %v5537_v7, %v4909_v10  ;;  %v6151_v7 = vld [vmem:[#allocation2 + $0x2e0] sm:$0xff]  }
0x1356   : > { %v5539_v30 = vpop.f32.mrf.mxu0 }
0x1357   : > { %v5540_v57 = vadd.f32 %v5539_v30, %v5538_v29  ;;  %v6141_v29 = vld [vmem:[%s7301_s4 + $0x2c8] sm:$0xff]  }
0x1358   : > { %v5541_v31 = vpop.f32.mrf.mxu0  ;;  %v6142_v30 = vld [vmem:[%s7301_s4 + $0x288] sm:$0xff]  }
0x1359   : > { %v3566_v8 = vadd.f32 %v5540_v57, %v4909_v10  ;;  %v6148_v57 = vld [vmem:[#allocation2 + $0x2b0] sm:$0xff]  }
0x135a   : > { %v5542_v32 = vpop.f32.mrf.mxu0 }
0x135b   : > { %v5543_v45 = vadd.f32 %v5542_v32, %v5541_v31  ;;  %v7079_v11 = vadd.f32 %v3566_v8, %v3024_v62  ;;  %v6143_v31 = vld [vmem:[%s7301_s4 + $0x2c0] sm:$0xff]   ;;  %v6155_v8 = vld [vmem:[#allocation2 + $0x2d0] sm:$0xff]  }
0x135c   : > { %v5544_v33 = vpop.f32.mrf.mxu0  ;;  %v6144_v32 = vld [vmem:[%s7301_s4 + $0x280] sm:$0xff]  }
0x135d   : > { %v3569_v3 = vadd.f32 %v5543_v45, %v4909_v10  ;;  %v3598_v50 = vmax.f32 %v7079_v11, 0.0 }
0x135e   : > { %v5545_v34 = vpop.f32.mrf.mxu0 }
0x135f   : > { %v5546_v40 = vadd.f32 %v5545_v34, %v5544_v33  ;;  %v7072_v41 = vadd.f32 %v3569_v3, %v3025_v60  ;;  %v7103_v60 = vadd.f32 %v3558_v14, %v3022_v13  ;;  %v6129_v13 = vld [vmem:[%s7301_s4 + $0x2f8] sm:$0xff]   ;;  %v6152_v3 = vld [vmem:[#allocation2 + $0x2a0] sm:$0xff]  }
0x1360   : > { %v5547_v38 = vpop.f32.mrf.mxu0 }
0x1361   : > { %v3574_v5 = vadd.f32 %v5546_v40, %v4909_v10  ;;  %v3596_v21 = vmax.f32 %v7103_v60, 0.0  ;;  %v6162_v60 = vld [vmem:[%s7305_s8 + $0x38] sm:$0xff]  }
0x1362   : > { %v5548_v35 = vpop.f32.mrf.mxu0 }
0x1363   : > { %v5549_v37 = vadd.f32 %v5548_v35, %v5547_v38  ;;  %v7064_v59 = vadd.f32 %v3574_v5, %v3026_v54  ;;  %v3599_v54 = vmax.f32 %v7072_v41, 0.0  ;;  %v6149_v5 = vld [vmem:[#allocation2 + $0x2e8] sm:$0xff]  }
0x1364   : > { %v5550_v36 = vpop.f32.mrf.mxu0 }
0x1365   : > { %v3577_v2 = vadd.f32 %v5549_v37, %v4909_v10  ;;  %v3600_v12 = vmax.f32 %v7064_v59, 0.0 }
0x1366   : > { %v5551_v39 = vpop.f32.mrf.mxu0 }
0x1367   : > { %v5552_v43 = vadd.f32 %v5551_v39, %v5550_v36  ;;  %v7056_v9 = vadd.f32 %v3577_v2, %v3027_v0  ;;  %v6145_v2 = vld [vmem:[#allocation2 + $0x2f8] sm:$0xff]  }
0x1368   : > { %v5553_v44 = vpop.f32.mrf.mxu0 }
0x1369   : > { %v3582_v49 = vadd.f32 %v5552_v43, %v4909_v10  ;;  %v3601_v46 = vmax.f32 %v7056_v9, 0.0 }
0x136a   : > { %v5554_v52 = vpop.f32.mrf.mxu0 }
0x136b   : > { %v5555_v55 = vadd.f32 %v5554_v52, %v5553_v44  ;;  %v7060_v15 = vadd.f32 %v3582_v49, %v3028_v63  ;;  %v7098_v56 = vpack.c.bf16 %v3601_v46, %v3600_v12  ;;  %v6146_v49 = vld [vmem:[#allocation2 + $0x2b8] sm:$0xff]   ;;  %v6147_v52 = vld [vmem:[#allocation2 + $0x2f0] sm:$0xff]  }
0x136d   : > { %v3585_v16 = vadd.f32 %v5555_v55, %v4909_v10  ;;  %v3602_v0 = vmax.f32 %v7060_v15, 0.0  ;;  %v6150_v55 = vld [vmem:[#allocation2 + $0x2a8] sm:$0xff]  }
0x136f   : > { %v7068_v1 = vadd.f32 %v3585_v16, %v3029_v42  ;;  %v7090_v42 = vadd.f32 %v3561_v6, %v3023_v61  ;;  %v3605_v61 = vpack.c.bf16 %v3599_v54, %v3598_v50  ;;  %v6153_v16 = vld [vmem:[#allocation2 + $0x2d8] sm:$0xff]   ;;  %v6156_v6 = vld [vmem:[#allocation2 + $0x290] sm:$0xff]  }
0x1371   : > { %v3603_v63 = vmax.f32 %v7068_v1, 0.0  ;;  %v3597_v62 = vmax.f32 %v7090_v42, 0.0 }
0x1373   : > { %v7086_v58 = vpack.c.bf16 %v3603_v63, %v3602_v0  ;;  %v3604_v47 = vpack.c.bf16 %v3597_v62, %v3596_v21 }
0x1375   : > { %5876 = vmatprep.subr.bf16.mxu1 %v7086_v58 }
0x1376   : > { %5877 = vmatpush3.bf16.msra.mxu1 %v7086_v58 }
0x1377   : > { %5878 = vmatprep.subr.bf16.mxu1 %v7098_v56 }
0x137a   : > { %5879 = vmatpush3.bf16.msra.mxu1 %v7098_v56 }
0x137b   : > { %5880 = vmatprep.subr.bf16.mxu1 %v3605_v61 }
0x137e   : > { %5881 = vmatpush3.bf16.msra.mxu1 %v3605_v61 }
0x137f   : > { %5882 = vmatprep.subr.bf16.mxu1 %v3604_v47 }
0x1382   : > { %5883 = vmatpush3.bf16.msra.mxu1 %v3604_v47 }
0x1383   : > { %5564 = vmatprep.subr.bf16.mxu1 %v6129_v13 }
0x1385   : > { %5885 = vmatmul.mubr.msk.bf16.vlgmr.msra.gmra.mxu1 %vm489_vm0, %v7128_v18 }
0x1386   : > { %5888 = vmatprep.mubr.msk.bf16.mxu1 %vm489_vm0, %v7133_v51  ;;  %5565 = vmatpush3.bf16.msra.mxu1 %v6130_v48 }
0x1387   : > { %5566 = vmatprep.subr.bf16.mxu1 %v6131_v17 }
0x138a   : > { %5567 = vmatpush3.bf16.msra.mxu1 %v6132_v19 }
0x138b   : > { %5568 = vmatprep.subr.bf16.mxu1 %v6133_v53 }
0x138d   : > { %5889 = vmatmul.mubr.msk.bf16.gmra.mxu1 %vm489_vm0, %v7150_v23 }
0x138e   : > { %5569 = vmatpush3.bf16.msra.mxu1 %v6134_v20 }
0x138f   : > { %5570 = vmatprep.subr.bf16.mxu1 %v6135_v22 }
0x1392   : > { %5571 = vmatpush3.bf16.msra.mxu1 %v6136_v24 }
0x1393   : > { %5572 = vmatprep.subr.bf16.mxu1 %v6137_v25 }
0x1396   : > { %5573 = vmatpush3.bf16.msra.mxu1 %v6138_v26 }
0x1397   : > { %5574 = vmatprep.subr.bf16.mxu1 %v6139_v27 }
0x139a   : > { %5575 = vmatpush3.bf16.msra.mxu1 %v6140_v28 }
0x139b   : > { %5576 = vmatprep.subr.bf16.mxu1 %v6141_v29 }
0x139e   : > { %5577 = vmatpush3.bf16.msra.mxu1 %v6142_v30  ;;  %v4963_v30 = vld [vmem:[%s7302_s5 + $0x5] ss:$0 sm:$0xff] }
0x139f   : > { %5578 = vmatprep.subr.bf16.mxu1 %v6143_v31 }
0x13a2   : > { %5579 = vmatpush3.bf16.msra.mxu1 %v6144_v32 }
0x13a3   : > { %5612 = vmatprep.subr.bf16.mxu1 %v6145_v2 }
0x1445   : > { %v5886_v33 = vpop.f32.mrf.mxu1 }
0x1447   : > { %v3677_v34 = vpop.f32.mrf.mxu1 }
0x1449   : > { %v5887_v38 = vpop.f32.mrf.mxu1 }
0x144a   : > { %v3709_v39 = vpack.c.bf16 %v5887_v38, %v5886_v33 }
0x144b   : > { %v3680_v35 = vpop.f32.mrf.mxu1 }
0x144c   : > { %v3708_v36 = vpack.c.bf16 %v3680_v35, %v3677_v34 }
0x144d   : > { %v5890_v37 = vpop.f32.mrf.mxu1 }
0x144e   : > { %3846 = vmatprep.mubr.bf16.mxu1 %v3708_v36 }
0x144f   : > { %3847 = vmatmul.mubr.bf16.vlgmr.msra.gmra.mxu1 %v3604_v47  ;;  %v3693_v40 = vpop.f32.mrf.mxu1 }
0x1450   : > { %3854 = vmatprep.mubr.bf16.mxu1 %v3709_v39  ;;  %5613 = vmatpush3.bf16.msra.mxu1 %v6146_v49 }
0x1451   : > { %v5891_v43 = vpop.f32.mrf.mxu1  ;;  %5614 = vmatprep.subr.bf16.mxu1 %v6147_v52 }
0x1452   : > { %v3711_v45 = vpack.c.bf16 %v5891_v43, %v5890_v37 }
0x1453   : > { %v3696_v10 = vpop.f32.mrf.mxu1 }
0x1454   : > { %v3710_v44 = vpack.c.bf16 %v3696_v10, %v3693_v40  ;;  %5615 = vmatpush3.bf16.msra.mxu1 %v6148_v57 }
0x1455   : > { %5616 = vmatprep.subr.bf16.mxu1 %v6149_v5 }
0x1457   : > { %3855 = vmatmul.mubr.bf16.gmra.mxu1 %v3605_v61 }
0x1458   : > { %3862 = vmatprep.mubr.bf16.mxu1 %v3710_v44  ;;  %5617 = vmatpush3.bf16.msra.mxu1 %v6150_v55 }
0x1459   : > { %5618 = vmatprep.subr.bf16.mxu1 %v6151_v7 }
0x145c   : > { %5619 = vmatpush3.bf16.msra.mxu1 %v6152_v3 }
0x145d   : > { %5620 = vmatprep.subr.bf16.mxu1 %v6153_v16 }
0x145f   : > { %3863 = vmatmul.mubr.bf16.gmra.mxu1 %v7098_v56 }
0x1460   : > { %3870 = vmatprep.mubr.bf16.mxu1 %v3711_v45  ;;  %5621 = vmatpush3.bf16.msra.mxu1 %v6154_v4 }
0x1461   : > { %5622 = vmatprep.subr.bf16.mxu1 %v6155_v8 }
0x1464   : > { %5623 = vmatpush3.bf16.msra.mxu1 %v6156_v6 }
0x1467   : > { %3871 = vmatmul.mubr.bf16.gmra.mxu1 %v7086_v58 }
0x150f   : > { %v5580_v14 = vpop.f32.mrf.mxu1 }
0x1511   : > { %v5581_v58 = vpop.f32.mrf.mxu1 }
0x1512   : > { %v5582_v45 = vadd.f32 %v5581_v58, %v5580_v14  ;;  %v6190_v14 = vld [vmem:[%s6315_s26] sm:$0xff]   ;;  %v6157_v58 = vld [vmem:[#allocation2 + $0x2c8] sm:$0xff]  }
0x1513   : > { %v5583_v56 = vpop.f32.mrf.mxu1  ;;  %5624 = vmatprep.subr.bf16.mxu1 %v6157_v58 }
0x1514   : > { %v3849_v7 = vadd.f32 %v5582_v45, %v4963_v30 }
0x1515   : > { %v5584_v61 = vpop.f32.mrf.mxu1 }
0x1516   : > { %v5585_v39 = vadd.f32 %v5584_v61, %v5583_v56  ;;  %v3879_v8 = vmax.f32 %v3849_v7, 0.0  ;;  %v6158_v56 = vld [vmem:[#allocation2 + $0x288] sm:$0xff]   ;;  %v6159_v61 = vld [vmem:[#allocation2 + $0x2c0] sm:$0xff]  }
0x1517   : > { %v5586_v47 = vpop.f32.mrf.mxu1  ;;  %5625 = vmatpush3.bf16.msra.mxu1 %v6158_v56 }
0x1518   : > { %v3852_v57 = vadd.f32 %v5585_v39, %v4963_v30  ;;  %5626 = vmatprep.subr.bf16.mxu1 %v6159_v61 }
0x1519   : > { %v5587_v13 = vpop.f32.mrf.mxu1 }
0x151a   : > { %v5588_v35 = vadd.f32 %v5587_v13, %v5586_v47  ;;  %v3880_v16 = vmax.f32 %v3852_v57, 0.0  ;;  %v6160_v47 = vld [vmem:[#allocation2 + $0x280] sm:$0xff]  }
0x151b   : > { %v5589_v48 = vpop.f32.mrf.mxu1  ;;  %5627 = vmatpush3.bf16.msra.mxu1 %v6160_v47 }
0x151c   : > { %v3857_v2 = vadd.f32 %v5588_v35, %v4963_v30  ;;  %v3887_v6 = vpack.c.bf16 %v3880_v16, %v3879_v8 }
0x151d   : > { %v5590_v17 = vpop.f32.mrf.mxu1 }
0x151e   : > { %v5591_v32 = vadd.f32 %v5590_v17, %v5589_v48  ;;  %v3881_v3 = vmax.f32 %v3857_v2, 0.0 }
0x151f   : > { %v5592_v19 = vpop.f32.mrf.mxu1 }
0x1520   : > { %v3860_v40 = vadd.f32 %v5591_v32, %v4963_v30 }
0x1521   : > { %v5593_v53 = vpop.f32.mrf.mxu1 }
0x1522   : > { %v5594_v29 = vadd.f32 %v5593_v53, %v5592_v19  ;;  %v3882_v5 = vmax.f32 %v3860_v40, 0.0 }
0x1523   : > { %v5595_v20 = vpop.f32.mrf.mxu1 }
0x1524   : > { %v3865_v36 = vadd.f32 %v5594_v29, %v4963_v30  ;;  %v3888_v4 = vpack.c.bf16 %v3882_v5, %v3881_v3 }
0x1525   : > { %v5596_v22 = vpop.f32.mrf.mxu1 }
0x1526   : > { %v5597_v26 = vadd.f32 %v5596_v22, %v5595_v20  ;;  %v3883_v49 = vmax.f32 %v3865_v36, 0.0 }
0x1527   : > { %v5598_v24 = vpop.f32.mrf.mxu1 }
0x1528   : > { %v3868_v33 = vadd.f32 %v5597_v26, %v4963_v30 }
0x1529   : > { %v5599_v25 = vpop.f32.mrf.mxu1 }
0x152a   : > { %v5600_v27 = vadd.f32 %v5599_v25, %v5598_v24  ;;  %v3884_v43 = vmax.f32 %v3868_v33, 0.0 }
0x152b   : > { %v5601_v28 = vpop.f32.mrf.mxu1 }
0x152c   : > { %v3873_v34 = vadd.f32 %v5600_v27, %v4963_v30  ;;  %v3889_v55 = vpack.c.bf16 %v3884_v43, %v3883_v49  ;;  %v4985_v49 = vld [vmem:[%s7304_s7 + $0x5] ss:$0 sm:$0xff] }
0x152d   : > { %v5602_v31 = vpop.f32.mrf.mxu1 }
0x152e   : > { %v5603_v38 = vadd.f32 %v5602_v31, %v5601_v28  ;;  %v3885_v10 = vmax.f32 %v3873_v34, 0.0 }
0x1530   : > { %v3876_v37 = vadd.f32 %v5603_v38, %v4963_v30 }
0x1532   : > { %v3886_v44 = vmax.f32 %v3876_v37, 0.0 }
0x1534   : > { %v3890_v52 = vpack.c.bf16 %v3886_v44, %v3885_v10 }
0x1536   : > { %5892 = vmatprep.subr.bf16.mxu0 %v3890_v52 }
0x1537   : > { %5893 = vmatpush3.bf16.msra.mxu0 %v3890_v52 }
0x1538   : > { %5894 = vmatprep.subr.bf16.mxu0 %v3889_v55 }
0x153b   : > { %5895 = vmatpush3.bf16.msra.mxu0 %v3889_v55 }
0x153c   : > { %5896 = vmatprep.subr.bf16.mxu0 %v3888_v4 }
0x153f   : > { %5897 = vmatpush3.bf16.msra.mxu0 %v3888_v4 }
0x1540   : > { %5898 = vmatprep.subr.bf16.mxu0 %v3887_v6 }
0x1543   : > { %5899 = vmatpush3.bf16.msra.mxu0 %v3887_v6 }
0x1546   : > { %5901 = vmatmul.mubr.msk.bf16.vlgmr.msra.gmra.mxu0 %vm489_vm0, %v7128_v18 }
0x1547   : > { %5904 = vmatprep.mubr.msk.bf16.mxu0 %vm489_vm0, %v7133_v51 }
0x154e   : > { %5905 = vmatmul.mubr.msk.bf16.gmra.mxu0 %vm489_vm0, %v7150_v23 }
0x154f   : > { %5916 = vmatprep.mubr.msk.bf16.mxu0 %vm489_vm0, %v6190_v14 }
0x1606   : > { %v5902_v13 = vpop.f32.mrf.mxu0 }
0x1608   : > { %v3960_v48 = vpop.f32.mrf.mxu0 }
0x160a   : > { %v5903_v17 = vpop.f32.mrf.mxu0 }
0x160b   : > { %v3992_v22 = vpack.c.bf16 %v5903_v17, %v5902_v13 }
0x160c   : > { %v3963_v19 = vpop.f32.mrf.mxu0 }
0x160d   : > { %v3991_v53 = vpack.c.bf16 %v3963_v19, %v3960_v48 }
0x160e   : > { %v5906_v20 = vpop.f32.mrf.mxu0 }
0x160f   : > { %4129 = vmatprep.mubr.bf16.mxu1 %v3991_v53 }
0x1610   : > { %4130 = vmatmul.mubr.bf16.vlgmr.msra.gmra.mxu1 %v3887_v6  ;;  %v3976_v24 = vpop.f32.mrf.mxu0 }
0x1611   : > { %4137 = vmatprep.mubr.bf16.mxu1 %v3992_v22 }
0x1612   : > { %v5907_v25 = vpop.f32.mrf.mxu0 }
0x1613   : > { %v3994_v28 = vpack.c.bf16 %v5907_v25, %v5906_v20  ;;  %v6165_v25 = vld [vmem:[%s7305_s8 + $0x68] sm:$0xff]  }
0x1614   : > { %v3979_v26 = vpop.f32.mrf.mxu0 }
0x1615   : > { %v3993_v27 = vpack.c.bf16 %v3979_v26, %v3976_v24  ;;  %v6164_v24 = vld [vmem:[%s7305_s8 + $0x30] sm:$0xff]   ;;  %v6166_v26 = vld [vmem:[%s7305_s8 + $0x28] sm:$0xff]  }
0x1618   : > { %4138 = vmatmul.mubr.bf16.gmra.mxu1 %v3888_v4 }
0x1619   : > { %4145 = vmatprep.mubr.bf16.mxu1 %v3993_v27  ;;  %v6169_v27 = vld [vmem:[%s7305_s8 + $0x58] sm:$0xff]  }
0x1620   : > { %4146 = vmatmul.mubr.bf16.gmra.mxu1 %v3889_v55 }
0x1621   : > { %4153 = vmatprep.mubr.bf16.mxu1 %v3994_v28  ;;  %v6170_v28 = vld [vmem:[%s7305_s8 + $0x18] sm:$0xff]  }
0x1628   : > { %4154 = vmatmul.mubr.bf16.gmra.mxu1 %v3890_v52 }
0x16d0   : > { %v5628_v29 = vpop.f32.mrf.mxu1 }
0x16d2   : > { %v5629_v30 = vpop.f32.mrf.mxu1 }
0x16d3   : > { %v5630_v61 = vadd.f32 %v5629_v30, %v5628_v29  ;;  %v6172_v29 = vld [vmem:[%s7305_s8 + $0x10] sm:$0xff]   ;;  %v6173_v30 = vld [vmem:[%s7305_s8 + $0x48] sm:$0xff]  }
0x16d4   : > { %v5631_v31 = vpop.f32.mrf.mxu1 }
0x16d6   : > { %v5632_v32 = vpop.f32.mrf.mxu1 }
0x16d7   : > { %v5633_v8 = vadd.f32 %v5632_v32, %v5631_v31  ;;  %v6174_v31 = vld [vmem:[%s7305_s8 + $0x8] sm:$0xff]   ;;  %v6175_v32 = vld [vmem:[%s7305_s8 + $0x40] sm:$0xff]  }
0x16d8   : > { %v5634_v33 = vpop.f32.mrf.mxu1 }
0x16d9   : > { %v4135_v17 = vadd.f32 %v5633_v8, %v4985_v49 }
0x16da   : > { %v5635_v34 = vpop.f32.mrf.mxu1 }
0x16db   : > { %v5636_v3 = vadd.f32 %v5635_v34, %v5634_v33  ;;  %v4163_v59 = vadd.f32 %v4135_v17, %v3597_v62  ;;  %v6161_v62 = vld [vmem:[%s7305_s8 + $0x78] sm:$0xff]   ;;  %v6176_v33 = vld [vmem:[%s7305_s8] sm:$0xff]  }
0x16dc   : > { %v5637_v38 = vpop.f32.mrf.mxu1 }
0x16dd   : > { %v4140_v47 = vadd.f32 %v5636_v3, %v4985_v49  ;;  %v4171_v11 = vmax.f32 %v4163_v59, 0.0 }
0x16de   : > { %v5638_v35 = vpop.f32.mrf.mxu1 }
0x16df   : > { %v5639_v57 = vadd.f32 %v5638_v35, %v5637_v38  ;;  %v4164_v15 = vadd.f32 %v4140_v47, %v3598_v50 }
0x16e0   : > { %v5640_v36 = vpop.f32.mrf.mxu1 }
0x16e1   : > { %v4143_v6 = vadd.f32 %v5639_v57, %v4985_v49 }
0x16e2   : > { %v5641_v37 = vpop.f32.mrf.mxu1 }
0x16e3   : > { %v5642_v45 = vadd.f32 %v5641_v37, %v5640_v36  ;;  %v4165_v19 = vadd.f32 %v4143_v6, %v3599_v54 }
0x16e4   : > { %v5643_v39 = vpop.f32.mrf.mxu1 }
0x16e5   : > { %v4148_v16 = vadd.f32 %v5642_v45, %v4985_v49 }
0x16e6   : > { %v5644_v40 = vpop.f32.mrf.mxu1 }
0x16e7   : > { %v5645_v10 = vadd.f32 %v5644_v40, %v5643_v39  ;;  %v4166_v13 = vadd.f32 %v4148_v16, %v3600_v12  ;;  %v4173_v12 = vmax.f32 %v4165_v19, 0.0 }
0x16e8   : > { %v5646_v43 = vpop.f32.mrf.mxu1 }
0x16e9   : > { %v4151_v5 = vadd.f32 %v5645_v10, %v4985_v49 }
0x16ea   : > { %v5647_v44 = vpop.f32.mrf.mxu1 }
0x16eb   : > { %v5648_v2 = vadd.f32 %v5647_v44, %v5646_v43  ;;  %v4167_v14 = vadd.f32 %v4151_v5, %v3601_v46  ;;  %v4132_v46 = vadd.f32 %v5630_v61, %v4985_v49 }
0x16ec   : > { %v5649_v52 = vpop.f32.mrf.mxu1 }
0x16ed   : > { %v4156_v55 = vadd.f32 %v5648_v2, %v4985_v49  ;;  %v4175_v53 = vmax.f32 %v4167_v14, 0.0  ;;  %v4162_v41 = vadd.f32 %v4132_v46, %v3596_v21  ;;  %v6163_v21 = vld [vmem:[%s7305_s8 + $0x70] sm:$0xff]  }
0x16ee   : > { %v5650_v7 = vpop.f32.mrf.mxu1 }
0x16ef   : > { %v5651_v4 = vadd.f32 %v5650_v7, %v5649_v52  ;;  %v4168_v58 = vadd.f32 %v4156_v55, %v3602_v0  ;;  %v4174_v0 = vmax.f32 %v4166_v13, 0.0  ;;  %v4170_v50 = vmax.f32 %v4162_v41, 0.0  ;;  %v5006_v52 = vld [vmem:[%s7306_s9] ss:$0 sm:$0xff] }
0x16f1   : > { %v4159_v56 = vadd.f32 %v5651_v4, %v4985_v49  ;;  %v4176_v20 = vmax.f32 %v4168_v58, 0.0  ;;  %v7214_v1 = vpack.c.bf16 %v4175_v53, %v4174_v0  ;;  %v4178_v42 = vpack.c.bf16 %v4171_v11, %v4170_v50 }
0x16f3   : > { %v4169_v48 = vadd.f32 %v4159_v56, %v3603_v63  ;;  %v4172_v63 = vmax.f32 %v4164_v15, 0.0 }
0x16f5   : > { %v4177_v9 = vmax.f32 %v4169_v48, 0.0  ;;  %v4179_v54 = vpack.c.bf16 %v4173_v12, %v4172_v63 }
0x16f7   : > { %v7209_v22 = vpack.c.bf16 %v4177_v9, %v4176_v20 }
0x16f9   : > { %5908 = vmatprep.subr.bf16.mxu0 %v7209_v22 }
0x16fa   : > { %5909 = vmatpush3.bf16.msra.mxu0 %v7209_v22 }
0x16fb   : > { %5910 = vmatprep.subr.bf16.mxu0 %v7214_v1 }
0x16fe   : > { %5911 = vmatpush3.bf16.msra.mxu0 %v7214_v1 }
0x16ff   : > { %5912 = vmatprep.subr.bf16.mxu0 %v4179_v54 }
0x1702   : > { %5913 = vmatpush3.bf16.msra.mxu0 %v4179_v54 }
0x1703   : > { %5914 = vmatprep.subr.bf16.mxu0 %v4178_v42 }
0x1706   : > { %5915 = vmatpush3.bf16.msra.mxu0 %v4178_v42 }
0x1707   : > { %5660 = vmatprep.subr.bf16.mxu0 %v6161_v62 }
0x1709   : > { %5917 = vmatmul.mubr.msk.bf16.vlgmr.msra.gmra.mxu0 %vm489_vm0, %v7128_v18  ;;  %v6167_v18 = vld [vmem:[%s7305_s8 + $0x60] sm:$0xff]  }
0x170a   : > { %5920 = vmatprep.mubr.msk.bf16.mxu0 %vm489_vm0, %v7133_v51  ;;  %5661 = vmatpush3.bf16.msra.mxu0 %v6162_v60  ;;  %v6168_v51 = vld [vmem:[%s7305_s8 + $0x20] sm:$0xff]  }
0x170b   : > { %5662 = vmatprep.subr.bf16.mxu0 %v6163_v21 }
0x170e   : > { %5663 = vmatpush3.bf16.msra.mxu0 %v6164_v24 }
0x170f   : > { %5664 = vmatprep.subr.bf16.mxu0 %v6165_v25 }
0x1711   : > { %5921 = vmatmul.mubr.msk.bf16.gmra.mxu0 %vm489_vm0, %v7150_v23  ;;  %v6171_v23 = vld [vmem:[%s7305_s8 + $0x50] sm:$0xff]  }
0x1712   : > { %5665 = vmatpush3.bf16.msra.mxu0 %v6166_v26 }
0x1713   : > { %5666 = vmatprep.subr.bf16.mxu0 %v6167_v18 }
0x1716   : > { %5667 = vmatpush3.bf16.msra.mxu0 %v6168_v51 }
0x1717   : > { %5668 = vmatprep.subr.bf16.mxu0 %v6169_v27 }
0x171a   : > { %5669 = vmatpush3.bf16.msra.mxu0 %v6170_v28 }
0x171b   : > { %5670 = vmatprep.subr.bf16.mxu0 %v6171_v23 }
0x171e   : > { %5671 = vmatpush3.bf16.msra.mxu0 %v6172_v29 }
0x171f   : > { %5672 = vmatprep.subr.bf16.mxu0 %v6173_v30 }
0x1722   : > { %5673 = vmatpush3.bf16.msra.mxu0 %v6174_v31 }
0x1723   : > { %5674 = vmatprep.subr.bf16.mxu0 %v6175_v32 }
0x1726   : > { %5675 = vmatpush3.bf16.msra.mxu0 %v6176_v33 }
0x17c9   : > { %v5918_v34 = vpop.f32.mrf.mxu0 }
0x17cb   : > { %v4249_v38 = vpop.f32.mrf.mxu0 }
0x17cd   : > { %v5919_v35 = vpop.f32.mrf.mxu0 }
0x17ce   : > { %v4281_v40 = vpack.c.bf16 %v5919_v35, %v5918_v34 }
0x17cf   : > { %v4252_v36 = vpop.f32.mrf.mxu0 }
0x17d0   : > { %v4280_v37 = vpack.c.bf16 %v4252_v36, %v4249_v38 }
0x17d1   : > { %v5922_v39 = vpop.f32.mrf.mxu0 }
0x17d2   : > { %4418 = vmatprep.mubr.bf16.mxu0 %v4280_v37 }
0x17d3   : > { %4419 = vmatmul.mubr.bf16.vlgmr.msra.gmra.mxu0 %v4178_v42  ;;  %v4265_v43 = vpop.f32.mrf.mxu0 }
0x17d4   : > { %4426 = vmatprep.mubr.bf16.mxu0 %v4281_v40 }
0x17d5   : > { %v5923_v10 = vpop.f32.mrf.mxu0 }
0x17d6   : > { %v4283_v2 = vpack.c.bf16 %v5923_v10, %v5922_v39 }
0x17d7   : > { %v4268_v44 = vpop.f32.mrf.mxu0 }
0x17d8   : > { %v4282_v45 = vpack.c.bf16 %v4268_v44, %v4265_v43 }
0x17db   : > { %4427 = vmatmul.mubr.bf16.gmra.mxu0 %v4179_v54 }
0x17dc   : > { %4434 = vmatprep.mubr.bf16.mxu0 %v4282_v45 }
0x17e3   : > { %4435 = vmatmul.mubr.bf16.gmra.mxu0 %v7214_v1 }
0x17e4   : > { %4442 = vmatprep.mubr.bf16.mxu0 %v4283_v2 }
0x17eb   : > { %4443 = vmatmul.mubr.bf16.gmra.mxu0 %v7209_v22 }
0x1893   : > { %v5676_v49 = vpop.f32.mrf.mxu0 }
0x1895   : > { %v5677_v57 = vpop.f32.mrf.mxu0 }
0x1896   : > { %v5678_v5 = vadd.f32 %v5677_v57, %v5676_v49 }
0x1897   : > { %v5679_v55 = vpop.f32.mrf.mxu0 }
0x1898   : > { %v4421_v7 = vadd.f32 %v5678_v5, %v5006_v52 }
0x1899   : > { %v5680_v3 = vpop.f32.mrf.mxu0 }
0x189a   : > { %4451 = vst [vmem:[%s7284_s25] sm:$0xff] %v4421_v7  ;;  %v5681_v16 = vadd.f32 %v5680_v3, %v5679_v55 }
0x189b   : > { %v5682_v4 = vpop.f32.mrf.mxu0 }
0x189c   : > { %v4424_v8 = vadd.f32 %v5681_v16, %v5006_v52 }
0x189d   : > { %v5683_v6 = vpop.f32.mrf.mxu0 }
0x189e   : > { %4452 = vst [vmem:[%s7284_s25 + $0x8] sm:$0xff] %v4424_v8  ;;  %v5684_v14 = vadd.f32 %v5683_v6, %v5682_v4 }
0x189f   : > { %v5685_v58 = vpop.f32.mrf.mxu0 }
0x18a0   : > { %v4429_v56 = vadd.f32 %v5684_v14, %v5006_v52 }
0x18a1   : > { %v5686_v61 = vpop.f32.mrf.mxu0 }
0x18a2   : > { %4453 = vst [vmem:[%s7284_s25 + $0x10] sm:$0xff] %v4429_v56  ;;  %v5687_v47 = vadd.f32 %v5686_v61, %v5685_v58 }
0x18a3   : > { %v5688_v13 = vpop.f32.mrf.mxu0 }
0x18a4   : > { %v4432_v48 = vadd.f32 %v5687_v47, %v5006_v52 }
0x18a5   : > { %v5689_v17 = vpop.f32.mrf.mxu0 }
0x18a6   : > { %4454 = vst [vmem:[%s7284_s25 + $0x18] sm:$0xff] %v4432_v48  ;;  %v5690_v19 = vadd.f32 %v5689_v17, %v5688_v13 }
0x18a7   : > { %v5691_v53 = vpop.f32.mrf.mxu0 }
0x18a8   : > { %v4437_v20 = vadd.f32 %v5690_v19, %v5006_v52 }
0x18a9   : > { %v5692_v9 = vpop.f32.mrf.mxu0 }
0x18aa   : > { %4455 = vst [vmem:[%s7284_s25 + $0x20] sm:$0xff] %v4437_v20  ;;  %v5693_v46 = vadd.f32 %v5692_v9, %v5691_v53 }
0x18ab   : > { %v5694_v15 = vpop.f32.mrf.mxu0 }
0x18ac   : > { %v4440_v0 = vadd.f32 %v5693_v46, %v5006_v52 }
0x18ad   : > { %v5695_v22 = vpop.f32.mrf.mxu0 }
0x18ae   : > { %4456 = vst [vmem:[%s7284_s25 + $0x28] sm:$0xff] %v4440_v0  ;;  %v5696_v59 = vadd.f32 %v5695_v22, %v5694_v15 }
0x18af   : > { %v5697_v12 = vpop.f32.mrf.mxu0 }
0x18b0   : > { %v4445_v1 = vadd.f32 %v5696_v59, %v5006_v52 }
0x18b1   : > { %v5698_v41 = vpop.f32.mrf.mxu0 }
0x18b2   : > { %4457 = vst [vmem:[%s7284_s25 + $0x30] sm:$0xff] %v4445_v1  ;;  %v5699_v63 = vadd.f32 %v5698_v41, %v5697_v12 }
0x18b4   : > { %v4448_v11 = vadd.f32 %v5699_v63, %v5006_v52 }
0x18b6   : > { %4458 = vst [vmem:[%s7284_s25 + $0x38] sm:$0xff] %v4448_v11 }
0x18b7 PF: > { %s21_s13 = sadd.s32 1, %s6227_s13  }
0x18b8   : > { %p18_p1 = scmp.ge.s32.totalorder %s21_s13, 4  }
0x18ba   :  { %20 = sbr.rel (!%p18_p1) target bundleno = 1 (0x1), region = 118 }
0x18bf   :  { %4480 = vsyncpa [#allocation3], 1 }
0x18c0   :  { %4482 = vsyncpa [#allocation3 + $0x1], 1 }

</bundles_post_ra>
